<compile_context>
chip_gen: v6e
topology: v6e:2x2x1
jax: 0.10.0
libtpu: 0.0.40
codegen_flags: <defaults>
</compile_context>

<pallas_src>
import functools

import jax
import jax.numpy as jnp
from jax.experimental import pallas as pl
from jax.experimental.pallas import tpu as pltpu

LEAKY_SLOPE = 0.01
BN_EPS = 1e-5
PACK = 4                        # output rows packed per 128-lane row (4 x 32 channels)
MAX_TILE_M4 = 4096              # max packed rows per grid step (= 16384 original rows)
SPLIT_M4 = 256                  # split into >=2 grid steps above this many packed rows
POOL_TILE_R = 4096              # lanes per pooling grid step
VMEM_LIMIT = 32 * 1024 * 1024   # scoped VMEM limit; <=48 MiB keeps v7x (64 MiB/TC) safe

# Spatial shapes of the conv stacks right before flatten+Linear; forced by the module's
# Linear(3072,128)/Linear(192,128) given the conv/pool arithmetic (input (B,192,32)).
LARGE_FLAT_HWC = (16, 6, 32)
SMALL_FLAT_HWC = (6, 1, 32)


def _round_up(x, m):
    return ((x + m - 1) // m) * m


# ---------------------------------------------------------------------------
# Pallas kernels
# ---------------------------------------------------------------------------
def _conv_matmul_kernel(a_ref, w_ref, scale_ref, shift_ref, o_ref, *, slope):
    # o = leaky_relu((a @ w) * scale + shift); conv bias & eval-BatchNorm pre-folded
    # into scale/shift.  a is the 4-row-packed im2col tile, w the block-diag weight.
    acc = jnp.dot(a_ref[...], w_ref[...], preferred_element_type=jnp.float32)
    acc = acc * scale_ref[...] + shift_ref[...]
    if slope is not None:
        acc = jnp.maximum(acc, acc * slope)          # LeakyReLU, 2 VPU ops
    o_ref[...] = acc.astype(o_ref.dtype)


def _colmax_kernel(p_ref, o_ref):
    # Max over the pooling-window axis (sublanes); rows stay lane-dense in the output.
    m = jnp.max(p_ref[...].astype(jnp.float32), axis=0, keepdims=True)
    o_ref[...] = m.astype(o_ref.dtype)


def _tail_kernel(lg_ref, sm_ref, wl_ref, bl_ref, ws_ref, bs_ref,
                 w1_ref, s1_ref, sh1_ref, w2_ref, b2_ref, w3_ref, b3_ref,
                 o_ref, *, slope):
    # shrink(large) + shrink2(small) -> fc1+BN1d+LReLU -> fc2+LReLU -> fc3;
    # every intermediate stays in VMEM / vregs.
    x = jnp.dot(lg_ref[...], wl_ref[...], preferred_element_type=jnp.float32) + bl_ref[...]
    x = x + jnp.dot(sm_ref[...], ws_ref[...], preferred_element_type=jnp.float32) + bs_ref[...]
    h = jnp.dot(x.astype(jnp.bfloat16), w1_ref[...], preferred_element_type=jnp.float32)
    h = h * s1_ref[...] + sh1_ref[...]
    h = jnp.maximum(h, h * slope)
    h = jnp.dot(h.astype(jnp.bfloat16), w2_ref[...], preferred_element_type=jnp.float32)
    h = h + b2_ref[...]
    h = jnp.maximum(h, h * slope)
    o_ref[...] = jnp.sum(h * w3_ref[...], axis=-1, keepdims=True) + b3_ref[...]


# ---------------------------------------------------------------------------
# Pallas wrappers
# ---------------------------------------------------------------------------
def _choose_m_tiling(m_rows):
    """Return (tile, padded) in PACKED rows for a conv matmul with m_rows rows."""
    m4 = -(-m_rows // PACK)
    if m4 <= SPLIT_M4:                               # small -> single grid step
        tm4 = _round_up(max(m4, 8), 8)
        return tm4, tm4
    # enough work: keep >=2 grid steps so v7x's two TensorCores both get a share
    tm4 = min(MAX_TILE_M4, _round_up(-(-m4 // 2), 8))
    return tm4, _round_up(m4, tm4)


def fused_conv_matmul(a, layer, slope=None):
    """(M,K) bf16 im2col @ block-diag weight -> (M,32) bf16, lane-dense (M/4,128) tiles."""
    M, K = a.shape
    KP4, NP = layer["w"].shape                       # (PACK*Kp, PACK*32)
    Kp = KP4 // PACK
    N0 = NP // PACK
    tm4, mp4 = _choose_m_tiling(M)
    Mp = mp4 * PACK
    if Mp != M or Kp != K:
        a = jnp.pad(a, ((0, Mp - M), (0, Kp - K)))   # small bf16 pad only when ragged
    a4 = a.reshape(mp4, PACK * Kp)                   # free row-major re-view

    out = pl.pallas_call(
        functools.partial(_conv_matmul_kernel, slope=slope),
        out_shape=jax.ShapeDtypeStruct((mp4, NP), jnp.bfloat16),
        grid=(mp4 // tm4,),
        in_specs=[
            pl.BlockSpec((tm4, PACK * Kp), lambda i: (i, 0)),   # packed activations (pipelined)
            pl.BlockSpec((PACK * Kp, NP), lambda i: (0, 0)),    # block-diag weight, resident
            pl.BlockSpec((1, NP), lambda i: (0, 0)),            # per-column scale
            pl.BlockSpec((1, NP), lambda i: (0, 0)),            # per-column shift (bias folded)
        ],
        out_specs=pl.BlockSpec((tm4, NP), lambda i: (i, 0)),
        compiler_params=pltpu.CompilerParams(
            dimension_semantics=("parallel",),
            vmem_limit_bytes=VMEM_LIMIT,
        ),
        cost_estimate=pl.CostEstimate(
            flops=2 * mp4 * PACK * Kp * NP,
            transcendentals=0,
            bytes_accessed=mp4 * PACK * Kp * 2 + PACK * Kp * NP * 2 + mp4 * NP * 2 + 2 * NP * 4,
        ),
    )(a4, layer["w"], layer["scale"], layer["shift"])

    out = out.reshape(Mp, N0)
    return out[:M] if Mp != M else out


def colmax(p, tile_r=POOL_TILE_R):
    """Max over axis 0 of a (window, rows) matrix -> (rows,), keeping producer dtype."""
    P, R = p.shape
    TR = min(tile_r, _round_up(R, 128))
    Rp = _round_up(R, TR)
    if Rp != R:
        p = jnp.pad(p, ((0, 0), (0, Rp - R)))
    out = pl.pallas_call(
        _colmax_kernel,
        out_shape=jax.ShapeDtypeStruct((1, Rp), p.dtype),
        grid=(Rp // TR,),
        in_specs=[pl.BlockSpec((P, TR), lambda r: (0, r))],
        out_specs=pl.BlockSpec((1, TR), lambda r: (0, r)),
        compiler_params=pltpu.CompilerParams(
            dimension_semantics=("parallel",),
            vmem_limit_bytes=VMEM_LIMIT,
        ),
    )(p)
    return out[0, :R]


def fused_tail(large_flat, small_flat, tail):
    """One Pallas call: shrink+shrink2 -> add -> fc1+BN1d+LReLU -> fc2+LReLU -> fc3."""
    B = large_flat.shape[0]
    Bp = _round_up(B, 8)
    if Bp != B:
        large_flat = jnp.pad(large_flat, ((0, Bp - B), (0, 0)))
        small_flat = jnp.pad(small_flat, ((0, Bp - B), (0, 0)))
    args = (large_flat, small_flat,
            tail["wl"], tail["bl"], tail["ws"], tail["bs"],
            tail["w1"], tail["s1"], tail["sh1"],
            tail["w2"], tail["b2"], tail["w3"], tail["b3"])
    out = pl.pallas_call(
        functools.partial(_tail_kernel, slope=LEAKY_SLOPE),
        out_shape=jax.ShapeDtypeStruct((Bp, 1), jnp.float32),
        grid=(1,),
        in_specs=[pl.BlockSpec(a.shape, lambda i: (0, 0)) for a in args],
        out_specs=pl.BlockSpec((Bp, 1), lambda i: (0, 0)),
        compiler_params=pltpu.CompilerParams(vmem_limit_bytes=VMEM_LIMIT),
    )(*args)
    return out[:B, 0]


# ---------------------------------------------------------------------------
# Glue: static strided-slice patch extraction (NHWC, no gathers), conv & pools
# ---------------------------------------------------------------------------
def _window_slices(x, kh, kw, sh, sw, ph, pw, pad_value):
    """kh*kw strided slices of padded NHWC x, each of shape (B, OH, OW, C)."""
    B, H, W, C = x.shape
    xp = x if (ph == 0 and pw == 0) else jnp.pad(
        x, ((0, 0), (ph, ph), (pw, pw), (0, 0)), constant_values=pad_value)
    Hp, Wp = H + 2 * ph, W + 2 * pw
    OH = (Hp - kh) // sh + 1
    OW = (Wp - kw) // sw + 1
    slabs = []
    for di in range(kh):
        for dj in range(kw):
            slabs.append(jax.lax.slice(
                xp,
                (0, di, dj, 0),
                (B, di + (OH - 1) * sh + 1, dj + (OW - 1) * sw + 1, C),
                (1, sh, sw, 1)))
    return slabs, OH, OW


def conv2d(x, layer, kh, kw, stride, padding, slope=None):
    """NHWC conv (bias / eval-BN / LeakyReLU folded) via im2col + packed Pallas matmul."""
    B, H, W, C = x.shape
    slabs, OH, OW = _window_slices(x, kh, kw, stride, stride, padding, padding, 0.0)
    # K ordering = (Cin, kh, kw), matching PyTorch weight.reshape(Cout, Cin*kh*kw)
    a = jnp.stack(slabs, axis=-1).reshape(B * OH * OW, C * kh * kw)   # stays bf16
    out = fused_conv_matmul(a, layer, slope=slope)
    return out.reshape(B, OH, OW, -1)


def maxpool_4x4_s4_p2(x):
    """MaxPool2d((4,4),4,2): 16 disjoint window slabs -> Pallas column-max (bf16 in/out)."""
    B, H, W, C = x.shape
    slabs, OH, OW = _window_slices(x, 4, 4, 4, 4, 2, 2, -jnp.inf)
    p = jnp.stack(slabs, axis=0).reshape(16, B * OH * OW * C)   # window axis on sublanes
    return colmax(p).reshape(B, OH, OW, C)


def maxpool_16x16_s8(x):
    """MaxPool2d((16,16),8): exact decomposition into a non-overlapping 8x8/s8 max
    (reshape + max, zero duplication) followed by a 2x2/s1 max over 4 slabs."""
    B, H, W, C = x.shape
    H1, W1 = H // 8, W // 8
    s1 = x[:, :H1 * 8, :W1 * 8, :].reshape(B, H1, 8, W1, 8, C).max(axis=(2, 4))
    return jnp.maximum(jnp.maximum(s1[:, :-1, :-1, :], s1[:, 1:, :-1, :]),
                       jnp.maximum(s1[:, :-1, 1:, :], s1[:, 1:, 1:, :]))


# ---------------------------------------------------------------------------
# Parameters (deterministic synthetic init), one-time prep, and forward
# ---------------------------------------------------------------------------
def init_params(key):
    ks = jax.random.split(key, 18)
    n = lambda k, shape, s=0.05: jax.random.normal(k, shape, jnp.float32) * s
    return {
        "cnn_large_w": n(ks[0], (32, 1, 8, 8)), "cnn_large_b": n(ks[1], (32,)),
        "cnn1_w": n(ks[2], (32, 32, 2, 2)),     "cnn1_b": n(ks[3], (32,)),
        "cnn_small_w": n(ks[4], (32, 1, 2, 2)), "cnn_small_b": n(ks[5], (32,)),
        "cnn2_w": n(ks[6], (32, 32, 2, 2)),     "cnn2_b": n(ks[7], (32,)),
        "shrink_w": n(ks[8], (128, 3072)),      "shrink_b": n(ks[9], (128,)),
        "shrink2_w": n(ks[10], (128, 192)),     "shrink2_b": n(ks[11], (128,)),
        "fc1_w": n(ks[12], (32, 128)),          "fc1_b": n(ks[13], (32,)),
        "fc2_w": n(ks[14], (16, 32)),           "fc2_b": n(ks[15], (16,)),
        "fc3_w": n(ks[16], (1, 16)),            "fc3_b": n(ks[17], (1,)),
        # BatchNorm (PyTorch default init; eval mode uses running stats)
        "bn2d_1": (jnp.ones((32,)), jnp.zeros((32,)), jnp.zeros((32,)), jnp.ones((32,))),
        "bn2d_2": (jnp.ones((32,)), jnp.zeros((32,)), jnp.zeros((32,)), jnp.ones((32,))),
        "bn1d":   (jnp.ones((32,)), jnp.zeros((32,)), jnp.zeros((32,)), jnp.ones((32,))),
    }


def _bn_fold(gamma, beta, running_mean, running_var, eps=BN_EPS):
    scale = gamma / jnp.sqrt(running_var + eps)
    return scale, beta - running_mean * scale


def _prep_conv(w, b, bn=None):
    """PyTorch conv weight (Cout,Cin,kh,kw) -> block-diag kron(I4,W) bf16 weight of shape
    (PACK*Kp, PACK*Cout) plus folded f32 scale/shift (bias & eval-BN), tiled PACK times."""
    cout = w.shape[0]
    w2d = w.reshape(cout, -1).T                      # (K, Cout), K order = (Cin, kh, kw)
    K = w2d.shape[0]
    Kp = _round_up(K, 8)
    if Kp != K:
        w2d = jnp.pad(w2d, ((0, Kp - K), (0, 0)))
    if bn is not None:
        scale, shift = _bn_fold(*bn)
        shift = b * scale + shift                    # fold conv bias into shift
    else:
        scale = jnp.ones((cout,), jnp.float32)
        shift = b.astype(jnp.float32)
    w_blockdiag = jnp.kron(jnp.eye(PACK, dtype=jnp.float32), w2d)   # (PACK*Kp, PACK*Cout)
    return {"w": w_blockdiag.astype(jnp.bfloat16),
            "scale": jnp.tile(scale, PACK).reshape(1, -1).astype(jnp.float32),
            "shift": jnp.tile(shift, PACK).reshape(1, -1).astype(jnp.float32)}


def _prep_shrink(w, b, hwc):
    """PyTorch Linear over an NCHW flatten -> permute its K rows once to NHWC order,
    so the runtime NHWC flatten needs no transpose."""
    out_dim = w.shape[0]
    H, W, C = hwc
    w_nhwc = w.reshape(out_dim, C, H, W).transpose(0, 2, 3, 1).reshape(out_dim, -1).T
    return w_nhwc.astype(jnp.bfloat16), b.reshape(1, -1).astype(jnp.float32)


def prepare_params(p):
    """One-time weight prep (transpose/permute/pad/bf16/kron + bias/BN folding)."""
    wl, bl = _prep_shrink(p["shrink_w"], p["shrink_b"], LARGE_FLAT_HWC)
    ws, bs = _prep_shrink(p["shrink2_w"], p["shrink2_b"], SMALL_FLAT_HWC)
    s1, sh1 = _bn_fold(*p["bn1d"])
    return {
        "cnn_large": _prep_conv(p["cnn_large_w"], p["cnn_large_b"], p["bn2d_1"]),
        "cnn1":      _prep_conv(p["cnn1_w"], p["cnn1_b"]),
        "cnn_small": _prep_conv(p["cnn_small_w"], p["cnn_small_b"], p["bn2d_2"]),
        "cnn2":      _prep_conv(p["cnn2_w"], p["cnn2_b"]),
        "tail": {
            "wl": wl, "bl": bl, "ws": ws, "bs": bs,
            "w1": p["fc1_w"].T.astype(jnp.bfloat16),                       # (128, 32)
            "s1": s1.reshape(1, -1).astype(jnp.float32),
            "sh1": (p["fc1_b"] * s1 + sh1).reshape(1, -1).astype(jnp.float32),
            "w2": p["fc2_w"].T.astype(jnp.bfloat16),                       # (32, 16)
            "b2": p["fc2_b"].reshape(1, -1).astype(jnp.float32),
            "w3": p["fc3_w"].astype(jnp.float32),                          # (1, 16) row
            "b3": p["fc3_b"].reshape(1, 1).astype(jnp.float32),
        },
    }


def forward(prep, x):
    # PyTorch: complex.unsqueeze(1) -> NCHW with C=1; internally we run NHWC in bf16.
    B = x.shape[0]
    x = x[:, :, :, None].astype(jnp.bfloat16)                              # (B,192,32,1)

    # ---- large branch: Conv(8x8,s4,p2)+BN+LReLU -> MaxPool(4,s4,p2) -> Conv(2x2,s1,p2)
    large = conv2d(x, prep["cnn_large"], 8, 8, 4, 2, slope=LEAKY_SLOPE)    # (B,48,8,32)
    large = maxpool_4x4_s4_p2(large)                                       # (B,13,3,32)
    large = conv2d(large, prep["cnn1"], 2, 2, 1, 2)                        # (B,16,6,32)

    # ---- small branch: Conv(2x2,s2,p1)+BN+LReLU -> MaxPool(16,s8) -> Conv(2x2,s2,p1)
    small = conv2d(x, prep["cnn_small"], 2, 2, 2, 1, slope=LEAKY_SLOPE)    # (B,97,17,32)
    small = maxpool_16x16_s8(small)                                        # (B,11,1,32)
    small = conv2d(small, prep["cnn2"], 2, 2, 2, 1)                        # (B,6,1,32)

    assert large.shape[1:] == LARGE_FLAT_HWC, large.shape
    assert small.shape[1:] == SMALL_FLAT_HWC, small.shape

    # ---- fused tail (NHWC flatten; shrink weights were row-permuted at prep time):
    #      shrink(large)+shrink2(small) -> fc1+BN1d+LReLU -> fc2+LReLU -> fc3
    return fused_tail(large.reshape(B, -1), small.reshape(B, -1), prep["tail"])   # (B,)


if __name__ == "__main__":
    key = jax.random.PRNGKey(0)
    pkey, xkey = jax.random.split(key)
    params = init_params(pkey)
    prep = prepare_params(params)            # weight prep happens exactly once

    # smallest input consistent with Linear(3072,.) / Linear(192,.): (B, 192, 32)
    x = jax.random.normal(xkey, (2, 192, 32), jnp.float32)

    fwd = jax.jit(forward)
    out = jax.block_until_ready(fwd(prep, x))
    assert out.shape == (2,), out.shape
    assert bool(jnp.all(jnp.isfinite(out)))
    print("KERNEL_OK")
</pallas_src>

<mosaic_0001>
module attributes {stable_mosaic.version = 11 : i64} {
  func.func @_conv_matmul_kernel(%arg0: i32, %arg1: memref<192x256xbf16, #tpu.memory_space<vmem>>, %arg2: memref<256x128xbf16, #tpu.memory_space<vmem>>, %arg3: memref<1x128xf32, #tpu.memory_space<vmem>>, %arg4: memref<1x128xf32, #tpu.memory_space<vmem>>, %arg5: memref<192x128xbf16, #tpu.memory_space<vmem>>) attributes {dimension_semantics = [#tpu.dimension_semantics<parallel>], iteration_bounds = array<i64: 1>, scalar_prefetch = 0 : i64, scratch_operands = 0 : i64, tpu.core_type = #tpu.core_type<tc>, window_params = [{transform_indices = @transform_0, window_bounds = array<i64: 192, 256>}, {pipeline_mode = #tpu.pipeline_mode<synchronous>, transform_indices = @transform_1, window_bounds = array<i64: 256, 128>}, {pipeline_mode = #tpu.pipeline_mode<synchronous>, transform_indices = @transform_2, window_bounds = array<i64: 1, 128>}, {pipeline_mode = #tpu.pipeline_mode<synchronous>, transform_indices = @transform_3, window_bounds = array<i64: 1, 128>}, {transform_indices = @transform_4, window_bounds = array<i64: 192, 128>}]} {
    %c0 = arith.constant 0 : index
    %c0_0 = arith.constant 0 : index
    %0 = vector.load %arg1[%c0, %c0_0] : memref<192x256xbf16, #tpu.memory_space<vmem>>, vector<192x256xbf16>
    %c0_1 = arith.constant 0 : index
    %c0_2 = arith.constant 0 : index
    %1 = vector.load %arg2[%c0_1, %c0_2] : memref<256x128xbf16, #tpu.memory_space<vmem>>, vector<256x128xbf16>
    %cst = arith.constant dense<0.000000e+00> : vector<192x128xf32>
    %2 = tpu.matmul %0, %1, %cst {dimension_numbers = #tpu.dot_dimension_numbers<[1], [0], [0], [1], [0, 0, 1, 1], [], []>} : vector<192x256xbf16>, vector<256x128xbf16>, vector<192x128xf32> -> vector<192x128xf32>
    %c0_3 = arith.constant 0 : index
    %c0_4 = arith.constant 0 : index
    %3 = vector.load %arg3[%c0_3, %c0_4] : memref<1x128xf32, #tpu.memory_space<vmem>>, vector<1x128xf32>
    %4 = vector.broadcast %3 : vector<1x128xf32> to vector<192x128xf32>
    %5 = arith.mulf %2, %4 : vector<192x128xf32>
    %c0_5 = arith.constant 0 : index
    %c0_6 = arith.constant 0 : index
    %6 = vector.load %arg4[%c0_5, %c0_6] : memref<1x128xf32, #tpu.memory_space<vmem>>, vector<1x128xf32>
    %7 = vector.broadcast %6 : vector<1x128xf32> to vector<192x128xf32>
    %8 = arith.addf %5, %7 : vector<192x128xf32>
    %cst_7 = arith.constant 0.00999999977 : f32
    %9 = vector.broadcast %cst_7 : f32 to vector<192x128xf32>
    %10 = arith.mulf %8, %9 : vector<192x128xf32>
    %11 = arith.maximumf %8, %10 : vector<192x128xf32>
    %12 = arith.truncf %11 : vector<192x128xf32> to vector<192x128xbf16>
    %c0_8 = arith.constant 0 : index
    %c0_9 = arith.constant 0 : index
    %13 = vector.load %arg5[%c0_8, %c0_9] : memref<192x128xbf16, #tpu.memory_space<vmem>>, vector<192x128xbf16>
    tpu.vector_store %arg5[%c0_8, %c0_9], %12 {strides = array<i32>} : memref<192x128xbf16, #tpu.memory_space<vmem>>, vector<192x128xbf16>,
    return
  }
  func.func @transform_0(%arg0: i32) -> (i32, i32) {
    %c0_i32 = arith.constant 0 : i32
    %c0_i32_0 = arith.constant 0 : i32
    return %arg0, %c0_i32 : i32, i32
  }
  func.func @transform_1(%arg0: i32) -> (i32, i32) {
    %c0_i32 = arith.constant 0 : i32
    %c0_i32_0 = arith.constant 0 : i32
    %c0_i32_1 = arith.constant 0 : i32
    return %c0_i32, %c0_i32_0 : i32, i32
  }
  func.func @transform_2(%arg0: i32) -> (i32, i32) {
    %c0_i32 = arith.constant 0 : i32
    %c0_i32_0 = arith.constant 0 : i32
    %c0_i32_1 = arith.constant 0 : i32
    return %c0_i32, %c0_i32_0 : i32, i32
  }
  func.func @transform_3(%arg0: i32) -> (i32, i32) {
    %c0_i32 = arith.constant 0 : i32
    %c0_i32_0 = arith.constant 0 : i32
    %c0_i32_1 = arith.constant 0 : i32
    return %c0_i32, %c0_i32_0 : i32, i32
  }
  func.func @transform_4(%arg0: i32) -> (i32, i32) {
    %c0_i32 = arith.constant 0 : i32
    %c0_i32_0 = arith.constant 0 : i32
    return %arg0, %c0_i32 : i32, i32
  }
}

module attributes {stable_mosaic.version = 11 : i64} {
  func.func @_colmax_kernel(%arg0: i32, %arg1: memref<16x2560xbf16, #tpu.memory_space<vmem>>, %arg2: memref<1x2560xbf16, #tpu.memory_space<vmem>>) attributes {dimension_semantics = [#tpu.dimension_semantics<parallel>], iteration_bounds = array<i64: 1>, scalar_prefetch = 0 : i64, scratch_operands = 0 : i64, tpu.core_type = #tpu.core_type<tc>, window_params = [{transform_indices = @transform_0, window_bounds = array<i64: 16, 2560>}, {transform_indices = @transform_1, window_bounds = array<i64: 1, 2560>}]} {
    %c0 = arith.constant 0 : index
    %c0_0 = arith.constant 0 : index
    %0 = vector.load %arg1[%c0, %c0_0] : memref<16x2560xbf16, #tpu.memory_space<vmem>>, vector<16x2560xbf16>
    %1 = arith.extf %0 : vector<16x2560xbf16> to vector<16x2560xf32>
    %cst = arith.constant dense<0xFF800000> : vector<2560xf32>
    %2 = vector.multi_reduction <maximumf>, %1, %cst [0] : vector<16x2560xf32> to vector<2560xf32>
    %3 = vector.shape_cast %2 : vector<2560xf32> to vector<1x2560xf32>
    %4 = arith.truncf %3 : vector<1x2560xf32> to vector<1x2560xbf16>
    %c0_1 = arith.constant 0 : index
    %c0_2 = arith.constant 0 : index
    %5 = vector.load %arg2[%c0_1, %c0_2] : memref<1x2560xbf16, #tpu.memory_space<vmem>>, vector<1x2560xbf16>
    tpu.vector_store %arg2[%c0_1, %c0_2], %4 {strides = array<i32>} : memref<1x2560xbf16, #tpu.memory_space<vmem>>, vector<1x2560xbf16>,
    return
  }
  func.func @transform_0(%arg0: i32) -> (i32, i32) {
    %c0_i32 = arith.constant 0 : i32
    %c0_i32_0 = arith.constant 0 : i32
    return %c0_i32, %arg0 : i32, i32
  }
  func.func @transform_1(%arg0: i32) -> (i32, i32) {
    %c0_i32 = arith.constant 0 : i32
    %c0_i32_0 = arith.constant 0 : i32
    return %c0_i32, %arg0 : i32, i32
  }
}

module attributes {stable_mosaic.version = 11 : i64} {
  func.func @_conv_matmul_kernel(%arg0: i32, %arg1: memref<48x512xbf16, #tpu.memory_space<vmem>>, %arg2: memref<512x128xbf16, #tpu.memory_space<vmem>>, %arg3: memref<1x128xf32, #tpu.memory_space<vmem>>, %arg4: memref<1x128xf32, #tpu.memory_space<vmem>>, %arg5: memref<48x128xbf16, #tpu.memory_space<vmem>>) attributes {dimension_semantics = [#tpu.dimension_semantics<parallel>], iteration_bounds = array<i64: 1>, scalar_prefetch = 0 : i64, scratch_operands = 0 : i64, tpu.core_type = #tpu.core_type<tc>, window_params = [{transform_indices = @transform_0, window_bounds = array<i64: 48, 512>}, {pipeline_mode = #tpu.pipeline_mode<synchronous>, transform_indices = @transform_1, window_bounds = array<i64: 512, 128>}, {pipeline_mode = #tpu.pipeline_mode<synchronous>, transform_indices = @transform_2, window_bounds = array<i64: 1, 128>}, {pipeline_mode = #tpu.pipeline_mode<synchronous>, transform_indices = @transform_3, window_bounds = array<i64: 1, 128>}, {transform_indices = @transform_4, window_bounds = array<i64: 48, 128>}]} {
    %c0 = arith.constant 0 : index
    %c0_0 = arith.constant 0 : index
    %0 = vector.load %arg1[%c0, %c0_0] : memref<48x512xbf16, #tpu.memory_space<vmem>>, vector<48x512xbf16>
    %c0_1 = arith.constant 0 : index
    %c0_2 = arith.constant 0 : index
    %1 = vector.load %arg2[%c0_1, %c0_2] : memref<512x128xbf16, #tpu.memory_space<vmem>>, vector<512x128xbf16>
    %cst = arith.constant dense<0.000000e+00> : vector<48x128xf32>
    %2 = tpu.matmul %0, %1, %cst {dimension_numbers = #tpu.dot_dimension_numbers<[1], [0], [0], [1], [0, 0, 1, 1], [], []>} : vector<48x512xbf16>, vector<512x128xbf16>, vector<48x128xf32> -> vector<48x128xf32>
    %c0_3 = arith.constant 0 : index
    %c0_4 = arith.constant 0 : index
    %3 = vector.load %arg3[%c0_3, %c0_4] : memref<1x128xf32, #tpu.memory_space<vmem>>, vector<1x128xf32>
    %4 = vector.broadcast %3 : vector<1x128xf32> to vector<48x128xf32>
    %5 = arith.mulf %2, %4 : vector<48x128xf32>
    %c0_5 = arith.constant 0 : index
    %c0_6 = arith.constant 0 : index
    %6 = vector.load %arg4[%c0_5, %c0_6] : memref<1x128xf32, #tpu.memory_space<vmem>>, vector<1x128xf32>
    %7 = vector.broadcast %6 : vector<1x128xf32> to vector<48x128xf32>
    %8 = arith.addf %5, %7 : vector<48x128xf32>
    %9 = arith.truncf %8 : vector<48x128xf32> to vector<48x128xbf16>
    %c0_7 = arith.constant 0 : index
    %c0_8 = arith.constant 0 : index
    %10 = vector.load %arg5[%c0_7, %c0_8] : memref<48x128xbf16, #tpu.memory_space<vmem>>, vector<48x128xbf16>
    tpu.vector_store %arg5[%c0_7, %c0_8], %9 {strides = array<i32>} : memref<48x128xbf16, #tpu.memory_space<vmem>>, vector<48x128xbf16>,
    return
  }
  func.func @transform_0(%arg0: i32) -> (i32, i32) {
    %c0_i32 = arith.constant 0 : i32
    %c0_i32_0 = arith.constant 0 : i32
    return %arg0, %c0_i32 : i32, i32
  }
  func.func @transform_1(%arg0: i32) -> (i32, i32) {
    %c0_i32 = arith.constant 0 : i32
    %c0_i32_0 = arith.constant 0 : i32
    %c0_i32_1 = arith.constant 0 : i32
    return %c0_i32, %c0_i32_0 : i32, i32
  }
  func.func @transform_2(%arg0: i32) -> (i32, i32) {
    %c0_i32 = arith.constant 0 : i32
    %c0_i32_0 = arith.constant 0 : i32
    %c0_i32_1 = arith.constant 0 : i32
    return %c0_i32, %c0_i32_0 : i32, i32
  }
  func.func @transform_3(%arg0: i32) -> (i32, i32) {
    %c0_i32 = arith.constant 0 : i32
    %c0_i32_0 = arith.constant 0 : i32
    %c0_i32_1 = arith.constant 0 : i32
    return %c0_i32, %c0_i32_0 : i32, i32
  }
  func.func @transform_4(%arg0: i32) -> (i32, i32) {
    %c0_i32 = arith.constant 0 : i32
    %c0_i32_0 = arith.constant 0 : i32
    return %arg0, %c0_i32 : i32, i32
  }
}

module attributes {stable_mosaic.version = 11 : i64} {
  func.func @_conv_matmul_kernel(%arg0: i32, %arg1: memref<416x32xbf16, #tpu.memory_space<vmem>>, %arg2: memref<32x128xbf16, #tpu.memory_space<vmem>>, %arg3: memref<1x128xf32, #tpu.memory_space<vmem>>, %arg4: memref<1x128xf32, #tpu.memory_space<vmem>>, %arg5: memref<416x128xbf16, #tpu.memory_space<vmem>>) attributes {dimension_semantics = [#tpu.dimension_semantics<parallel>], iteration_bounds = array<i64: 2>, scalar_prefetch = 0 : i64, scratch_operands = 0 : i64, tpu.core_type = #tpu.core_type<tc>, window_params = [{transform_indices = @transform_0, window_bounds = array<i64: 416, 32>}, {pipeline_mode = #tpu.pipeline_mode<synchronous>, transform_indices = @transform_1, window_bounds = array<i64: 32, 128>}, {pipeline_mode = #tpu.pipeline_mode<synchronous>, transform_indices = @transform_2, window_bounds = array<i64: 1, 128>}, {pipeline_mode = #tpu.pipeline_mode<synchronous>, transform_indices = @transform_3, window_bounds = array<i64: 1, 128>}, {transform_indices = @transform_4, window_bounds = array<i64: 416, 128>}]} {
    %c0 = arith.constant 0 : index
    %c0_0 = arith.constant 0 : index
    %0 = vector.load %arg1[%c0, %c0_0] : memref<416x32xbf16, #tpu.memory_space<vmem>>, vector<416x32xbf16>
    %c0_1 = arith.constant 0 : index
    %c0_2 = arith.constant 0 : index
    %1 = vector.load %arg2[%c0_1, %c0_2] : memref<32x128xbf16, #tpu.memory_space<vmem>>, vector<32x128xbf16>
    %cst = arith.constant dense<0.000000e+00> : vector<416x128xf32>
    %2 = tpu.matmul %0, %1, %cst {dimension_numbers = #tpu.dot_dimension_numbers<[1], [0], [0], [1], [0, 0, 1, 1], [], []>} : vector<416x32xbf16>, vector<32x128xbf16>, vector<416x128xf32> -> vector<416x128xf32>
    %c0_3 = arith.constant 0 : index
    %c0_4 = arith.constant 0 : index
    %3 = vector.load %arg3[%c0_3, %c0_4] : memref<1x128xf32, #tpu.memory_space<vmem>>, vector<1x128xf32>
    %4 = vector.broadcast %3 : vector<1x128xf32> to vector<416x128xf32>
    %5 = arith.mulf %2, %4 : vector<416x128xf32>
    %c0_5 = arith.constant 0 : index
    %c0_6 = arith.constant 0 : index
    %6 = vector.load %arg4[%c0_5, %c0_6] : memref<1x128xf32, #tpu.memory_space<vmem>>, vector<1x128xf32>
    %7 = vector.broadcast %6 : vector<1x128xf32> to vector<416x128xf32>
    %8 = arith.addf %5, %7 : vector<416x128xf32>
    %cst_7 = arith.constant 0.00999999977 : f32
    %9 = vector.broadcast %cst_7 : f32 to vector<416x128xf32>
    %10 = arith.mulf %8, %9 : vector<416x128xf32>
    %11 = arith.maximumf %8, %10 : vector<416x128xf32>
    %12 = arith.truncf %11 : vector<416x128xf32> to vector<416x128xbf16>
    %c0_8 = arith.constant 0 : index
    %c0_9 = arith.constant 0 : index
    %13 = vector.load %arg5[%c0_8, %c0_9] : memref<416x128xbf16, #tpu.memory_space<vmem>>, vector<416x128xbf16>
    tpu.vector_store %arg5[%c0_8, %c0_9], %12 {strides = array<i32>} : memref<416x128xbf16, #tpu.memory_space<vmem>>, vector<416x128xbf16>,
    return
  }
  func.func @transform_0(%arg0: i32) -> (i32, i32) {
    %c0_i32 = arith.constant 0 : i32
    %c0_i32_0 = arith.constant 0 : i32
    return %arg0, %c0_i32 : i32, i32
  }
  func.func @transform_1(%arg0: i32) -> (i32, i32) {
    %c0_i32 = arith.constant 0 : i32
    %c0_i32_0 = arith.constant 0 : i32
    %c0_i32_1 = arith.constant 0 : i32
    return %c0_i32, %c0_i32_0 : i32, i32
  }
  func.func @transform_2(%arg0: i32) -> (i32, i32) {
    %c0_i32 = arith.constant 0 : i32
    %c0_i32_0 = arith.constant 0 : i32
    %c0_i32_1 = arith.constant 0 : i32
    return %c0_i32, %c0_i32_0 : i32, i32
  }
  func.func @transform_3(%arg0: i32) -> (i32, i32) {
    %c0_i32 = arith.constant 0 : i32
    %c0_i32_0 = arith.constant 0 : i32
    %c0_i32_1 = arith.constant 0 : i32
    return %c0_i32, %c0_i32_0 : i32, i32
  }
  func.func @transform_4(%arg0: i32) -> (i32, i32) {
    %c0_i32 = arith.constant 0 : i32
    %c0_i32_0 = arith.constant 0 : i32
    return %arg0, %c0_i32 : i32, i32
  }
}

module attributes {stable_mosaic.version = 11 : i64} {
  func.func @_conv_matmul_kernel(%arg0: i32, %arg1: memref<8x512xbf16, #tpu.memory_space<vmem>>, %arg2: memref<512x128xbf16, #tpu.memory_space<vmem>>, %arg3: memref<1x128xf32, #tpu.memory_space<vmem>>, %arg4: memref<1x128xf32, #tpu.memory_space<vmem>>, %arg5: memref<8x128xbf16, #tpu.memory_space<vmem>>) attributes {dimension_semantics = [#tpu.dimension_semantics<parallel>], iteration_bounds = array<i64: 1>, scalar_prefetch = 0 : i64, scratch_operands = 0 : i64, tpu.core_type = #tpu.core_type<tc>, window_params = [{transform_indices = @transform_0, window_bounds = array<i64: 8, 512>}, {pipeline_mode = #tpu.pipeline_mode<synchronous>, transform_indices = @transform_1, window_bounds = array<i64: 512, 128>}, {pipeline_mode = #tpu.pipeline_mode<synchronous>, transform_indices = @transform_2, window_bounds = array<i64: 1, 128>}, {pipeline_mode = #tpu.pipeline_mode<synchronous>, transform_indices = @transform_3, window_bounds = array<i64: 1, 128>}, {transform_indices = @transform_4, window_bounds = array<i64: 8, 128>}]} {
    %c0 = arith.constant 0 : index
    %c0_0 = arith.constant 0 : index
    %0 = vector.load %arg1[%c0, %c0_0] : memref<8x512xbf16, #tpu.memory_space<vmem>>, vector<8x512xbf16>
    %c0_1 = arith.constant 0 : index
    %c0_2 = arith.constant 0 : index
    %1 = vector.load %arg2[%c0_1, %c0_2] : memref<512x128xbf16, #tpu.memory_space<vmem>>, vector<512x128xbf16>
    %cst = arith.constant dense<0.000000e+00> : vector<8x128xf32>
    %2 = tpu.matmul %0, %1, %cst {dimension_numbers = #tpu.dot_dimension_numbers<[1], [0], [0], [1], [0, 0, 1, 1], [], []>} : vector<8x512xbf16>, vector<512x128xbf16>, vector<8x128xf32> -> vector<8x128xf32>
    %c0_3 = arith.constant 0 : index
    %c0_4 = arith.constant 0 : index
    %3 = vector.load %arg3[%c0_3, %c0_4] : memref<1x128xf32, #tpu.memory_space<vmem>>, vector<1x128xf32>
    %4 = vector.broadcast %3 : vector<1x128xf32> to vector<8x128xf32>
    %5 = arith.mulf %2, %4 : vector<8x128xf32>
    %c0_5 = arith.constant 0 : index
    %c0_6 = arith.constant 0 : index
    %6 = vector.load %arg4[%c0_5, %c0_6] : memref<1x128xf32, #tpu.memory_space<vmem>>, vector<1x128xf32>
    %7 = vector.broadcast %6 : vector<1x128xf32> to vector<8x128xf32>
    %8 = arith.addf %5, %7 : vector<8x128xf32>
    %9 = arith.truncf %8 : vector<8x128xf32> to vector<8x128xbf16>
    %c0_7 = arith.constant 0 : index
    %c0_8 = arith.constant 0 : index
    %10 = vector.load %arg5[%c0_7, %c0_8] : memref<8x128xbf16, #tpu.memory_space<vmem>>, vector<8x128xbf16>
    tpu.vector_store %arg5[%c0_7, %c0_8], %9 {strides = array<i32>} : memref<8x128xbf16, #tpu.memory_space<vmem>>, vector<8x128xbf16>,
    return
  }
  func.func @transform_0(%arg0: i32) -> (i32, i32) {
    %c0_i32 = arith.constant 0 : i32
    %c0_i32_0 = arith.constant 0 : i32
    return %arg0, %c0_i32 : i32, i32
  }
  func.func @transform_1(%arg0: i32) -> (i32, i32) {
    %c0_i32 = arith.constant 0 : i32
    %c0_i32_0 = arith.constant 0 : i32
    %c0_i32_1 = arith.constant 0 : i32
    return %c0_i32, %c0_i32_0 : i32, i32
  }
  func.func @transform_2(%arg0: i32) -> (i32, i32) {
    %c0_i32 = arith.constant 0 : i32
    %c0_i32_0 = arith.constant 0 : i32
    %c0_i32_1 = arith.constant 0 : i32
    return %c0_i32, %c0_i32_0 : i32, i32
  }
  func.func @transform_3(%arg0: i32) -> (i32, i32) {
    %c0_i32 = arith.constant 0 : i32
    %c0_i32_0 = arith.constant 0 : i32
    %c0_i32_1 = arith.constant 0 : i32
    return %c0_i32, %c0_i32_0 : i32, i32
  }
  func.func @transform_4(%arg0: i32) -> (i32, i32) {
    %c0_i32 = arith.constant 0 : i32
    %c0_i32_0 = arith.constant 0 : i32
    return %arg0, %c0_i32 : i32, i32
  }
}

module attributes {stable_mosaic.version = 11 : i64} {
  func.func @_tail_kernel(%arg0: i32, %arg1: memref<8x3072xbf16, #tpu.memory_space<vmem>>, %arg2: memref<8x192xbf16, #tpu.memory_space<vmem>>, %arg3: memref<3072x128xbf16, #tpu.memory_space<vmem>>, %arg4: memref<1x128xf32, #tpu.memory_space<vmem>>, %arg5: memref<192x128xbf16, #tpu.memory_space<vmem>>, %arg6: memref<1x128xf32, #tpu.memory_space<vmem>>, %arg7: memref<128x32xbf16, #tpu.memory_space<vmem>>, %arg8: memref<1x32xf32, #tpu.memory_space<vmem>>, %arg9: memref<1x32xf32, #tpu.memory_space<vmem>>, %arg10: memref<32x16xbf16, #tpu.memory_space<vmem>>, %arg11: memref<1x16xf32, #tpu.memory_space<vmem>>, %arg12: memref<1x16xf32, #tpu.memory_space<vmem>>, %arg13: memref<1x1xf32, #tpu.memory_space<vmem>>, %arg14: memref<8x1xf32, #tpu.memory_space<vmem>>) attributes {dimension_semantics = [#tpu.dimension_semantics<arbitrary>], iteration_bounds = array<i64: 1>, scalar_prefetch = 0 : i64, scratch_operands = 0 : i64, tpu.core_type = #tpu.core_type<tc>, window_params = [{pipeline_mode = #tpu.pipeline_mode<synchronous>, transform_indices = @transform_0, window_bounds = array<i64: 8, 3072>}, {pipeline_mode = #tpu.pipeline_mode<synchronous>, transform_indices = @transform_1, window_bounds = array<i64: 8, 192>}, {pipeline_mode = #tpu.pipeline_mode<synchronous>, transform_indices = @transform_2, window_bounds = array<i64: 3072, 128>}, {pipeline_mode = #tpu.pipeline_mode<synchronous>, transform_indices = @transform_3, window_bounds = array<i64: 1, 128>}, {pipeline_mode = #tpu.pipeline_mode<synchronous>, transform_indices = @transform_4, window_bounds = array<i64: 192, 128>}, {pipeline_mode = #tpu.pipeline_mode<synchronous>, transform_indices = @transform_5, window_bounds = array<i64: 1, 128>}, {pipeline_mode = #tpu.pipeline_mode<synchronous>, transform_indices = @transform_6, window_bounds = array<i64: 128, 32>}, {pipeline_mode = #tpu.pipeline_mode<synchronous>, transform_indices = @transform_7, window_bounds = array<i64: 1, 32>}, {pipeline_mode = #tpu.pipeline_mode<synchronous>, transform_indices = @transform_8, window_bounds = array<i64: 1, 32>}, {pipeline_mode = #tpu.pipeline_mode<synchronous>, transform_indices = @transform_9, window_bounds = array<i64: 32, 16>}, {pipeline_mode = #tpu.pipeline_mode<synchronous>, transform_indices = @transform_10, window_bounds = array<i64: 1, 16>}, {pipeline_mode = #tpu.pipeline_mode<synchronous>, transform_indices = @transform_11, window_bounds = array<i64: 1, 16>}, {pipeline_mode = #tpu.pipeline_mode<synchronous>, transform_indices = @transform_12, window_bounds = array<i64: 1, 1>}, {pipeline_mode = #tpu.pipeline_mode<synchronous>, transform_indices = @transform_13, window_bounds = array<i64: 8, 1>}]} {
    %c0 = arith.constant 0 : index
    %c0_0 = arith.constant 0 : index
    %0 = vector.load %arg1[%c0, %c0_0] : memref<8x3072xbf16, #tpu.memory_space<vmem>>, vector<8x3072xbf16>
    %c0_1 = arith.constant 0 : index
    %c0_2 = arith.constant 0 : index
    %1 = vector.load %arg3[%c0_1, %c0_2] : memref<3072x128xbf16, #tpu.memory_space<vmem>>, vector<3072x128xbf16>
    %cst = arith.constant dense<0.000000e+00> : vector<8x128xf32>
    %2 = tpu.matmul %0, %1, %cst {dimension_numbers = #tpu.dot_dimension_numbers<[1], [0], [0], [1], [0, 0, 1, 1], [], []>} : vector<8x3072xbf16>, vector<3072x128xbf16>, vector<8x128xf32> -> vector<8x128xf32>
    %c0_3 = arith.constant 0 : index
    %c0_4 = arith.constant 0 : index
    %3 = vector.load %arg4[%c0_3, %c0_4] : memref<1x128xf32, #tpu.memory_space<vmem>>, vector<1x128xf32>
    %4 = vector.broadcast %3 : vector<1x128xf32> to vector<8x128xf32>
    %5 = arith.addf %2, %4 : vector<8x128xf32>
    %c0_5 = arith.constant 0 : index
    %c0_6 = arith.constant 0 : index
    %6 = vector.load %arg2[%c0_5, %c0_6] : memref<8x192xbf16, #tpu.memory_space<vmem>>, vector<8x192xbf16>
    %c0_7 = arith.constant 0 : index
    %c0_8 = arith.constant 0 : index
    %7 = vector.load %arg5[%c0_7, %c0_8] : memref<192x128xbf16, #tpu.memory_space<vmem>>, vector<192x128xbf16>
    %cst_9 = arith.constant dense<0.000000e+00> : vector<8x128xf32>
    %8 = tpu.matmul %6, %7, %cst_9 {dimension_numbers = #tpu.dot_dimension_numbers<[1], [0], [0], [1], [0, 0, 1, 1], [], []>} : vector<8x192xbf16>, vector<192x128xbf16>, vector<8x128xf32> -> vector<8x128xf32>
    %9 = arith.addf %5, %8 : vector<8x128xf32>
    %c0_10 = arith.constant 0 : index
    %c0_11 = arith.constant 0 : index
    %10 = vector.load %arg6[%c0_10, %c0_11] : memref<1x128xf32, #tpu.memory_space<vmem>>, vector<1x128xf32>
    %11 = vector.broadcast %10 : vector<1x128xf32> to vector<8x128xf32>
    %12 = arith.addf %9, %11 : vector<8x128xf32>
    %13 = arith.truncf %12 : vector<8x128xf32> to vector<8x128xbf16>
    %c0_12 = arith.constant 0 : index
    %c0_13 = arith.constant 0 : index
    %14 = vector.load %arg7[%c0_12, %c0_13] : memref<128x32xbf16, #tpu.memory_space<vmem>>, vector<128x32xbf16>
    %cst_14 = arith.constant dense<0.000000e+00> : vector<8x32xf32>
    %15 = tpu.matmul %13, %14, %cst_14 {dimension_numbers = #tpu.dot_dimension_numbers<[1], [0], [0], [1], [0, 0, 1, 1], [], []>} : vector<8x128xbf16>, vector<128x32xbf16>, vector<8x32xf32> -> vector<8x32xf32>
    %c0_15 = arith.constant 0 : index
    %c0_16 = arith.constant 0 : index
    %16 = vector.load %arg8[%c0_15, %c0_16] : memref<1x32xf32, #tpu.memory_space<vmem>>, vector<1x32xf32>
    %17 = vector.broadcast %16 : vector<1x32xf32> to vector<8x32xf32>
    %18 = arith.mulf %15, %17 : vector<8x32xf32>
    %c0_17 = arith.constant 0 : index
    %c0_18 = arith.constant 0 : index
    %19 = vector.load %arg9[%c0_17, %c0_18] : memref<1x32xf32, #tpu.memory_space<vmem>>, vector<1x32xf32>
    %20 = vector.broadcast %19 : vector<1x32xf32> to vector<8x32xf32>
    %21 = arith.addf %18, %20 : vector<8x32xf32>
    %cst_19 = arith.constant 0.00999999977 : f32
    %22 = vector.broadcast %cst_19 : f32 to vector<8x32xf32>
    %23 = arith.mulf %21, %22 : vector<8x32xf32>
    %24 = arith.maximumf %21, %23 : vector<8x32xf32>
    %25 = arith.truncf %24 : vector<8x32xf32> to vector<8x32xbf16>
    %c0_20 = arith.constant 0 : index
    %c0_21 = arith.constant 0 : index
    %26 = vector.load %arg10[%c0_20, %c0_21] : memref<32x16xbf16, #tpu.memory_space<vmem>>, vector<32x16xbf16>
    %cst_22 = arith.constant dense<0.000000e+00> : vector<8x16xf32>
    %27 = tpu.matmul %25, %26, %cst_22 {dimension_numbers = #tpu.dot_dimension_numbers<[1], [0], [0], [1], [0, 0, 1, 1], [], []>} : vector<8x32xbf16>, vector<32x16xbf16>, vector<8x16xf32> -> vector<8x16xf32>
    %c0_23 = arith.constant 0 : index
    %c0_24 = arith.constant 0 : index
    %28 = vector.load %arg11[%c0_23, %c0_24] : memref<1x16xf32, #tpu.memory_space<vmem>>, vector<1x16xf32>
    %29 = vector.broadcast %28 : vector<1x16xf32> to vector<8x16xf32>
    %30 = arith.addf %27, %29 : vector<8x16xf32>
    %cst_25 = arith.constant 0.00999999977 : f32
    %31 = vector.broadcast %cst_25 : f32 to vector<8x16xf32>
    %32 = arith.mulf %30, %31 : vector<8x16xf32>
    %33 = arith.maximumf %30, %32 : vector<8x16xf32>
    %c0_26 = arith.constant 0 : index
    %c0_27 = arith.constant 0 : index
    %34 = vector.load %arg12[%c0_26, %c0_27] : memref<1x16xf32, #tpu.memory_space<vmem>>, vector<1x16xf32>
    %35 = vector.broadcast %34 : vector<1x16xf32> to vector<8x16xf32>
    %36 = arith.mulf %33, %35 : vector<8x16xf32>
    %cst_28 = arith.constant dense<0.000000e+00> : vector<8xf32>
    %37 = vector.multi_reduction <add>, %36, %cst_28 [1] : vector<8x16xf32> to vector<8xf32>
    %38 = vector.shape_cast %37 : vector<8xf32> to vector<8x1xf32>
    %c0_29 = arith.constant 0 : index
    %c0_30 = arith.constant 0 : index
    %39 = vector.load %arg13[%c0_29, %c0_30] : memref<1x1xf32, #tpu.memory_space<vmem>>, vector<1x1xf32>
    %40 = vector.broadcast %39 : vector<1x1xf32> to vector<8x1xf32>
    %41 = arith.addf %38, %40 : vector<8x1xf32>
    %c0_31 = arith.constant 0 : index
    %c0_32 = arith.constant 0 : index
    %42 = vector.load %arg14[%c0_31, %c0_32] : memref<8x1xf32, #tpu.memory_space<vmem>>, vector<8x1xf32>
    tpu.vector_store %arg14[%c0_31, %c0_32], %41 {strides = array<i32>} : memref<8x1xf32, #tpu.memory_space<vmem>>, vector<8x1xf32>,
    return
  }
  func.func @transform_0(%arg0: i32) -> (i32, i32) {
    %c0_i32 = arith.constant 0 : i32
    %c0_i32_0 = arith.constant 0 : i32
    %c0_i32_1 = arith.constant 0 : i32
    return %c0_i32, %c0_i32_0 : i32, i32
  }
  func.func @transform_1(%arg0: i32) -> (i32, i32) {
    %c0_i32 = arith.constant 0 : i32
    %c0_i32_0 = arith.constant 0 : i32
    %c0_i32_1 = arith.constant 0 : i32
    return %c0_i32, %c0_i32_0 : i32, i32
  }
  func.func @transform_2(%arg0: i32) -> (i32, i32) {
    %c0_i32 = arith.constant 0 : i32
    %c0_i32_0 = arith.constant 0 : i32
    %c0_i32_1 = arith.constant 0 : i32
    return %c0_i32, %c0_i32_0 : i32, i32
  }
  func.func @transform_3(%arg0: i32) -> (i32, i32) {
    %c0_i32 = arith.constant 0 : i32
    %c0_i32_0 = arith.constant 0 : i32
    %c0_i32_1 = arith.constant 0 : i32
    return %c0_i32, %c0_i32_0 : i32, i32
  }
  func.func @transform_4(%arg0: i32) -> (i32, i32) {
    %c0_i32 = arith.constant 0 : i32
    %c0_i32_0 = arith.constant 0 : i32
    %c0_i32_1 = arith.constant 0 : i32
    return %c0_i32, %c0_i32_0 : i32, i32
  }
  func.func @transform_5(%arg0: i32) -> (i32, i32) {
    %c0_i32 = arith.constant 0 : i32
    %c0_i32_0 = arith.constant 0 : i32
    %c0_i32_1 = arith.constant 0 : i32
    return %c0_i32, %c0_i32_0 : i32, i32
  }
  func.func @transform_6(%arg0: i32) -> (i32, i32) {
    %c0_i32 = arith.constant 0 : i32
    %c0_i32_0 = arith.constant 0 : i32
    %c0_i32_1 = arith.constant 0 : i32
    return %c0_i32, %c0_i32_0 : i32, i32
  }
  func.func @transform_7(%arg0: i32) -> (i32, i32) {
    %c0_i32 = arith.constant 0 : i32
    %c0_i32_0 = arith.constant 0 : i32
    %c0_i32_1 = arith.constant 0 : i32
    return %c0_i32, %c0_i32_0 : i32, i32
  }
  func.func @transform_8(%arg0: i32) -> (i32, i32) {
    %c0_i32 = arith.constant 0 : i32
    %c0_i32_0 = arith.constant 0 : i32
    %c0_i32_1 = arith.constant 0 : i32
    return %c0_i32, %c0_i32_0 : i32, i32
  }
  func.func @transform_9(%arg0: i32) -> (i32, i32) {
    %c0_i32 = arith.constant 0 : i32
    %c0_i32_0 = arith.constant 0 : i32
    %c0_i32_1 = arith.constant 0 : i32
    return %c0_i32, %c0_i32_0 : i32, i32
  }
  func.func @transform_10(%arg0: i32) -> (i32, i32) {
    %c0_i32 = arith.constant 0 : i32
    %c0_i32_0 = arith.constant 0 : i32
    %c0_i32_1 = arith.constant 0 : i32
    return %c0_i32, %c0_i32_0 : i32, i32
  }
  func.func @transform_11(%arg0: i32) -> (i32, i32) {
    %c0_i32 = arith.constant 0 : i32
    %c0_i32_0 = arith.constant 0 : i32
    %c0_i32_1 = arith.constant 0 : i32
    return %c0_i32, %c0_i32_0 : i32, i32
  }
  func.func @transform_12(%arg0: i32) -> (i32, i32) {
    %c0_i32 = arith.constant 0 : i32
    %c0_i32_0 = arith.constant 0 : i32
    %c0_i32_1 = arith.constant 0 : i32
    return %c0_i32, %c0_i32_0 : i32, i32
  }
  func.func @transform_13(%arg0: i32) -> (i32, i32) {
    %c0_i32 = arith.constant 0 : i32
    %c0_i32_0 = arith.constant 0 : i32
    %c0_i32_1 = arith.constant 0 : i32
    return %c0_i32, %c0_i32_0 : i32, i32
  }
}

</mosaic_0001>

<bundles_post_ra>
// kernel: forward.6
= control target key start
LH: loop header
LB: loop body
LE: loop exit
PB: predicated region body
PF: predicated region fallthrough
CT: control target
= control target key end

     0   :  { %s1209_s1 = inlined_call_operand.vmem [shape: bf16[256,128], index: 1, kind: input, shape index: {}]   ;;  %s1210_s0 = inlined_call_operand.vmem [shape: bf16[192,256], index: 0, kind: input, shape index: {}]   ;;  %s1211_s2 = inlined_call_operand.vmem [shape: f32[1,128], index: 2, kind: input, shape index: {}]   ;;  %s1212_s3 = inlined_call_operand.vmem [shape: f32[1,128], index: 3, kind: input, shape index: {}]   ;;  %s1213_s4 = inlined_call_operand.vmem [shape: bf16[192,128], index: 4, kind: output, shape index: {}]  }
   0x1   :  { %v918_v0 = vld [vmem:[%s1209_s1 + $0x78] sm:$0xff]   ;;  %v920_v2 = vld [vmem:[%s1209_s1 + $0x70] sm:$0xff]   ;;  %v922_v4 = vld [vmem:[%s1209_s1 + $0x68] sm:$0xff]  }
   0x2   :  { %v919_v1 = vld [vmem:[%s1209_s1 + $0x38] sm:$0xff]   ;;  %814 = vmatprep.subr.bf16.mxu0 %v918_v0  ;;  %902 = vmatprep.subr.bf16.mxu1 %v918_v0  ;;  %v921_v3 = vld [vmem:[%s1209_s1 + $0x30] sm:$0xff]   ;;  %v923_v5 = vld [vmem:[%s1209_s1 + $0x28] sm:$0xff]  }
   0x3   :  { %815 = vmatpush3.bf16.msra.mxu0 %v919_v1  ;;  %910 = vmatpush3.bf16.msra.mxu1 %v919_v1  ;;  %v924_v6 = vld [vmem:[%s1209_s1 + $0x60] sm:$0xff]   ;;  %v926_v8 = vld [vmem:[%s1209_s1 + $0x58] sm:$0xff]   ;;  %v928_v10 = vld [vmem:[%s1209_s1 + $0x50] sm:$0xff]  }
   0x4   :  { %816 = vmatprep.subr.bf16.mxu0 %v920_v2  ;;  %903 = vmatprep.subr.bf16.mxu1 %v920_v2  ;;  %v925_v7 = vld [vmem:[%s1209_s1 + $0x20] sm:$0xff]   ;;  %v927_v9 = vld [vmem:[%s1209_s1 + $0x18] sm:$0xff]   ;;  %v929_v13 = vld [vmem:[%s1209_s1 + $0x10] sm:$0xff]  }
   0x5   :  { %v936_v11 = vld [vmem:[%s1210_s0 + $0x4] ss:$8 sps:$4 sm:$0xff]   ;;  %v934_v18 = vld [vmem:[%s1210_s0] ss:$8 sps:$4 sm:$0xff]   ;;  %v940_v20 = vld [vmem:[%s1210_s0 + $0x14] ss:$8 sps:$4 sm:$0xff]  }
   0x6   :  { %v939_v12 = vld [vmem:[%s1210_s0 + $0x64] ss:$8 sps:$4 sm:$0xff]   ;;  %322 = vmatprep.mubr.bf16.mxu0 %v936_v11  ;;  %v937_v19 = vld [vmem:[%s1210_s0 + $0x60] ss:$8 sps:$4 sm:$0xff]   ;;  %v942_v21 = vld [vmem:[%s1210_s0 + $0x74] ss:$8 sps:$4 sm:$0xff]  }
   0x7   :  { %817 = vmatpush3.bf16.msra.mxu0 %v921_v3  ;;  %911 = vmatpush3.bf16.msra.mxu1 %v921_v3  ;;  %v930_v14 = vld [vmem:[%s1209_s1 + $0x48] sm:$0xff]   ;;  %v932_v16 = vld [vmem:[%s1209_s1 + $0x40] sm:$0xff]   ;;  %v944_v22 = vld [vmem:[%s1210_s0 + $0x10] ss:$8 sps:$4 sm:$0xff]  }
   0x8   :  { %818 = vmatprep.subr.bf16.mxu0 %v922_v4  ;;  %904 = vmatprep.subr.bf16.mxu1 %v922_v4  ;;  %v931_v15 = vld [vmem:[%s1209_s1 + $0x8] sm:$0xff]   ;;  %v933_v17 = vld [vmem:[%s1209_s1] sm:$0xff]   ;;  %v945_v23 = vld [vmem:[%s1210_s0 + $0x70] ss:$8 sps:$4 sm:$0xff]  }
   0x9   :  { %370 = vmatprep.mubr.bf16.mxu1 %v939_v12  ;;  %v946_v24 = vld [vmem:[%s1210_s0 + $0x24] ss:$8 sps:$4 sm:$0xff]   ;;  %v950_v26 = vld [vmem:[%s1210_s0 + $0x20] ss:$8 sps:$4 sm:$0xff]   ;;  %v952_v28 = vld [vmem:[%s1210_s0 + $0x34] ss:$8 sps:$4 sm:$0xff]  }
   0xa   :  { %v948_v25 = vld [vmem:[%s1210_s0 + $0x84] ss:$8 sps:$4 sm:$0xff]   ;;  %v951_v27 = vld [vmem:[%s1210_s0 + $0x80] ss:$8 sps:$4 sm:$0xff]   ;;  %v954_v29 = vld [vmem:[%s1210_s0 + $0x94] ss:$8 sps:$4 sm:$0xff]  }
   0xb   :  { %819 = vmatpush3.bf16.msra.mxu0 %v923_v5  ;;  %912 = vmatpush3.bf16.msra.mxu1 %v923_v5  ;;  %v956_v30 = vld [vmem:[%s1210_s0 + $0x30] ss:$8 sps:$4 sm:$0xff]   ;;  %v958_v32 = vld [vmem:[%s1210_s0 + $0x44] ss:$8 sps:$4 sm:$0xff]   ;;  %v962_v34 = vld [vmem:[%s1210_s0 + $0x40] ss:$8 sps:$4 sm:$0xff]  }
   0xc   :  { %820 = vmatprep.subr.bf16.mxu0 %v924_v6  ;;  %905 = vmatprep.subr.bf16.mxu1 %v924_v6  ;;  %v957_v31 = vld [vmem:[%s1210_s0 + $0x90] ss:$8 sps:$4 sm:$0xff]   ;;  %v960_v33 = vld [vmem:[%s1210_s0 + $0xa4] ss:$8 sps:$4 sm:$0xff]   ;;  %v963_v35 = vld [vmem:[%s1210_s0 + $0xa0] ss:$8 sps:$4 sm:$0xff]  }
   0xd   :  { %v964_v36 = vld [vmem:[%s1210_s0 + $0x54] ss:$8 sps:$4 sm:$0xff]   ;;  %v968_v38 = vld [vmem:[%s1210_s0 + $0x50] ss:$8 sps:$4 sm:$0xff]   ;;  %v1118_v43 = vld [vmem:[%s1211_s2] ss:$0 sm:$0xff] }
   0xe   :  { %v966_v37 = vld [vmem:[%s1210_s0 + $0xb4] ss:$8 sps:$4 sm:$0xff]   ;;  %v969_v39 = vld [vmem:[%s1210_s0 + $0xb0] ss:$8 sps:$4 sm:$0xff]   ;;  %v1123_v47 = vld [vmem:[%s1212_s3] ss:$0 sm:$0xff] }
   0xf   :  { %821 = vmatpush3.bf16.msra.mxu0 %v925_v7  ;;  %913 = vmatpush3.bf16.msra.mxu1 %v925_v7 }
  0x10   :  { %822 = vmatprep.subr.bf16.mxu0 %v926_v8  ;;  %906 = vmatprep.subr.bf16.mxu1 %v926_v8 }
  0x13   :  { %823 = vmatpush3.bf16.msra.mxu0 %v927_v9  ;;  %914 = vmatpush3.bf16.msra.mxu1 %v927_v9 }
  0x14   :  { %824 = vmatprep.subr.bf16.mxu0 %v928_v10  ;;  %907 = vmatprep.subr.bf16.mxu1 %v928_v10 }
  0x17   :  { %825 = vmatpush3.bf16.msra.mxu0 %v929_v13  ;;  %915 = vmatpush3.bf16.msra.mxu1 %v929_v13 }
  0x18   :  { %826 = vmatprep.subr.bf16.mxu0 %v930_v14  ;;  %908 = vmatprep.subr.bf16.mxu1 %v930_v14 }
  0x1b   :  { %827 = vmatpush3.bf16.msra.mxu0 %v931_v15  ;;  %916 = vmatpush3.bf16.msra.mxu1 %v931_v15 }
  0x1c   :  { %828 = vmatprep.subr.bf16.mxu0 %v932_v16  ;;  %909 = vmatprep.subr.bf16.mxu1 %v932_v16 }
  0x1f   :  { %829 = vmatpush3.bf16.msra.mxu0 %v933_v17  ;;  %917 = vmatpush3.bf16.msra.mxu1 %v933_v17 }
  0x22   :  { %323 = vmatmul.mubr.bf16.vlgmr.msra.gmra.mxu0 %v934_v18  ;;  %371 = vmatmul.mubr.bf16.vlgmr.msra.gmra.mxu1 %v937_v19 }
  0x23   :  { %330 = vmatprep.mubr.bf16.mxu0 %v940_v20  ;;  %378 = vmatprep.mubr.bf16.mxu1 %v942_v21 }
  0x2a   :  { %331 = vmatmul.mubr.bf16.gmra.mxu0 %v944_v22  ;;  %379 = vmatmul.mubr.bf16.gmra.mxu1 %v945_v23 }
  0x2b   :  { %338 = vmatprep.mubr.bf16.mxu0 %v946_v24  ;;  %386 = vmatprep.mubr.bf16.mxu1 %v948_v25 }
  0x32   :  { %339 = vmatmul.mubr.bf16.gmra.mxu0 %v950_v26  ;;  %387 = vmatmul.mubr.bf16.gmra.mxu1 %v951_v27 }
  0x33   :  { %346 = vmatprep.mubr.bf16.mxu0 %v952_v28  ;;  %394 = vmatprep.mubr.bf16.mxu1 %v954_v29 }
  0x3a   :  { %347 = vmatmul.mubr.bf16.gmra.mxu0 %v956_v30  ;;  %395 = vmatmul.mubr.bf16.gmra.mxu1 %v957_v31 }
  0x3b   :  { %354 = vmatprep.mubr.bf16.mxu0 %v958_v32  ;;  %402 = vmatprep.mubr.bf16.mxu1 %v960_v33 }
  0x42   :  { %355 = vmatmul.mubr.bf16.gmra.mxu0 %v962_v34  ;;  %403 = vmatmul.mubr.bf16.gmra.mxu1 %v963_v35 }
  0x43   :  { %362 = vmatprep.mubr.bf16.mxu0 %v964_v36  ;;  %410 = vmatprep.mubr.bf16.mxu1 %v966_v37 }
  0x4a   :  { %363 = vmatmul.mubr.bf16.gmra.mxu0 %v968_v38  ;;  %411 = vmatmul.mubr.bf16.gmra.mxu1 %v969_v39 }
  0xe2   :  { %v830_v40 = vpop.f32.mrf.mxu0  ;;  %v866_v41 = vpop.f32.mrf.mxu1 }
  0xe4   :  { %v831_v42 = vpop.f32.mrf.mxu0  ;;  %v867_v44 = vpop.f32.mrf.mxu1 }
  0xe5   :  { %v832_v45 = vadd.f32 %v831_v42, %v830_v40  ;;  %v868_v46 = vadd.f32 %v867_v44, %v866_v41 }
  0xe6   :  { %v833_v48 = vpop.f32.mrf.mxu0  ;;  %v869_v49 = vpop.f32.mrf.mxu1 }
  0xe7   :  { %v426_v50 = vmul.f32 %v832_v45, %v1118_v43  ;;  %v438_v51 = vmul.f32 %v868_v46, %v1118_v43 }
  0xe8   :  { %v834_v52 = vpop.f32.mrf.mxu0  ;;  %v870_v53 = vpop.f32.mrf.mxu1 }
  0xe9   :  { %v457_v54 = vadd.f32 %v1123_v47, %v426_v50  ;;  %v469_v55 = vadd.f32 %v1123_v47, %v438_v51  ;;  %v835_v56 = vadd.f32 %v834_v52, %v833_v48  ;;  %v871_v57 = vadd.f32 %v870_v53, %v869_v49 }
  0xea   :  { %v836_v58 = vpop.f32.mrf.mxu0  ;;  %v872_v59 = vpop.f32.mrf.mxu1 }
  0xeb   :  { %v427_v60 = vmul.f32 %v835_v56, %v1118_v43  ;;  %v439_v61 = vmul.f32 %v871_v57, %v1118_v43  ;;  %v481_v62 = vmul.f32 0.01, %v457_v54  ;;  %v493_v63 = vmul.f32 0.01, %v469_v55 }
  0xec   :  { %v837_v0 = vpop.f32.mrf.mxu0  ;;  %v873_v1 = vpop.f32.mrf.mxu1 }
  0xed   :  { %v458_v2 = vadd.f32 %v1123_v47, %v427_v60  ;;  %v470_v3 = vadd.f32 %v1123_v47, %v439_v61  ;;  %v838_v4 = vadd.f32 %v837_v0, %v836_v58  ;;  %v874_v5 = vadd.f32 %v873_v1, %v872_v59 }
  0xee   :  { %v839_v6 = vpop.f32.mrf.mxu0  ;;  %v875_v7 = vpop.f32.mrf.mxu1  ;;  %v505_v10 = vmax.f32 %v457_v54, %v481_v62  ;;  %v517_v11 = vmax.f32 %v469_v55, %v493_v63 }
  0xef   :  { %v482_v8 = vmul.f32 0.01, %v458_v2  ;;  %v494_v9 = vmul.f32 0.01, %v470_v3  ;;  %v428_v12 = vmul.f32 %v838_v4, %v1118_v43  ;;  %v440_v13 = vmul.f32 %v874_v5, %v1118_v43 }
  0xf0   :  { %v840_v14 = vpop.f32.mrf.mxu0  ;;  %v876_v15 = vpop.f32.mrf.mxu1 }
  0xf1   :  { %v506_v16 = vmax.f32 %v458_v2, %v482_v8  ;;  %v518_v17 = vmax.f32 %v470_v3, %v494_v9  ;;  %v841_v18 = vadd.f32 %v840_v14, %v839_v6  ;;  %v877_v19 = vadd.f32 %v876_v15, %v875_v7 }
  0xf2   :  { %v459_v20 = vadd.f32 %v1123_v47, %v428_v12  ;;  %v471_v21 = vadd.f32 %v1123_v47, %v440_v13  ;;  %v842_v22 = vpop.f32.mrf.mxu0  ;;  %v878_v23 = vpop.f32.mrf.mxu1 }
  0xf3   :  { %v746_v24 = vpack.c.bf16 %v506_v16, %v505_v10  ;;  %v776_v25 = vpack.c.bf16 %v518_v17, %v517_v11  ;;  %v429_v26 = vmul.f32 %v841_v18, %v1118_v43  ;;  %v441_v27 = vmul.f32 %v877_v19, %v1118_v43 }
  0xf4   :  { %v483_v28 = vmul.f32 0.01, %v459_v20  ;;  %v495_v29 = vmul.f32 0.01, %v471_v21  ;;  %v843_v30 = vpop.f32.mrf.mxu0  ;;  %v879_v31 = vpop.f32.mrf.mxu1 }
  0xf5   :  { %747 = vst [vmem:[%s1213_s4] sm:$0xff] %v746_v24   ;;  %808 = vst [vmem:[%s1213_s4 + $0x30] sm:$0xff] %v776_v25   ;;  %v460_v32 = vadd.f32 %v1123_v47, %v429_v26  ;;  %v472_v33 = vadd.f32 %v1123_v47, %v441_v27  ;;  %v844_v34 = vadd.f32 %v843_v30, %v842_v22 }
  0xf6   :  { %v880_v35 = vadd.f32 %v879_v31, %v878_v23  ;;  %v845_v36 = vpop.f32.mrf.mxu0  ;;  %v881_v37 = vpop.f32.mrf.mxu1  ;;  %v507_v45 = vmax.f32 %v459_v20, %v483_v28  ;;  %v519_v46 = vmax.f32 %v471_v21, %v495_v29 }
  0xf7   :  { %v484_v38 = vmul.f32 0.01, %v460_v32  ;;  %v496_v39 = vmul.f32 0.01, %v472_v33  ;;  %v430_v40 = vmul.f32 %v844_v34, %v1118_v43 }
  0xf8   :  { %v442_v41 = vmul.f32 %v880_v35, %v1118_v43  ;;  %v846_v42 = vpop.f32.mrf.mxu0  ;;  %v882_v44 = vpop.f32.mrf.mxu1 }
  0xf9   :  { %v508_v48 = vmax.f32 %v460_v32, %v484_v38  ;;  %v520_v49 = vmax.f32 %v472_v33, %v496_v39  ;;  %v461_v50 = vadd.f32 %v1123_v47, %v430_v40  ;;  %v847_v52 = vadd.f32 %v846_v42, %v845_v36 }
  0xfa   :  { %v473_v51 = vadd.f32 %v1123_v47, %v442_v41  ;;  %v883_v53 = vadd.f32 %v882_v44, %v881_v37  ;;  %v848_v54 = vpop.f32.mrf.mxu0  ;;  %v884_v55 = vpop.f32.mrf.mxu1 }
  0xfb   :  { %v751_v56 = vpack.c.bf16 %v508_v48, %v507_v45  ;;  %v781_v57 = vpack.c.bf16 %v520_v49, %v519_v46  ;;  %v431_v58 = vmul.f32 %v847_v52, %v1118_v43  ;;  %v485_v0 = vmul.f32 0.01, %v461_v50 }
  0xfc   :  { %v443_v59 = vmul.f32 %v883_v53, %v1118_v43  ;;  %v849_v60 = vpop.f32.mrf.mxu0  ;;  %v885_v61 = vpop.f32.mrf.mxu1  ;;  %v497_v1 = vmul.f32 0.01, %v473_v51 }
  0xfd   :  { %803 = vst [vmem:[%s1213_s4 + $0x8] sm:$0xff] %v751_v56   ;;  %809 = vst [vmem:[%s1213_s4 + $0x38] sm:$0xff] %v781_v57   ;;  %v850_v62 = vadd.f32 %v849_v60, %v848_v54  ;;  %v886_v63 = vadd.f32 %v885_v61, %v884_v55  ;;  %v462_v2 = vadd.f32 %v1123_v47, %v431_v58 }
  0xfe   :  { %v474_v3 = vadd.f32 %v1123_v47, %v443_v59  ;;  %v851_v4 = vpop.f32.mrf.mxu0  ;;  %v887_v5 = vpop.f32.mrf.mxu1  ;;  %v509_v16 = vmax.f32 %v461_v50, %v485_v0  ;;  %v521_v17 = vmax.f32 %v473_v51, %v497_v1 }
  0xff   :  { %v432_v6 = vmul.f32 %v850_v62, %v1118_v43  ;;  %v444_v7 = vmul.f32 %v886_v63, %v1118_v43  ;;  %v486_v8 = vmul.f32 0.01, %v462_v2 }
 0x100   :  { %v498_v9 = vmul.f32 0.01, %v474_v3  ;;  %v852_v10 = vpop.f32.mrf.mxu0  ;;  %v888_v11 = vpop.f32.mrf.mxu1 }
 0x101   :  { %v463_v12 = vadd.f32 %v1123_v47, %v432_v6  ;;  %v475_v13 = vadd.f32 %v1123_v47, %v444_v7  ;;  %v853_v14 = vadd.f32 %v852_v10, %v851_v4  ;;  %v889_v15 = vadd.f32 %v888_v11, %v887_v5 }
 0x102   :  { %v510_v18 = vmax.f32 %v462_v2, %v486_v8  ;;  %v522_v19 = vmax.f32 %v474_v3, %v498_v9  ;;  %v854_v20 = vpop.f32.mrf.mxu0  ;;  %v890_v21 = vpop.f32.mrf.mxu1 }
 0x103   :  { %v433_v22 = vmul.f32 %v853_v14, %v1118_v43  ;;  %v445_v23 = vmul.f32 %v889_v15, %v1118_v43  ;;  %v487_v26 = vmul.f32 0.01, %v463_v12  ;;  %v499_v27 = vmul.f32 0.01, %v475_v13 }
 0x104   :  { %v756_v24 = vpack.c.bf16 %v510_v18, %v509_v16  ;;  %v786_v25 = vpack.c.bf16 %v522_v19, %v521_v17  ;;  %v855_v28 = vpop.f32.mrf.mxu0  ;;  %v891_v29 = vpop.f32.mrf.mxu1 }
 0x105   :  { %v464_v30 = vadd.f32 %v1123_v47, %v433_v22  ;;  %v476_v31 = vadd.f32 %v1123_v47, %v445_v23  ;;  %v856_v32 = vadd.f32 %v855_v28, %v854_v20  ;;  %v892_v33 = vadd.f32 %v891_v29, %v890_v21 }
 0x106   :  { %804 = vst [vmem:[%s1213_s4 + $0x10] sm:$0xff] %v756_v24   ;;  %810 = vst [vmem:[%s1213_s4 + $0x40] sm:$0xff] %v786_v25   ;;  %v857_v34 = vpop.f32.mrf.mxu0  ;;  %v893_v35 = vpop.f32.mrf.mxu1  ;;  %v511_v38 = vmax.f32 %v463_v12, %v487_v26  ;;  %v523_v39 = vmax.f32 %v475_v13, %v499_v27 }
 0x107   :  { %v488_v36 = vmul.f32 0.01, %v464_v30  ;;  %v500_v37 = vmul.f32 0.01, %v476_v31  ;;  %v434_v40 = vmul.f32 %v856_v32, %v1118_v43  ;;  %v446_v41 = vmul.f32 %v892_v33, %v1118_v43 }
 0x108   :  { %v858_v42 = vpop.f32.mrf.mxu0  ;;  %v894_v44 = vpop.f32.mrf.mxu1 }
 0x109   :  { %v512_v45 = vmax.f32 %v464_v30, %v488_v36  ;;  %v524_v46 = vmax.f32 %v476_v31, %v500_v37  ;;  %v859_v48 = vadd.f32 %v858_v42, %v857_v34  ;;  %v895_v49 = vadd.f32 %v894_v44, %v893_v35 }
 0x10a   :  { %v465_v50 = vadd.f32 %v1123_v47, %v434_v40  ;;  %v477_v51 = vadd.f32 %v1123_v47, %v446_v41  ;;  %v860_v52 = vpop.f32.mrf.mxu0  ;;  %v896_v53 = vpop.f32.mrf.mxu1 }
 0x10b   :  { %v761_v54 = vpack.c.bf16 %v512_v45, %v511_v38  ;;  %v791_v55 = vpack.c.bf16 %v524_v46, %v523_v39  ;;  %v435_v56 = vmul.f32 %v859_v48, %v1118_v43  ;;  %v447_v57 = vmul.f32 %v895_v49, %v1118_v43 }
 0x10c   :  { %v489_v58 = vmul.f32 0.01, %v465_v50  ;;  %v501_v59 = vmul.f32 0.01, %v477_v51  ;;  %v861_v60 = vpop.f32.mrf.mxu0  ;;  %v897_v61 = vpop.f32.mrf.mxu1 }
 0x10d   :  { %805 = vst [vmem:[%s1213_s4 + $0x18] sm:$0xff] %v761_v54   ;;  %811 = vst [vmem:[%s1213_s4 + $0x48] sm:$0xff] %v791_v55   ;;  %v466_v62 = vadd.f32 %v1123_v47, %v435_v56  ;;  %v478_v63 = vadd.f32 %v1123_v47, %v447_v57  ;;  %v862_v0 = vadd.f32 %v861_v60, %v860_v52 }
 0x10e   :  { %v898_v1 = vadd.f32 %v897_v61, %v896_v53  ;;  %v863_v2 = vpop.f32.mrf.mxu0  ;;  %v899_v3 = vpop.f32.mrf.mxu1  ;;  %v513_v10 = vmax.f32 %v465_v50, %v489_v58  ;;  %v525_v11 = vmax.f32 %v477_v51, %v501_v59 }
 0x10f   :  { %v490_v4 = vmul.f32 0.01, %v466_v62  ;;  %v502_v5 = vmul.f32 0.01, %v478_v63  ;;  %v436_v6 = vmul.f32 %v862_v0, %v1118_v43 }
 0x110   :  { %v448_v7 = vmul.f32 %v898_v1, %v1118_v43  ;;  %v864_v8 = vpop.f32.mrf.mxu0  ;;  %v900_v9 = vpop.f32.mrf.mxu1 }
 0x111   :  { %v514_v12 = vmax.f32 %v466_v62, %v490_v4  ;;  %v526_v13 = vmax.f32 %v478_v63, %v502_v5  ;;  %v467_v14 = vadd.f32 %v1123_v47, %v436_v6  ;;  %v865_v16 = vadd.f32 %v864_v8, %v863_v2 }
 0x112   :  { %v479_v15 = vadd.f32 %v1123_v47, %v448_v7  ;;  %v901_v17 = vadd.f32 %v900_v9, %v899_v3 }
 0x113   :  { %v766_v18 = vpack.c.bf16 %v514_v12, %v513_v10  ;;  %v796_v19 = vpack.c.bf16 %v526_v13, %v525_v11  ;;  %v437_v20 = vmul.f32 %v865_v16, %v1118_v43  ;;  %v491_v22 = vmul.f32 0.01, %v467_v14 }
 0x114   :  { %v449_v21 = vmul.f32 %v901_v17, %v1118_v43  ;;  %v503_v23 = vmul.f32 0.01, %v479_v15 }
 0x115   :  { %806 = vst [vmem:[%s1213_s4 + $0x20] sm:$0xff] %v766_v18   ;;  %812 = vst [vmem:[%s1213_s4 + $0x50] sm:$0xff] %v796_v19   ;;  %v468_v24 = vadd.f32 %v1123_v47, %v437_v20  ;;  %v515_v28 = vmax.f32 %v467_v14, %v491_v22 }
 0x116   :  { %v480_v25 = vadd.f32 %v1123_v47, %v449_v21  ;;  %v527_v29 = vmax.f32 %v479_v15, %v503_v23 }
 0x117   :  { %v492_v26 = vmul.f32 0.01, %v468_v24 }
 0x118   :  { %v504_v27 = vmul.f32 0.01, %v480_v25 }
 0x119   :  { %v516_v30 = vmax.f32 %v468_v24, %v492_v26 }
 0x11a   :  { %v528_v43 = vmax.f32 %v480_v25, %v504_v27 }
 0x11b   :  { %v771_v31 = vpack.c.bf16 %v516_v30, %v515_v28 }
 0x11c   :  { %v801_v32 = vpack.c.bf16 %v528_v43, %v527_v29 }
 0x11d   :  { %807 = vst [vmem:[%s1213_s4 + $0x28] sm:$0xff] %v771_v31  }
 0x11e   :  { %813 = vst [vmem:[%s1213_s4 + $0x58] sm:$0xff] %v801_v32  }

// kernel: squeeze.2
= control target key start
LH: loop header
LB: loop body
LE: loop exit
PB: predicated region body
PF: predicated region fallthrough
CT: control target
= control target key end

     0   :  { %vm51_vm0 = vcmask 261120   ;;  %s460_s10 = smov 96   ;;  %s461_s11 = smov 32   ;;  %v462_v25 = vmov 0.0   ;;  %s621_s0 = inlined_call_operand.vmem [shape: bf16[2496], index: 0, kind: input, shape index: {}]   ;;  %s622_s1 = inlined_call_operand.vmem [shape: bf16[2,13,3,32], index: 1, kind: output, shape index: {}]  }
   0x1   :  { %v409_v0 = vld [vmem:[%s621_s0 + $0x8] sm:$0xf]  ;;  %v437_v1 = vld [vmem:[%s621_s0] sm:$0xff]   ;;  %s459_s0 = smov 64  }
   0x2   :  { %v18_v2 = vunpack.c.l.bf16 %v409_v0  ;;  %v438_v3 = vunpack.c.l.bf16 %v437_v1  ;;  %v439_v4 = vunpack.c.h.bf16 %v437_v1 }
   0x4   :  { %21 = vst [vmem:[#allocation1 + $0x10] sm:$0xff] %v18_v2  ;;  %36 = vst [vmem:[#allocation1 + $0x8] sm:$0xff] %v439_v4 }
   0x5   :  { %67 = vst.msk [vmem:[#allocation0 + $0x99] sm:$0x80] %vm51_vm0, %v439_v4   ;;  %61 = vst.msk [vmem:[#allocation0 + $0x52] ss:$14 sm:$0x3] %vm51_vm0, %v439_v4  }
   0x6   :  { %63 = vst.msk [vmem:[#allocation0 + $0x57] ss:$9 sm:$0xc] %vm51_vm0, %v439_v4   ;;  %65 = vst.msk [vmem:[#allocation0 + $0x5c] ss:$9 sm:$0x70] %vm51_vm0, %v439_v4  }
   0x7   :  { %52 = vst.msk [vmem:[#allocation0] ss:$9 sm:$0x7] %vm51_vm0, %v438_v3   ;;  %54 = vst.msk [vmem:[#allocation0 + $0x5] ss:$9 sm:$0x38] %vm51_vm0, %v438_v3  }
   0x8   :  { %56 = vst.msk [vmem:[#allocation0 + $0xa] ss:$9 sm:$0xc0] %vm51_vm0, %v438_v3  }
   0xb   :  { %v122_v5 = vld.sshfl [vmem:[#allocation1 + $0x8] sm:$0xff pattern:$0x87354021]   ;;  %v135_v8 = vld.sshfl [vmem:[#allocation1 + $0xe] sm:$0xff pattern:$0x33333304]  }
   0xc   :  { %v449_v6 = vpack.i.bf16 %v122_v5, %v438_v3  ;;  %v69_v7 = vld [vmem:[#allocation1 + $0x10] sm:$0xf]  }
   0xd   :  { %72 = vst.msk [vmem:[#allocation0 + $0xa9] ss:$9 sm:$0x3] %vm51_vm0, %v69_v7   ;;  %74 = vst.msk [vmem:[#allocation0 + $0xae] ss:$9 sm:$0xc] %vm51_vm0, %v69_v7  }
   0xe   :  { %450 = vrot.lane.b32.xlu1 %v449_v6, %s459_s0  ;;  %445 = vrot.lane.b32.xlu0 %v449_v6, %s460_s10  ;;  %v99_v9 = vld.sshfl [vmem:[#allocation1 + $0xe] sm:$0xff pattern:$0x33333054]  }
  0x12   :  { %136 = vrot.lane.b32.xlu1 %v135_v8, %s459_s0  ;;  %100 = vrot.lane.b32.xlu0 %v99_v9, %s460_s10 }
  0x16   :  { %168 = vrot.lane.b32.xlu1 %v135_v8, %s461_s11  ;;  %455 = vrot.lane.b32.xlu0 %v449_v6, %s461_s11 }
  0x80   :  { %v451_v10 = vpop.permute.xlu1 %450  ;;  %v446_v11 = vpop.permute.xlu0 %445 }
  0x81   :  { %v453_v12 = vunpack.i.h.bf16 %v451_v10  ;;  %v452_v13 = vunpack.i.l.bf16 %v451_v10  ;;  %v448_v14 = vunpack.i.h.bf16 %v446_v11  ;;  %v447_v15 = vunpack.i.l.bf16 %v446_v11 }
  0x83   :  { %127 = vst.msk [vmem:[#allocation0 + $0x62] ss:$14 sm:$0x3] %vm51_vm0, %v453_v12   ;;  %129 = vst.msk [vmem:[#allocation0 + $0x7] ss:$41 sm:$0xc] %vm51_vm0, %v453_v12  }
  0x84   :  { %131 = vst.msk [vmem:[#allocation0 + $0xec] ss:$-23 sm:$0x30] %vm51_vm0, %v453_v12   ;;  %133 = vst.msk [vmem:[#allocation0 + $0x4e] ss:$14 sm:$0xc0] %vm51_vm0, %v453_v12   ;;  %v137_v16 = vpop.permute.xlu1 %136   ;;  %v101_v17 = vpop.permute.xlu0 %100  }
  0x85   :  { %114 = vst.msk [vmem:[#allocation0 + $0x2] ss:$14 sm:$0x3] %vm51_vm0, %v452_v13   ;;  %116 = vst.msk [vmem:[#allocation0 + $0x7] ss:$9 sm:$0xc] %vm51_vm0, %v452_v13  }
  0x86   :  { %118 = vst.msk [vmem:[#allocation0 + $0xc] ss:$9 sm:$0x70] %vm51_vm0, %v452_v13   ;;  %120 = vst.msk [vmem:[#allocation0 + $0x49] sm:$0x80] %vm51_vm0, %v452_v13  }
  0x87   :  { %91 = vst.msk [vmem:[#allocation0 + $0x61] ss:$9 sm:$0x3] %vm51_vm0, %v448_v14   ;;  %93 = vst.msk [vmem:[#allocation0 + $0x6] ss:$41 sm:$0xc] %vm51_vm0, %v448_v14  }
  0x88   :  { %95 = vst.msk [vmem:[#allocation0 + $0xd2] ss:$-18 sm:$0x30] %vm51_vm0, %v448_v14   ;;  %97 = vst.msk [vmem:[#allocation0 + $0x6b] ss:$9 sm:$0xc0] %vm51_vm0, %v448_v14   ;;  %v169_v18 = vpop.permute.xlu1 %168   ;;  %v456_v19 = vpop.permute.xlu0 %455 }
  0x89   :  { %80 = vst.msk [vmem:[#allocation0 + $0x1] ss:$9 sm:$0x3] %vm51_vm0, %v447_v15   ;;  %82 = vst.msk [vmem:[#allocation0 + $0x6] ss:$9 sm:$0x1c] %vm51_vm0, %v447_v15   ;;  %v458_v20 = vunpack.i.h.bf16 %v456_v19  ;;  %v457_v21 = vunpack.i.l.bf16 %v456_v19 }
  0x8a   :  { %84 = vst.msk [vmem:[#allocation0 + $0xb] ss:$9 sm:$0xe0] %vm51_vm0, %v447_v15   ;;  %140 = vst.msk [vmem:[#allocation0 + $0xc2] ss:$-41 sm:$0x3] %vm51_vm0, %v137_v16  }
  0x8b   :  { %142 = vst.msk [vmem:[#allocation0 + $0xb7] sm:$0x4] %vm51_vm0, %v137_v16   ;;  %104 = vst.msk [vmem:[#allocation0 + $0xc1] ss:$9 sm:$0x3] %vm51_vm0, %v101_v17  }
  0x8c   :  { %106 = vst.msk [vmem:[#allocation0 + $0x96] sm:$0x4] %vm51_vm0, %v101_v17   ;;  %108 = vst.msk [vmem:[#allocation0 + $0xb5] sm:$0x8] %vm51_vm0, %v101_v17  }
  0x8d   :  { %172 = vst.msk [vmem:[#allocation0 + $0xc8] ss:$-46 sm:$0x3] %vm51_vm0, %v169_v18   ;;  %174 = vst.msk [vmem:[#allocation0 + $0xb8] sm:$0x4] %vm51_vm0, %v169_v18  }
  0x8e   :  { %v273_v22 = vld [vmem:[#allocation0 + $0x60] sm:$0xf]  ;;  %159 = vst.msk [vmem:[#allocation0 + $0x68] ss:$9 sm:$0x3] %vm51_vm0, %v458_v20  }
  0x8f   :  { %v305_v23 = vld [vmem:[#allocation0 + $0x80] sm:$0xf]  ;;  %v274_v26 = vpack.c.bf16 %v462_v25, %v273_v22  ;;  %161 = vst.msk [vmem:[#allocation0 - $0x2] ss:$46 sm:$0xc] %vm51_vm0, %v458_v20  }
  0x90   :  { %v180_v24 = vld [vmem:[#allocation0] sm:$0xf]  ;;  %v306_v27 = vpack.c.bf16 %v462_v25, %v305_v23  ;;  %163 = vst.msk [vmem:[#allocation0 + $0xed] ss:$-23 sm:$0x30] %vm51_vm0, %v458_v20  }
  0x91   :  { %v181_v28 = vpack.c.bf16 %v462_v25, %v180_v24  ;;  %v209_v29 = vld [vmem:[#allocation0 + $0x20] sm:$0xf]  ;;  %165 = vst.msk [vmem:[#allocation0 + $0x72] ss:$9 sm:$0xc0] %vm51_vm0, %v458_v20  }
  0x92   :  { %v241_v30 = vld [vmem:[#allocation0 + $0x40] sm:$0xf]  ;;  %148 = vst.msk [vmem:[#allocation0 + $0x8] ss:$9 sm:$0x7] %vm51_vm0, %v457_v21   ;;  %v210_v32 = vpack.c.bf16 %v462_v25, %v209_v29 }
  0x93   :  { %v337_v31 = vld [vmem:[#allocation0 + $0xa0] sm:$0xf]  ;;  %150 = vst.msk [vmem:[#allocation0 + $0xd] ss:$9 sm:$0x38] %vm51_vm0, %v457_v21   ;;  %v242_v33 = vpack.c.bf16 %v462_v25, %v241_v30  ;;  %184 = vst [vmem:[%s622_s1] sm:$0x3] %v181_v28 }
  0x94   :  { %152 = vst.msk [vmem:[#allocation0 + $0x12] ss:$9 sm:$0xc0] %vm51_vm0, %v457_v21   ;;  %v338_v34 = vpack.c.bf16 %v462_v25, %v337_v31  ;;  %v369_v35 = vld [vmem:[#allocation0 + $0xc0] sm:$0xf] }
  0x95   :  { %422 = vst [vmem:[%s622_s1 + $0x18] sm:$0x3] %v274_v26  ;;  %426 = vst [vmem:[%s622_s1 + $0x20] sm:$0x3] %v306_v27  ;;  %v370_v36 = vpack.c.bf16 %v462_v25, %v369_v35  ;;  %v329_v37 = vld [vmem:[#allocation0 + $0x98] sm:$0xf] }
  0x96   :  { %414 = vst [vmem:[%s622_s1 + $0x8] sm:$0x3] %v210_v32  ;;  %418 = vst [vmem:[%s622_s1 + $0x10] sm:$0x3] %v242_v33  ;;  %v361_v38 = vld [vmem:[#allocation0 + $0xb8] sm:$0xf]  ;;  %v330_v40 = vpack.c.bf16 %v462_v25, %v329_v37 }
  0x97   :  { %430 = vst [vmem:[%s622_s1 + $0x28] sm:$0x3] %v338_v34  ;;  %434 = vst [vmem:[%s622_s1 + $0x30] sm:$0x3] %v370_v36  ;;  %v377_v39 = vld [vmem:[#allocation0 + $0xc8] sm:$0xf]  ;;  %v362_v41 = vpack.c.bf16 %v462_v25, %v361_v38 }
  0x98   :  { %v378_v42 = vpack.c.bf16 %v462_v25, %v377_v39  ;;  %v289_v43 = vld [vmem:[#allocation0 + $0x70] sm:$0xf]  ;;  %429 = vst [vmem:[%s622_s1 + $0x26] sm:$0x3] %v330_v40  ;;  %v265_v62 = vld [vmem:[#allocation0 + $0x58] sm:$0xf] }
  0x99   :  { %v321_v44 = vld [vmem:[#allocation0 + $0x90] sm:$0xf]  ;;  %v186_v45 = vld [vmem:[#allocation0 + $0x8] sm:$0xf]  ;;  %433 = vst [vmem:[%s622_s1 + $0x2e] sm:$0x3] %v362_v41  ;;  %v290_v46 = vpack.c.bf16 %v462_v25, %v289_v43  ;;  %v266_v1 = vpack.c.bf16 %v462_v25, %v265_v62 }
  0x9a   :  { %435 = vst [vmem:[%s622_s1 + $0x32] sm:$0x3] %v378_v42  ;;  %v322_v47 = vpack.c.bf16 %v462_v25, %v321_v44  ;;  %v187_v48 = vpack.c.bf16 %v462_v25, %v186_v45  ;;  %v193_v49 = vld [vmem:[#allocation0 + $0x10] sm:$0xf]  ;;  %v201_v50 = vld [vmem:[#allocation0 + $0x18] sm:$0xf] }
  0x9b   :  { %v217_v51 = vld [vmem:[#allocation0 + $0x28] sm:$0xf]  ;;  %v194_v52 = vpack.c.bf16 %v462_v25, %v193_v49  ;;  %v202_v53 = vpack.c.bf16 %v462_v25, %v201_v50  ;;  %v225_v55 = vld [vmem:[#allocation0 + $0x30] sm:$0xf]  ;;  %v233_v56 = vld [vmem:[#allocation0 + $0x38] sm:$0xf] }
  0x9c   :  { %v218_v54 = vpack.c.bf16 %v462_v25, %v217_v51  ;;  %v249_v57 = vld [vmem:[#allocation0 + $0x48] sm:$0xf]  ;;  %424 = vst [vmem:[%s622_s1 + $0x1c] sm:$0x3] %v290_v46  ;;  %428 = vst [vmem:[%s622_s1 + $0x24] sm:$0x3] %v322_v47  ;;  %v226_v58 = vpack.c.bf16 %v462_v25, %v225_v55  ;;  %v234_v59 = vpack.c.bf16 %v462_v25, %v233_v56 }
  0x9d   :  { %411 = vst [vmem:[%s622_s1 + $0x2] sm:$0x3] %v187_v48  ;;  %v250_v60 = vpack.c.bf16 %v462_v25, %v249_v57  ;;  %v257_v61 = vld [vmem:[#allocation0 + $0x50] sm:$0xf]  ;;  %v281_v63 = vld [vmem:[#allocation0 + $0x68] sm:$0xf] }
  0x9e   :  { %412 = vst [vmem:[%s622_s1 + $0x4] sm:$0x3] %v194_v52  ;;  %413 = vst [vmem:[%s622_s1 + $0x6] sm:$0x3] %v202_v53  ;;  %v258_v0 = vpack.c.bf16 %v462_v25, %v257_v61  ;;  %v282_v2 = vpack.c.bf16 %v462_v25, %v281_v63  ;;  %v297_v3 = vld [vmem:[#allocation0 + $0x78] sm:$0xf] }
  0x9f   :  { %415 = vst [vmem:[%s622_s1 + $0xa] sm:$0x3] %v218_v54  ;;  %v313_v4 = vld [vmem:[#allocation0 + $0x88] sm:$0xf]  ;;  %416 = vst [vmem:[%s622_s1 + $0xc] sm:$0x3] %v226_v58  ;;  %v298_v6 = vpack.c.bf16 %v462_v25, %v297_v3 }
  0xa0   :  { %v345_v5 = vld [vmem:[#allocation0 + $0xa8] sm:$0xf]  ;;  %417 = vst [vmem:[%s622_s1 + $0xe] sm:$0x3] %v234_v59  ;;  %419 = vst [vmem:[%s622_s1 + $0x12] sm:$0x3] %v250_v60  ;;  %v314_v7 = vpack.c.bf16 %v462_v25, %v313_v4 }
  0xa1   :  { %v346_v8 = vpack.c.bf16 %v462_v25, %v345_v5  ;;  %v353_v9 = vld [vmem:[#allocation0 + $0xb0] sm:$0xf]  ;;  %420 = vst [vmem:[%s622_s1 + $0x14] sm:$0x3] %v258_v0  ;;  %421 = vst [vmem:[%s622_s1 + $0x16] sm:$0x3] %v266_v1 }
  0xa2   :  { %423 = vst [vmem:[%s622_s1 + $0x1a] sm:$0x3] %v282_v2  ;;  %v354_v10 = vpack.c.bf16 %v462_v25, %v353_v9  ;;  %425 = vst [vmem:[%s622_s1 + $0x1e] sm:$0x3] %v298_v6 }
  0xa3   :  { %427 = vst [vmem:[%s622_s1 + $0x22] sm:$0x3] %v314_v7  ;;  %431 = vst [vmem:[%s622_s1 + $0x2a] sm:$0x3] %v346_v8 }
  0xa4   :  { %432 = vst [vmem:[%s622_s1 + $0x2c] sm:$0x3] %v354_v10 }

// kernel: forward.7
= control target key start
LH: loop header
LB: loop body
LE: loop exit
PB: predicated region body
PF: predicated region fallthrough
CT: control target
= control target key end

     0   :  { %v428_v7 = vmov 1966171168   ;;  %vm373_vm0 = vcmask 1040384   ;;  %vm374_vm1 = vsmask.f32 256  ;;  %vm376_vm2 = vcmask 1041409   ;;  %s707_s0 = inlined_call_operand.vmem [shape: bf16[16,2560], index: 0, kind: input, shape index: {}]   ;;  %s708_s1 = inlined_call_operand.vmem [shape: bf16[1,2560], index: 1, kind: output, shape index: {}]  }
   0x1   :  { %v8_v0 = vld [vmem:[%s707_s0] sm:$0xff]  ;;  %v9_v1 = vld [vmem:[%s707_s0 + $0x8] sm:$0xff]  ;;  %v448_v2 = vld [vmem:[%s707_s0 + $0x10] sm:$0xff]  ;;  %v465_v8 = vunpack.c.l.s4 %v428_v7  ;;  %vm377_vm3 = vsmask.f32 1280  ;;  %vm380_vm6 = vcmask 1042434  }
   0x2   :  { %v453_v3 = vld [vmem:[%s707_s0 + $0x18] sm:$0xff]  ;;  %v458_v4 = vld [vmem:[%s707_s0 + $0x20] sm:$0xff]  ;;  %v463_v5 = vld [vmem:[%s707_s0 + $0x28] sm:$0xff]  ;;  %v28_v6 = vunpack.c.l.bf16 %v8_v0  ;;  %v29_v13 = vunpack.c.h.bf16 %v8_v0  ;;  %v30_v14 = vunpack.c.l.bf16 %v9_v1  ;;  %v31_v15 = vunpack.c.h.bf16 %v9_v1 }
   0x3   :  { %v470_v10 = vld [vmem:[%s707_s0 + $0x30] sm:$0xff]  ;;  %v475_v11 = vld [vmem:[%s707_s0 + $0x38] sm:$0xff]  ;;  %v480_v12 = vld [vmem:[%s707_s0 + $0x40] sm:$0xff]  ;;  %v32_v16 = vunpack.c.l.bf16 %v448_v2  ;;  %v33_v19 = vunpack.c.h.bf16 %v448_v2  ;;  %v34_v20 = vunpack.c.l.bf16 %v453_v3  ;;  %v35_v21 = vunpack.c.h.bf16 %v453_v3 }
   0x4   :  { %v486_v17 = vld [vmem:[%s707_s0 + $0x48] sm:$0xff]  ;;  %v18_v18 = vld [vmem:[%s707_s0 + $0x50] sm:$0xff]  ;;  %v36_v22 = vunpack.c.l.bf16 %v458_v4  ;;  %v19_v23 = vld [vmem:[%s707_s0 + $0x58] sm:$0xff]  ;;  %v37_v25 = vunpack.c.h.bf16 %v458_v4  ;;  %v38_v26 = vunpack.c.l.bf16 %v463_v5  ;;  %v39_v27 = vunpack.c.h.bf16 %v463_v5 }
   0x5   :  { %v20_v24 = vld [vmem:[%s707_s0 + $0x60] sm:$0xff]  ;;  %v40_v28 = vunpack.c.l.bf16 %v470_v10  ;;  %v21_v29 = vld [vmem:[%s707_s0 + $0x68] sm:$0xff]  ;;  %v511_v30 = vld [vmem:[%s707_s0 + $0x70] sm:$0xff]  ;;  %v41_v31 = vunpack.c.h.bf16 %v470_v10  ;;  %v42_v32 = vunpack.c.l.bf16 %v475_v11  ;;  %v43_v33 = vunpack.c.h.bf16 %v475_v11 }
   0x6   :  { %v520_v35 = vld [vmem:[%s707_s0 + $0x78] sm:$0xff]  ;;  %v525_v36 = vld [vmem:[%s707_s0 + $0x80] sm:$0xff]  ;;  %v48_v40 = vunpack.c.l.bf16 %v18_v18  ;;  %v533_v41 = vld [vmem:[%s707_s0 + $0x88] sm:$0xff]  ;;  %v49_v43 = vunpack.c.h.bf16 %v18_v18  ;;  %v50_v44 = vunpack.c.l.bf16 %v19_v23  ;;  %v51_v45 = vunpack.c.h.bf16 %v19_v23 }
   0x7   :  { %v538_v42 = vld [vmem:[%s707_s0 + $0x90] sm:$0xff]  ;;  %v52_v46 = vunpack.c.l.bf16 %v20_v24  ;;  %v53_v47 = vunpack.c.h.bf16 %v20_v24  ;;  %v54_v48 = vunpack.c.l.bf16 %v21_v29  ;;  %v55_v49 = vunpack.c.h.bf16 %v21_v29  ;;  %vm640_vm4 = vmand %vm373_vm0, %vm374_vm1 }
   0x8   :  { %v56_v50 = vunpack.c.l.bf16 %v511_v30  ;;  %v57_v51 = vunpack.c.h.bf16 %v511_v30  ;;  %v58_v52 = vunpack.c.l.bf16 %v520_v35  ;;  %v59_v53 = vunpack.c.h.bf16 %v520_v35  ;;  %vm650_vm5 = vmand %vm376_vm2, %vm377_vm3 }
   0x9   :  { %v60_v54 = vunpack.c.l.bf16 %v525_v36  ;;  %v61_v55 = vunpack.c.h.bf16 %v525_v36  ;;  %v62_v56 = vunpack.c.l.bf16 %v533_v41  ;;  %v63_v57 = vunpack.c.h.bf16 %v533_v41  ;;  %vm379_vm7 = vmor %vm650_vm5, %vm640_vm4 }
   0xa   :  { %v68_v59 = vmax.f32 %v28_v6, %v48_v40  ;;  %v75_v60 = vmax.f32 %v29_v13, %v49_v43  ;;  %v82_v61 = vmax.f32 %v30_v14, %v50_v44  ;;  %v89_v62 = vmax.f32 %v31_v15, %v51_v45 }
   0xb   :  { %v96_v63 = vmax.f32 %v32_v16, %v52_v46  ;;  %v103_v0 = vmax.f32 %v33_v19, %v53_v47  ;;  %v110_v1 = vmax.f32 %v34_v20, %v54_v48  ;;  %v117_v2 = vmax.f32 %v35_v21, %v55_v49  ;;  %v552_v46 = vld [vmem:[%s707_s0 + $0x98] sm:$0xff] }
   0xc   :  { %v69_v3 = vrot.slane %v68_v59, 4  ;;  %v76_v7 = vrot.slane %v75_v60, 4  ;;  %v83_v18 = vrot.slane %v82_v61, 4  ;;  %v90_v23 = vrot.slane %v89_v62, 4 }
   0xd   :  { %v97_v24 = vrot.slane %v96_v63, 4  ;;  %v104_v29 = vrot.slane %v103_v0, 4  ;;  %v111_v9 = vrot.slane %v110_v1, 4  ;;  %v118_v39 = vrot.slane %v117_v2, 4 }
   0xe   :  { %v70_v38 = vmax.f32 %v68_v59, %v69_v3  ;;  %v77_v37 = vmax.f32 %v75_v60, %v76_v7  ;;  %v84_v34 = vmax.f32 %v82_v61, %v83_v18  ;;  %v91_v58 = vmax.f32 %v89_v62, %v90_v23 }
   0xf   :  { %v98_v6 = vmax.f32 %v96_v63, %v97_v24  ;;  %v105_v13 = vmax.f32 %v103_v0, %v104_v29  ;;  %v112_v14 = vmax.f32 %v110_v1, %v111_v9  ;;  %v119_v15 = vmax.f32 %v117_v2, %v118_v39 }
  0x10   :  { %v71_v16 = vrot.slane %v70_v38, 2  ;;  %v78_v19 = vrot.slane %v77_v37, 2  ;;  %v85_v20 = vrot.slane %v84_v34, 2  ;;  %v92_v21 = vrot.slane %v91_v58, 2 }
  0x11   :  { %v99_v40 = vrot.slane %v98_v6, 2  ;;  %v106_v43 = vrot.slane %v105_v13, 2  ;;  %v113_v44 = vrot.slane %v112_v14, 2  ;;  %v120_v45 = vrot.slane %v119_v15, 2 }
  0x12   :  { %v72_v47 = vmax.f32 %v70_v38, %v71_v16  ;;  %v79_v48 = vmax.f32 %v77_v37, %v78_v19  ;;  %v86_v49 = vmax.f32 %v84_v34, %v85_v20  ;;  %v93_v59 = vmax.f32 %v91_v58, %v92_v21 }
  0x13   :  { %v100_v60 = vmax.f32 %v98_v6, %v99_v40  ;;  %v554_v9 = vmax.f32 %v105_v13, %v106_v43  ;;  %v556_v39 = vmax.f32 %v112_v14, %v113_v44  ;;  %v558_v61 = vmax.f32 %v119_v15, %v120_v45 }
  0x14   :  { %v73_v62 = vrot.slane %v72_v47, 1  ;;  %v80_v63 = vrot.slane %v79_v48, 1  ;;  %v87_v0 = vrot.slane %v86_v49, 1  ;;  %v94_v1 = vrot.slane %v93_v59, 1 }
  0x15   :  { %v65_v2 = vunpack.c.h.bf16 %v538_v42  ;;  %v66_v3 = vunpack.c.l.bf16 %v552_v46  ;;  %v67_v38 = vunpack.c.h.bf16 %v552_v46  ;;  %v101_v37 = vrot.slane %v100_v60, 1 }
  0x16   :  { %v563_v34 = vmax.f32 %v72_v47, %v73_v62  ;;  %v108_v58 = vrot.slane %v554_v9, 1  ;;  %v115_v7 = vrot.slane %v556_v39, 1  ;;  %v122_v18 = vrot.slane %v558_v61, 1 }
  0x17   :  { %v568_v23 = vmax.f32 %v79_v48, %v80_v63  ;;  %v570_v24 = vmax.f32 %v86_v49, %v87_v0  ;;  %v572_v29 = vmax.f32 %v93_v59, %v94_v1  ;;  %v574_v6 = vmax.f32 %v100_v60, %v101_v37 }
  0x18   :  { %v124_v13 = vmax.f32 %v36_v22, %v56_v50  ;;  %v131_v14 = vmax.f32 %v37_v25, %v57_v51  ;;  %v138_v15 = vmax.f32 %v38_v26, %v58_v52  ;;  %v145_v16 = vmax.f32 %v39_v27, %v59_v53 }
  0x19   :  { %v152_v22 = vmax.f32 %v40_v28, %v60_v54  ;;  %v159_v4 = vmax.f32 %v41_v31, %v61_v55  ;;  %v166_v25 = vmax.f32 %v42_v32, %v62_v56  ;;  %v173_v5 = vmax.f32 %v43_v33, %v63_v57 }
  0x1a   :  { %v125_v26 = vrot.slane %v124_v13, 4  ;;  %v132_v27 = vrot.slane %v131_v14, 4  ;;  %v139_v30 = vrot.slane %v138_v15, 4  ;;  %v146_v35 = vrot.slane %v145_v16, 4 }
  0x1b   :  { %v153_v28 = vrot.slane %v152_v22, 4  ;;  %v160_v50 = vrot.slane %v159_v4, 4  ;;  %v167_v36 = vrot.slane %v166_v25, 4  ;;  %v174_v51 = vrot.slane %v173_v5, 4 }
  0x1c   :  { %v126_v10 = vmax.f32 %v124_v13, %v125_v26  ;;  %v133_v31 = vmax.f32 %v131_v14, %v132_v27  ;;  %v140_v52 = vmax.f32 %v138_v15, %v139_v30  ;;  %v147_v53 = vmax.f32 %v145_v16, %v146_v35 }
  0x1d   :  { %v154_v54 = vmax.f32 %v152_v22, %v153_v28  ;;  %v161_v55 = vmax.f32 %v159_v4, %v160_v50  ;;  %v168_v32 = vmax.f32 %v166_v25, %v167_v36  ;;  %v175_v56 = vmax.f32 %v173_v5, %v174_v51 }
  0x1e   :  { %v127_v41 = vrot.slane %v126_v10, 2  ;;  %v134_v19 = vrot.slane %v133_v31, 2  ;;  %v141_v11 = vrot.slane %v140_v52, 2  ;;  %v148_v33 = vrot.slane %v147_v53, 2 }
  0x1f   :  { %v155_v57 = vrot.slane %v154_v54, 2  ;;  %v162_v20 = vrot.slane %v161_v55, 2  ;;  %v169_v21 = vrot.slane %v168_v32, 2  ;;  %v176_v40 = vrot.slane %v175_v56, 2 }
  0x20   :  { %v128_v43 = vmax.f32 %v126_v10, %v127_v41  ;;  %v135_v44 = vmax.f32 %v133_v31, %v134_v19  ;;  %v142_v45 = vmax.f32 %v140_v52, %v141_v11  ;;  %v149_v47 = vmax.f32 %v147_v53, %v148_v33 }
  0x21   :  { %v156_v48 = vmax.f32 %v154_v54, %v155_v57  ;;  %v163_v49 = vmax.f32 %v161_v55, %v162_v20  ;;  %v170_v59 = vmax.f32 %v168_v32, %v169_v21  ;;  %v177_v60 = vmax.f32 %v175_v56, %v176_v40 }
  0x22   :  { %v129_v62 = vrot.slane %v128_v43, 1  ;;  %v136_v63 = vrot.slane %v135_v44, 1  ;;  %v143_v0 = vrot.slane %v142_v45, 1  ;;  %v150_v1 = vrot.slane %v149_v47, 1 }
  0x23   :  { %v157_v37 = vrot.slane %v156_v48, 1  ;;  %v164_v13 = vrot.slane %v163_v49, 1  ;;  %v171_v14 = vrot.slane %v170_v59, 1  ;;  %v178_v15 = vrot.slane %v177_v60, 1 }
  0x24   :  { %v109_v16 = vmax.f32 %v554_v9, %v108_v58  ;;  %v116_v22 = vmax.f32 %v556_v39, %v115_v7  ;;  %v123_v4 = vmax.f32 %v558_v61, %v122_v18  ;;  %v130_v25 = vmax.f32 %v128_v43, %v129_v62 }
  0x25   :  { %v137_v5 = vmax.f32 %v135_v44, %v136_v63  ;;  %v144_v26 = vmax.f32 %v142_v45, %v143_v0  ;;  %v151_v27 = vmax.f32 %v149_v47, %v150_v1  ;;  %v158_v30 = vmax.f32 %v156_v48, %v157_v37 }
  0x26   :  { %v709_v35 = vunpack.c.l.bf16 %v538_v42  ;;  %v710_v28 = vunpack.c.l.bf16 %v480_v12  ;;  %v711_v9 = vunpack.c.h.bf16 %v480_v12  ;;  %v712_v39 = vunpack.c.l.bf16 %v486_v17 }
  0x27   :  { %v713_v7 = vunpack.c.h.bf16 %v486_v17  ;;  %v165_v36 = vmax.f32 %v163_v49, %v164_v13  ;;  %v172_v51 = vmax.f32 %v170_v59, %v171_v14  ;;  %v179_v10 = vmax.f32 %v177_v60, %v178_v15 }
  0x28   :  { %v180_v50 = vmax.f32 %v710_v28, %v709_v35  ;;  %v187_v58 = vmax.f32 %v711_v9, %v65_v2  ;;  %v194_v61 = vmax.f32 %v712_v39, %v66_v3  ;;  %v417_v31 = vpack.c.bf16 %v568_v23, %v563_v34 }
  0x29   :  { %v201_v18 = vmax.f32 %v713_v7, %v67_v38  ;;  %v418_v53 = vpack.c.bf16 %v572_v29, %v570_v24  ;;  %v419_v3 = vpack.c.bf16 %v109_v16, %v574_v6  ;;  %v254_v46 = vunpack.c.0.s8 %v465_v8 }
  0x2a   :  { %v181_v42 = vrot.slane %v180_v50, 4  ;;  %v188_v52 = vrot.slane %v187_v58, 4  ;;  %v195_v12 = vrot.slane %v194_v61, 4  ;;  %v714_v54 = vlaneseq }
  0x2b   :  { %v202_v2 = vrot.slane %v201_v18, 4  ;;  %v420_v41 = vpack.c.bf16 %v123_v4, %v116_v22  ;;  %v421_v34 = vpack.c.bf16 %v137_v5, %v130_v25  ;;  %v422_v23 = vpack.c.bf16 %v151_v27, %v144_v26 }
  0x2c   :  { %v256_v17 = vshrl.u32 %v714_v54, 7  ;;  %v182_v38 = vmax.f32 %v180_v50, %v181_v42  ;;  %v189_v55 = vmax.f32 %v187_v58, %v188_v52  ;;  %v196_v32 = vmax.f32 %v194_v61, %v195_v12  ;;  %v404_v52 = vld [vmem:[%s708_s1] sm:$0xff]  ;;  %v407_v12 = vld [vmem:[%s708_s1 + $0x8] sm:$0xff] }
  0x2d   :  { %v203_v56 = vmax.f32 %v201_v18, %v202_v2  ;;  %v423_v8 = vpack.c.bf16 %v165_v36, %v158_v30  ;;  %v424_v6 = vpack.c.bf16 %v179_v10, %v172_v51  ;;  %vm381_vm8 = vsmask.f32 2304  ;;  %v410_v36 = vld [vmem:[%s708_s1 + $0x10] sm:$0xf] }
  0x2e   :  { %v634_v19 = vsub.s32 %v254_v46, %v256_v17  ;;  %v183_v11 = vrot.slane %v182_v38, 2  ;;  %v190_v33 = vrot.slane %v189_v55, 2  ;;  %v197_v57 = vrot.slane %v196_v32, 2  ;;  %vm382_vm9 = vmand %vm380_vm6, %vm381_vm8 }
  0x2f   :  { %v204_v20 = vrot.slane %v203_v56, 2  ;;  %vm384_vm10 = vcmask 1043459   ;;  %vm385_vm11 = vsmask.f32 3328  ;;  %vm660_vm12 = vmor %vm382_vm9, %vm379_vm7  ;;  %vm388_vm13 = vcmask 1044484  }
  0x30   :  { %v258_v24 = vrot.slane %v417_v31, %v634_v19  ;;  %v265_v29 = vrot.slane %v418_v53, %v634_v19  ;;  %v184_v21 = vmax.f32 %v182_v38, %v183_v11  ;;  %v191_v40 = vmax.f32 %v189_v55, %v190_v33  ;;  %vm666_vm15 = vmand %vm384_vm10, %vm385_vm11 }
  0x31   :  { %v198_v43 = vmax.f32 %v196_v32, %v197_v57  ;;  %v205_v44 = vmax.f32 %v203_v56, %v204_v20  ;;  %v272_v47 = vrot.slane %v419_v3, %v634_v19  ;;  %v279_v48 = vrot.slane %v420_v41, %v634_v19  ;;  %vm387_vm0 = vmor %vm666_vm15, %vm660_vm12 }
  0x32   :  { %v307_v49 = vrot.slane %v421_v34, %v634_v19  ;;  %v314_v59 = vrot.slane %v422_v23, %v634_v19  ;;  %v185_v62 = vrot.slane %v184_v21, 1  ;;  %v192_v63 = vrot.slane %v191_v40, 1 }
  0x33   :  { %v199_v0 = vrot.slane %v198_v43, 1  ;;  %v206_v1 = vrot.slane %v205_v44, 1  ;;  %v280_v37 = vcombine.low %v258_v24, %v265_v29  ;;  %v321_v13 = vrot.slane %v423_v8, %v634_v19 }
  0x34   :  { %v328_v14 = vrot.slane %v424_v6, %v634_v19  ;;  %v186_v15 = vmax.f32 %v184_v21, %v185_v62  ;;  %v193_v16 = vmax.f32 %v191_v40, %v192_v63  ;;  %v281_v25 = vcombine.low %v272_v47, %v279_v48 }
  0x35   :  { %v200_v22 = vmax.f32 %v198_v43, %v199_v0  ;;  %v207_v4 = vmax.f32 %v205_v44, %v206_v1  ;;  %v329_v5 = vcombine.low %v307_v49, %v314_v59  ;;  %vm389_vm14 = vsmask.f32 4352 }
  0x36   :  { %v330_v26 = vcombine.low %v321_v13, %v328_v14  ;;  %v425_v27 = vpack.c.bf16 %v193_v16, %v186_v15  ;;  %v288_v58 = vrot.slane %v280_v37, %v634_v19  ;;  %vm392_vm1 = vcmask 1045509   ;;  %vm390_vm3 = vmand %vm388_vm13, %vm389_vm14 }
  0x37   :  { %v426_v30 = vpack.c.bf16 %v207_v4, %v200_v22  ;;  %vm393_vm2 = vsmask.f32 5376  ;;  %v295_v39 = vrot.slane %v281_v25, %v634_v19  ;;  %v337_v61 = vrot.slane %v329_v5, %v634_v19  ;;  %vm391_vm4 = vmor %vm390_vm3, %vm387_vm0 }
  0x38   :  { %v354_v28 = vrot.slane %v425_v27, %v634_v19  ;;  %v344_v7 = vrot.slane %v330_v26, %v634_v19  ;;  %vm396_vm5 = vcmask 1046534   ;;  %vm397_vm6 = vsmask.f32 6400  ;;  %vm394_vm7 = vmand %vm392_vm1, %vm393_vm2 }
  0x39   :  { %v361_v50 = vrot.slane %v426_v30, %v634_v19  ;;  %vm395_vm8 = vmor %vm394_vm7, %vm391_vm4  ;;  %vm400_vm9 = vcmask 1047559   ;;  %vm401_vm10 = vsmask.f32 7424  ;;  %v296_v10 = vcombine.low %v288_v58, %v295_v39 }
  0x3a   :  { %v345_v31 = vcombine.low %v337_v61, %v344_v7  ;;  %vm398_vm11 = vmand %vm396_vm5, %vm397_vm6 }
  0x3b   :  { %v362_v18 = vcombine.low %v354_v28, %v361_v50  ;;  %vm399_vm13 = vmor %vm398_vm11, %vm395_vm8 }
  0x3c   :  { %vm402_vm14 = vmand %vm400_vm9, %vm401_vm10 }
  0x3d   :  { %v369_v51 = vrot.slane %v362_v18, %v634_v19  ;;  %vm403_vm1 = vmor %vm402_vm14, %vm399_vm13 }
  0x3e   :  { %v405_v2 = vsel %vm403_vm1, %v296_v10, %v404_v52  ;;  %v408_v53 = vsel %vm403_vm1, %v345_v31, %v407_v12 }
  0x3f   :  { %v411_v42 = vsel %vm387_vm0, %v369_v51, %v410_v36  ;;  %406 = vst [vmem:[%s708_s1] sm:$0xff] %v405_v2  ;;  %409 = vst [vmem:[%s708_s1 + $0x8] sm:$0xff] %v408_v53 }
  0x40   :  { %412 = vst [vmem:[%s708_s1 + $0x10] sm:$0xf] %v411_v42 }

// kernel: forward.8
= control target key start
LH: loop header
LB: loop body
LE: loop exit
PB: predicated region body
PF: predicated region fallthrough
CT: control target
= control target key end

     0   :  { %s885_s1 = inlined_call_operand.vmem [shape: bf16[512,128], index: 1, kind: input, shape index: {}]   ;;  %s886_s0 = inlined_call_operand.vmem [shape: bf16[48,512], index: 0, kind: input, shape index: {}]   ;;  %s887_s2 = inlined_call_operand.vmem [shape: f32[1,128], index: 2, kind: input, shape index: {}]   ;;  %s888_s3 = inlined_call_operand.vmem [shape: f32[1,128], index: 3, kind: input, shape index: {}]   ;;  %s889_s4 = inlined_call_operand.vmem [shape: bf16[48,128], index: 4, kind: output, shape index: {}]  }
   0x1   :  { %v663_v0 = vld [vmem:[%s885_s1 + $0x78] sm:$0xff]   ;;  %v667_v4 = vld [vmem:[%s885_s1 + $0x70] sm:$0xff]   ;;  %v671_v8 = vld [vmem:[%s885_s1 + $0x68] sm:$0xff]  }
   0x2   :  { %v664_v1 = vld [vmem:[%s885_s1 + $0xf8] sm:$0xff]   ;;  %595 = vmatprep.subr.bf16.mxu0 %v663_v0  ;;  %v668_v5 = vld [vmem:[%s885_s1 + $0xf0] sm:$0xff]   ;;  %v672_v9 = vld [vmem:[%s885_s1 + $0xe8] sm:$0xff]  }
   0x3   :  { %v665_v2 = vld [vmem:[%s885_s1 + $0x38] sm:$0xff]   ;;  %629 = vmatprep.subr.bf16.mxu1 %v664_v1  ;;  %v669_v6 = vld [vmem:[%s885_s1 + $0x30] sm:$0xff]   ;;  %v673_v10 = vld [vmem:[%s885_s1 + $0x28] sm:$0xff]  }
   0x4   :  { %v666_v3 = vld [vmem:[%s885_s1 + $0xb8] sm:$0xff]   ;;  %596 = vmatpush3.bf16.msra.mxu0 %v665_v2  ;;  %v670_v7 = vld [vmem:[%s885_s1 + $0xb0] sm:$0xff]   ;;  %v674_v11 = vld [vmem:[%s885_s1 + $0xa8] sm:$0xff]  }
   0x5   :  { %630 = vmatpush3.bf16.msra.mxu1 %v666_v3  ;;  %597 = vmatprep.subr.bf16.mxu0 %v667_v4  ;;  %v675_v12 = vld [vmem:[%s885_s1 + $0x60] sm:$0xff]   ;;  %v679_v16 = vld [vmem:[%s885_s1 + $0x58] sm:$0xff]   ;;  %v683_v20 = vld [vmem:[%s885_s1 + $0x50] sm:$0xff]  }
   0x6   :  { %631 = vmatprep.subr.bf16.mxu1 %v668_v5  ;;  %v676_v13 = vld [vmem:[%s885_s1 + $0xe0] sm:$0xff]   ;;  %v680_v17 = vld [vmem:[%s885_s1 + $0xd8] sm:$0xff]   ;;  %v684_v21 = vld [vmem:[%s885_s1 + $0xd0] sm:$0xff]  }
   0x7   :  { %v677_v14 = vld [vmem:[%s885_s1 + $0x20] sm:$0xff]   ;;  %v681_v18 = vld [vmem:[%s885_s1 + $0x18] sm:$0xff]   ;;  %v685_v22 = vld [vmem:[%s885_s1 + $0x10] sm:$0xff]  }
   0x8   :  { %598 = vmatpush3.bf16.msra.mxu0 %v669_v6  ;;  %v678_v15 = vld [vmem:[%s885_s1 + $0xa0] sm:$0xff]   ;;  %v682_v19 = vld [vmem:[%s885_s1 + $0x98] sm:$0xff]   ;;  %v686_v23 = vld [vmem:[%s885_s1 + $0x90] sm:$0xff]  }
   0x9   :  { %632 = vmatpush3.bf16.msra.mxu1 %v670_v7  ;;  %599 = vmatprep.subr.bf16.mxu0 %v671_v8  ;;  %v687_v24 = vld [vmem:[%s885_s1 + $0x48] sm:$0xff]   ;;  %v691_v28 = vld [vmem:[%s885_s1 + $0x40] sm:$0xff]  }
   0xa   :  { %633 = vmatprep.subr.bf16.mxu1 %v672_v9  ;;  %v688_v25 = vld [vmem:[%s885_s1 + $0xc8] sm:$0xff]   ;;  %v692_v29 = vld [vmem:[%s885_s1 + $0xc0] sm:$0xff]  }
   0xb   :  { %v689_v26 = vld [vmem:[%s885_s1 + $0x8] sm:$0xff]   ;;  %v693_v30 = vld [vmem:[%s885_s1] sm:$0xff]  }
   0xc   :  { %600 = vmatpush3.bf16.msra.mxu0 %v673_v10  ;;  %v690_v27 = vld [vmem:[%s885_s1 + $0x88] sm:$0xff]   ;;  %v694_v31 = vld [vmem:[%s885_s1 + $0x80] sm:$0xff]  }
   0xd   :  { %634 = vmatpush3.bf16.msra.mxu1 %v674_v11  ;;  %601 = vmatprep.subr.bf16.mxu0 %v675_v12  ;;  %v695_v32 = vld [vmem:[%s886_s0] ss:$16 sps:$4 sm:$0xff]   ;;  %v697_v33 = vld [vmem:[%s886_s0 + $0x4] ss:$16 sps:$4 sm:$0xff]   ;;  %v698_v34 = vld [vmem:[%s886_s0 + $0x8] ss:$16 sps:$4 sm:$0xff]  }
   0xe   :  { %635 = vmatprep.subr.bf16.mxu1 %v676_v13  ;;  %v700_v35 = vld [vmem:[%s886_s0 + $0xc] ss:$16 sps:$4 sm:$0xff]   ;;  %378 = vmatprep.mubr.bf16.mxu0 %v697_v33  ;;  %v701_v36 = vld [vmem:[%s886_s0 + $0x24] ss:$16 sps:$4 sm:$0xff]   ;;  %v705_v38 = vld [vmem:[%s886_s0 + $0x20] ss:$16 sps:$4 sm:$0xff]  }
   0xf   :  { %435 = vmatprep.mubr.bf16.mxu1 %v700_v35  ;;  %v703_v37 = vld [vmem:[%s886_s0 + $0x2c] ss:$16 sps:$4 sm:$0xff]   ;;  %v706_v39 = vld [vmem:[%s886_s0 + $0x28] ss:$16 sps:$4 sm:$0xff]   ;;  %v707_v40 = vld [vmem:[%s886_s0 + $0x44] ss:$16 sps:$4 sm:$0xff]  }
  0x10   :  { %602 = vmatpush3.bf16.msra.mxu0 %v677_v14  ;;  %v709_v41 = vld [vmem:[%s886_s0 + $0x4c] ss:$16 sps:$4 sm:$0xff]   ;;  %v711_v42 = vld [vmem:[%s886_s0 + $0x40] ss:$16 sps:$4 sm:$0xff]   ;;  %v712_v43 = vld [vmem:[%s886_s0 + $0x48] ss:$16 sps:$4 sm:$0xff]  }
  0x11   :  { %636 = vmatpush3.bf16.msra.mxu1 %v678_v15  ;;  %603 = vmatprep.subr.bf16.mxu0 %v679_v16  ;;  %v564_v54 = vld [vmem:[%s887_s2] ss:$0 sm:$0xff] }
  0x12   :  { %637 = vmatprep.subr.bf16.mxu1 %v680_v17  ;;  %v565_v63 = vld [vmem:[%s888_s3] ss:$0 sm:$0xff] }
  0x14   :  { %604 = vmatpush3.bf16.msra.mxu0 %v681_v18 }
  0x15   :  { %638 = vmatpush3.bf16.msra.mxu1 %v682_v19  ;;  %605 = vmatprep.subr.bf16.mxu0 %v683_v20 }
  0x16   :  { %639 = vmatprep.subr.bf16.mxu1 %v684_v21 }
  0x18   :  { %606 = vmatpush3.bf16.msra.mxu0 %v685_v22 }
  0x19   :  { %640 = vmatpush3.bf16.msra.mxu1 %v686_v23  ;;  %607 = vmatprep.subr.bf16.mxu0 %v687_v24 }
  0x1a   :  { %641 = vmatprep.subr.bf16.mxu1 %v688_v25 }
  0x1c   :  { %608 = vmatpush3.bf16.msra.mxu0 %v689_v26 }
  0x1d   :  { %642 = vmatpush3.bf16.msra.mxu1 %v690_v27  ;;  %609 = vmatprep.subr.bf16.mxu0 %v691_v28 }
  0x1e   :  { %643 = vmatprep.subr.bf16.mxu1 %v692_v29 }
  0x20   :  { %610 = vmatpush3.bf16.msra.mxu0 %v693_v30 }
  0x21   :  { %644 = vmatpush3.bf16.msra.mxu1 %v694_v31 }
  0x23   :  { %379 = vmatmul.mubr.bf16.vlgmr.msra.gmra.mxu0 %v695_v32 }
  0x24   :  { %436 = vmatmul.mubr.bf16.vlgmr.msra.gmra.mxu1 %v698_v34  ;;  %386 = vmatprep.mubr.bf16.mxu0 %v701_v36 }
  0x25   :  { %443 = vmatprep.mubr.bf16.mxu1 %v703_v37 }
  0x2b   :  { %387 = vmatmul.mubr.bf16.gmra.mxu0 %v705_v38 }
  0x2c   :  { %444 = vmatmul.mubr.bf16.gmra.mxu1 %v706_v39  ;;  %394 = vmatprep.mubr.bf16.mxu0 %v707_v40 }
  0x2d   :  { %451 = vmatprep.mubr.bf16.mxu1 %v709_v41 }
  0x33   :  { %395 = vmatmul.mubr.bf16.gmra.mxu0 %v711_v42 }
  0x34   :  { %452 = vmatmul.mubr.bf16.gmra.mxu1 %v712_v43 }
  0xe3   :  { %v611_v44 = vpop.f32.mrf.mxu0 }
  0xe4   :  { %v645_v45 = vpop.f32.mrf.mxu1 }
  0xe5   :  { %v612_v46 = vpop.f32.mrf.mxu0 }
  0xe6   :  { %v613_v47 = vadd.f32 %v612_v46, %v611_v44  ;;  %v646_v48 = vpop.f32.mrf.mxu1 }
  0xe7   :  { %v647_v49 = vadd.f32 %v646_v48, %v645_v45  ;;  %v614_v50 = vpop.f32.mrf.mxu0 }
  0xe8   :  { %v648_v51 = vpop.f32.mrf.mxu1 }
  0xe9   :  { %v438_v52 = vadd.f32 %v647_v49, %v613_v47  ;;  %v615_v53 = vpop.f32.mrf.mxu0 }
  0xea   :  { %v616_v55 = vadd.f32 %v615_v53, %v614_v50  ;;  %v649_v56 = vpop.f32.mrf.mxu1 }
  0xeb   :  { %v650_v57 = vadd.f32 %v649_v56, %v648_v51  ;;  %v617_v58 = vpop.f32.mrf.mxu0  ;;  %v467_v60 = vmul.f32 %v564_v54, %v438_v52 }
  0xec   :  { %v651_v59 = vpop.f32.mrf.mxu1 }
  0xed   :  { %v441_v61 = vadd.f32 %v650_v57, %v616_v55  ;;  %v618_v62 = vpop.f32.mrf.mxu0  ;;  %v480_v6 = vadd.f32 %v565_v63, %v467_v60 }
  0xee   :  { %v619_v0 = vadd.f32 %v618_v62, %v617_v58  ;;  %v652_v1 = vpop.f32.mrf.mxu1 }
  0xef   :  { %v468_v2 = vmul.f32 %v564_v54, %v441_v61  ;;  %v653_v3 = vadd.f32 %v652_v1, %v651_v59  ;;  %v620_v4 = vpop.f32.mrf.mxu0 }
  0xf0   :  { %v654_v5 = vpop.f32.mrf.mxu1 }
  0xf1   :  { %v481_v7 = vadd.f32 %v565_v63, %v468_v2  ;;  %v446_v8 = vadd.f32 %v653_v3, %v619_v0  ;;  %v621_v9 = vpop.f32.mrf.mxu0 }
  0xf2   :  { %v622_v10 = vadd.f32 %v621_v9, %v620_v4  ;;  %v655_v11 = vpop.f32.mrf.mxu1 }
  0xf3   :  { %v581_v12 = vpack.c.bf16 %v481_v7, %v480_v6  ;;  %v656_v13 = vadd.f32 %v655_v11, %v654_v5  ;;  %v623_v14 = vpop.f32.mrf.mxu0  ;;  %v469_v16 = vmul.f32 %v564_v54, %v446_v8 }
  0xf4   :  { %v657_v15 = vpop.f32.mrf.mxu1 }
  0xf5   :  { %582 = vst [vmem:[%s889_s4] sm:$0xff] %v581_v12   ;;  %v449_v17 = vadd.f32 %v656_v13, %v622_v10  ;;  %v624_v18 = vpop.f32.mrf.mxu0  ;;  %v482_v25 = vadd.f32 %v565_v63, %v469_v16 }
  0xf6   :  { %v625_v19 = vadd.f32 %v624_v18, %v623_v14  ;;  %v658_v20 = vpop.f32.mrf.mxu1 }
  0xf7   :  { %v470_v21 = vmul.f32 %v564_v54, %v449_v17  ;;  %v659_v22 = vadd.f32 %v658_v20, %v657_v15  ;;  %v626_v23 = vpop.f32.mrf.mxu0 }
  0xf8   :  { %v660_v24 = vpop.f32.mrf.mxu1 }
  0xf9   :  { %v483_v26 = vadd.f32 %v565_v63, %v470_v21  ;;  %v454_v27 = vadd.f32 %v659_v22, %v625_v19  ;;  %v627_v28 = vpop.f32.mrf.mxu0 }
  0xfa   :  { %v628_v29 = vadd.f32 %v627_v28, %v626_v23  ;;  %v661_v30 = vpop.f32.mrf.mxu1 }
  0xfb   :  { %v586_v31 = vpack.c.bf16 %v483_v26, %v482_v25  ;;  %v662_v32 = vadd.f32 %v661_v30, %v660_v24  ;;  %v471_v33 = vmul.f32 %v564_v54, %v454_v27 }
  0xfd   :  { %593 = vst [vmem:[%s889_s4 + $0x8] sm:$0xff] %v586_v31   ;;  %v457_v34 = vadd.f32 %v662_v32, %v628_v29  ;;  %v484_v36 = vadd.f32 %v565_v63, %v471_v33 }
  0xff   :  { %v472_v35 = vmul.f32 %v564_v54, %v457_v34 }
 0x101   :  { %v485_v37 = vadd.f32 %v565_v63, %v472_v35 }
 0x103   :  { %v591_v38 = vpack.c.bf16 %v485_v37, %v484_v36 }
 0x105   :  { %594 = vst [vmem:[%s889_s4 + $0x10] sm:$0xff] %v591_v38  }

// kernel: forward.9
= control target key start
LH: loop header
LB: loop body
LE: loop exit
PB: predicated region body
PF: predicated region fallthrough
CT: control target
= control target key end

     0   :  { %s1739_s15 = smov 0   ;;  %s2041_s0 = inlined_call_operand.vmem [shape: bf16[832,32], index: 0, kind: input, shape index: {}]   ;;  %s2042_s1 = inlined_call_operand.vmem [shape: bf16[32,128], index: 1, kind: input, shape index: {}]   ;;  %s2043_s2 = inlined_call_operand.vmem [shape: f32[1,128], index: 2, kind: input, shape index: {}]   ;;  %s2044_s3 = inlined_call_operand.vmem [shape: f32[1,128], index: 3, kind: input, shape index: {}]   ;;  %s2045_s4 = inlined_call_operand.vmem [shape: bf16[832,128], index: 4, kind: output, shape index: {}]  }
   0x1 LB: > { %s1258_s16 = sadd.s32 4294967295, %s1712_s15   ;;  %p1262_p0 = scmp.ge.s32.totalorder %s1712_s15, 1  ;;  %s1712_s15 = sphi %s1739_s15, %s14_s15  }
   0x2   : > { %p163_p1 = scmp.lt.s32.totalorder %s1712_s15, 3 }
   0x4   : > { %p164_p2 = pnand %p1262_p0, %p163_p1 }
   0x5   : > { %s189_s19 = smul.u32 (!%p164_p2), 52, %s1258_s16 }
   0x6   : > { %167 = sbr.rel (%p164_p2) target bundleno = 279 (0x117), region = 36 }
   0x7   : > { %p190_p3 = scmp.lt.s32.totalorder (!%p164_p2), %s189_s19, 103 }
   0xb   : > { %v1678_v0 = vld [vmem:[%s2042_s1 + $0x8] sm:$0xff]   ;;  %v1679_v1 = vld [vmem:[%s2042_s1] sm:$0xff]   ;;  %s2047_s19 = smov (!%p190_p3, %s189_s19), 103  ;;  %vm400_vm0 = vcmask 261120  }
   0xc   : > { %1610 = vmatprep.subr.bf16.mxu0 %v1678_v0  ;;  %1666 = vmatprep.subr.bf16.mxu1 %v1678_v0  ;;  %s1263_s22 = sshll.u32 %s2047_s19, 2  ;;  %v1818_v28 = vld [vmem:[%s2043_s2] ss:$0 sm:$0xff] }
   0xd   : > { %1611 = vmatpush3.bf16.msra.mxu0 %v1678_v0  ;;  %1668 = vmatpush3.bf16.msra.mxu1 %v1678_v0  ;;  %s1761_s25 = scalar_lea.vmem %s2041_s0, %s1263_s22  ;;  %v1823_v30 = vld [vmem:[%s2044_s3] ss:$0 sm:$0xff]  ;;  %s1852_s6 = scalar_lea.vmem %s2045_s4, %s1263_s22 }
   0xe   : > { %1612 = vmatprep.subr.bf16.mxu0 %v1679_v1  ;;  %1667 = vmatprep.subr.bf16.mxu1 %v1679_v1  ;;  %v1680_v2 = vld [vmem:[%s1761_s25] sm:$0xff]   ;;  %v1681_v3 = vld [vmem:[%s1761_s25 + $0x70] sm:$0xff]   ;;  %v1682_v4 = vld [vmem:[%s1761_s25 + $0x8] sm:$0xff]  }
   0xf   : > { %1614 = vmatprep.mubr.msk.bf16.mxu0 %vm400_vm0, %v1680_v2  ;;  %1642 = vmatprep.mubr.msk.bf16.mxu1 %vm400_vm0, %v1681_v3  ;;  %v1683_v5 = vld [vmem:[%s1761_s25 + $0x78] sm:$0xff]   ;;  %v1684_v6 = vld [vmem:[%s1761_s25 + $0x10] sm:$0xff]   ;;  %v1685_v7 = vld [vmem:[%s1761_s25 + $0x80] sm:$0xff]  }
  0x10   : > { %v1686_v8 = vld [vmem:[%s1761_s25 + $0x18] sm:$0xff]   ;;  %v1687_v9 = vld [vmem:[%s1761_s25 + $0x88] sm:$0xff]   ;;  %v1688_v10 = vld [vmem:[%s1761_s25 + $0x20] sm:$0xff]  }
  0x11   : > { %1613 = vmatpush3.bf16.msra.mxu0 %v1679_v1  ;;  %1669 = vmatpush3.bf16.msra.mxu1 %v1679_v1  ;;  %v1689_v11 = vld [vmem:[%s1761_s25 + $0x90] sm:$0xff]   ;;  %v1690_v12 = vld [vmem:[%s1761_s25 + $0x28] sm:$0xff]   ;;  %v1691_v13 = vld [vmem:[%s1761_s25 + $0x98] sm:$0xff]  }
  0x12   : > { %v1692_v14 = vld [vmem:[%s1761_s25 + $0x30] sm:$0xff]   ;;  %v1693_v15 = vld [vmem:[%s1761_s25 + $0xa0] sm:$0xff]   ;;  %v1694_v16 = vld [vmem:[%s1761_s25 + $0x38] sm:$0xff]  }
  0x13   : > { %v1695_v17 = vld [vmem:[%s1761_s25 + $0xa8] sm:$0xff]   ;;  %v1696_v18 = vld [vmem:[%s1761_s25 + $0x40] sm:$0xff]   ;;  %v1697_v19 = vld [vmem:[%s1761_s25 + $0xb0] sm:$0xff]  }
  0x14   : > { %1615 = vmatmul.mubr.msk.bf16.vlgmr.msra.gmra.mxu0 %vm400_vm0, %v1682_v4  ;;  %1643 = vmatmul.mubr.msk.bf16.vlgmr.msra.gmra.mxu1 %vm400_vm0, %v1683_v5  ;;  %v1698_v20 = vld [vmem:[%s1761_s25 + $0x48] sm:$0xff]   ;;  %v1699_v21 = vld [vmem:[%s1761_s25 + $0xb8] sm:$0xff]   ;;  %v1700_v22 = vld [vmem:[%s1761_s25 + $0x50] sm:$0xff]  }
  0x15   : > { %1618 = vmatprep.mubr.msk.bf16.mxu0 %vm400_vm0, %v1684_v6  ;;  %1646 = vmatprep.mubr.msk.bf16.mxu1 %vm400_vm0, %v1685_v7  ;;  %v1701_v23 = vld [vmem:[%s1761_s25 + $0xc0] sm:$0xff]   ;;  %v1702_v24 = vld [vmem:[%s1761_s25 + $0x58] sm:$0xff]   ;;  %v1703_v25 = vld [vmem:[%s1761_s25 + $0xc8] sm:$0xff]  }
  0x16   : > { %v1704_v26 = vld [vmem:[%s1761_s25 + $0x60] sm:$0xff]   ;;  %v1705_v27 = vld [vmem:[%s1761_s25 + $0x68] sm:$0xff]  }
  0x1c   : > { %1619 = vmatmul.mubr.msk.bf16.gmra.mxu0 %vm400_vm0, %v1686_v8  ;;  %1647 = vmatmul.mubr.msk.bf16.gmra.mxu1 %vm400_vm0, %v1687_v9 }
  0x1d   : > { %1622 = vmatprep.mubr.msk.bf16.mxu0 %vm400_vm0, %v1688_v10  ;;  %1650 = vmatprep.mubr.msk.bf16.mxu1 %vm400_vm0, %v1689_v11 }
  0x24   : > { %1623 = vmatmul.mubr.msk.bf16.gmra.mxu0 %vm400_vm0, %v1690_v12  ;;  %1651 = vmatmul.mubr.msk.bf16.gmra.mxu1 %vm400_vm0, %v1691_v13 }
  0x25   : > { %1626 = vmatprep.mubr.msk.bf16.mxu0 %vm400_vm0, %v1692_v14  ;;  %1654 = vmatprep.mubr.msk.bf16.mxu1 %vm400_vm0, %v1693_v15 }
  0x2c   : > { %1627 = vmatmul.mubr.msk.bf16.gmra.mxu0 %vm400_vm0, %v1694_v16  ;;  %1655 = vmatmul.mubr.msk.bf16.gmra.mxu1 %vm400_vm0, %v1695_v17 }
  0x2d   : > { %1630 = vmatprep.mubr.msk.bf16.mxu0 %vm400_vm0, %v1696_v18  ;;  %1658 = vmatprep.mubr.msk.bf16.mxu1 %vm400_vm0, %v1697_v19 }
  0x34   : > { %1631 = vmatmul.mubr.msk.bf16.gmra.mxu0 %vm400_vm0, %v1698_v20  ;;  %1659 = vmatmul.mubr.msk.bf16.gmra.mxu1 %vm400_vm0, %v1699_v21 }
  0x35   : > { %1634 = vmatprep.mubr.msk.bf16.mxu0 %vm400_vm0, %v1700_v22  ;;  %1662 = vmatprep.mubr.msk.bf16.mxu1 %vm400_vm0, %v1701_v23 }
  0x3c   : > { %1635 = vmatmul.mubr.msk.bf16.gmra.mxu0 %vm400_vm0, %v1702_v24  ;;  %1663 = vmatmul.mubr.msk.bf16.gmra.mxu1 %vm400_vm0, %v1703_v25 }
  0x3d   : > { %1638 = vmatprep.mubr.msk.bf16.mxu0 %vm400_vm0, %v1704_v26 }
  0x44   : > { %1639 = vmatmul.mubr.msk.bf16.gmra.mxu0 %vm400_vm0, %v1705_v27 }
  0xd4   : > { %v1616_v29 = vpop.f32.mrf.mxu0  ;;  %v1644_v32 = vpop.f32.mrf.mxu1 }
  0xd5   : > { %v729_v31 = vmul.f32 %v1616_v29, %v1818_v28  ;;  %v757_v33 = vmul.f32 %v1644_v32, %v1818_v28 }
  0xd6   : > { %v513_v34 = vpop.f32.mrf.mxu0  ;;  %v625_v37 = vpop.f32.mrf.mxu1 }
  0xd7   : > { %v788_v35 = vadd.f32 %v1823_v30, %v729_v31  ;;  %v727_v36 = vmul.f32 %v1818_v28, %v513_v34  ;;  %v816_v38 = vadd.f32 %v1823_v30, %v757_v33  ;;  %v755_v39 = vmul.f32 %v1818_v28, %v625_v37 }
  0xd8   : > { %v1617_v40 = vpop.f32.mrf.mxu0  ;;  %v1645_v44 = vpop.f32.mrf.mxu1 }
  0xd9   : > { %v840_v41 = vmul.f32 0.01, %v788_v35  ;;  %v786_v42 = vadd.f32 %v1823_v30, %v727_v36  ;;  %v730_v43 = vmul.f32 %v1617_v40, %v1818_v28  ;;  %v868_v45 = vmul.f32 0.01, %v816_v38 }
  0xda   : > { %v814_v46 = vadd.f32 %v1823_v30, %v755_v39  ;;  %v758_v47 = vmul.f32 %v1645_v44, %v1818_v28  ;;  %v516_v48 = vpop.f32.mrf.mxu0  ;;  %v628_v53 = vpop.f32.mrf.mxu1 }
  0xdb   : > { %v892_v49 = vmax.f32 %v788_v35, %v840_v41  ;;  %v838_v50 = vmul.f32 0.01, %v786_v42  ;;  %v789_v51 = vadd.f32 %v1823_v30, %v730_v43  ;;  %v728_v52 = vmul.f32 %v1818_v28, %v516_v48 }
  0xdc   : > { %v920_v54 = vmax.f32 %v816_v38, %v868_v45  ;;  %v866_v55 = vmul.f32 0.01, %v814_v46  ;;  %v817_v56 = vadd.f32 %v1823_v30, %v758_v47  ;;  %v756_v57 = vmul.f32 %v1818_v28, %v628_v53  ;;  %v1620_v58 = vpop.f32.mrf.mxu0  ;;  %v1648_v63 = vpop.f32.mrf.mxu1 }
  0xdd   : > { %v890_v59 = vmax.f32 %v786_v42, %v838_v50  ;;  %v841_v60 = vmul.f32 0.01, %v789_v51  ;;  %v787_v61 = vadd.f32 %v1823_v30, %v728_v52  ;;  %v733_v62 = vmul.f32 %v1620_v58, %v1818_v28 }
  0xde   : > { %v918_v0 = vmax.f32 %v814_v46, %v866_v55  ;;  %v869_v1 = vmul.f32 0.01, %v817_v56  ;;  %v815_v2 = vadd.f32 %v1823_v30, %v756_v57  ;;  %v761_v3 = vmul.f32 %v1648_v63, %v1818_v28  ;;  %v529_v4 = vpop.f32.mrf.mxu0  ;;  %v641_v9 = vpop.f32.mrf.mxu1 }
  0xdf   : > { %v893_v5 = vmax.f32 %v789_v51, %v841_v60  ;;  %v839_v6 = vmul.f32 0.01, %v787_v61  ;;  %v1844_v7 = vadd.f32 %v1823_v30, %v733_v62  ;;  %v731_v8 = vmul.f32 %v1818_v28, %v529_v4 }
  0xe0   : > { %v921_v10 = vmax.f32 %v817_v56, %v869_v1  ;;  %v867_v11 = vmul.f32 0.01, %v815_v2  ;;  %v1855_v12 = vadd.f32 %v1823_v30, %v761_v3  ;;  %v759_v13 = vmul.f32 %v1818_v28, %v641_v9  ;;  %v1621_v14 = vpop.f32.mrf.mxu0  ;;  %v1649_v19 = vpop.f32.mrf.mxu1 }
  0xe1   : > { %v1435_v15 = vpack.c.bf16 %v893_v5, %v892_v49  ;;  %v891_v16 = vmax.f32 %v787_v61, %v839_v6  ;;  %v844_v17 = vmul.f32 0.01, %v1844_v7  ;;  %v1860_v18 = vadd.f32 %v1823_v30, %v731_v8 }
  0xe2   : > { %v1505_v20 = vpack.c.bf16 %v921_v10, %v920_v54  ;;  %v919_v21 = vmax.f32 %v815_v2, %v867_v11  ;;  %v872_v22 = vmul.f32 0.01, %v1855_v12  ;;  %v818_v23 = vadd.f32 %v1823_v30, %v759_v13  ;;  %v532_v24 = vpop.f32.mrf.mxu0  ;;  %v644_v31 = vpop.f32.mrf.mxu1 }
  0xe3   : > { %1557 = vst [vmem:[%s1852_s6 + $0x8] sm:$0xff] %v1435_v15   ;;  %v1430_v25 = vpack.c.bf16 %v891_v16, %v890_v59  ;;  %v896_v26 = vmax.f32 %v1844_v7, %v844_v17  ;;  %v842_v27 = vmul.f32 0.01, %v1860_v18  ;;  %v734_v29 = vmul.f32 %v1621_v14, %v1818_v28 }
  0xe4   : > { %1571 = vst [vmem:[%s1852_s6 + $0x78] sm:$0xff] %v1505_v20   ;;  %v1500_v32 = vpack.c.bf16 %v919_v21, %v918_v0  ;;  %v924_v33 = vmax.f32 %v1855_v12, %v872_v22  ;;  %v870_v34 = vmul.f32 0.01, %v818_v23  ;;  %v762_v35 = vmul.f32 %v1649_v19, %v1818_v28  ;;  %v1624_v36 = vpop.f32.mrf.mxu0  ;;  %v1652_v41 = vpop.f32.mrf.mxu1 }
  0xe5   : > { %1431 = vst [vmem:[%s1852_s6] sm:$0xff] %v1430_v25   ;;  %v894_v37 = vmax.f32 %v1860_v18, %v842_v27  ;;  %v793_v38 = vadd.f32 %v1823_v30, %v734_v29  ;;  %v732_v39 = vmul.f32 %v1818_v28, %v532_v24  ;;  %v760_v40 = vmul.f32 %v1818_v28, %v644_v31 }
  0xe6   : > { %1570 = vst [vmem:[%s1852_s6 + $0x70] sm:$0xff] %v1500_v32   ;;  %v922_v42 = vmax.f32 %v818_v23, %v870_v34  ;;  %v821_v43 = vadd.f32 %v1823_v30, %v762_v35  ;;  %v737_v44 = vmul.f32 %v1624_v36, %v1818_v28  ;;  %v765_v45 = vmul.f32 %v1652_v41, %v1818_v28  ;;  %v545_v46 = vpop.f32.mrf.mxu0  ;;  %v657_v51 = vpop.f32.mrf.mxu1 }
  0xe7   : > { %v845_v47 = vmul.f32 0.01, %v793_v38  ;;  %v791_v48 = vadd.f32 %v1823_v30, %v732_v39  ;;  %v819_v49 = vadd.f32 %v1823_v30, %v760_v40  ;;  %v735_v50 = vmul.f32 %v1818_v28, %v545_v46 }
  0xe8   : > { %v873_v52 = vmul.f32 0.01, %v821_v43  ;;  %v1884_v53 = vadd.f32 %v1823_v30, %v737_v44  ;;  %v1887_v54 = vadd.f32 %v1823_v30, %v765_v45  ;;  %v763_v55 = vmul.f32 %v1818_v28, %v657_v51  ;;  %v1625_v56 = vpop.f32.mrf.mxu0  ;;  %v1653_v61 = vpop.f32.mrf.mxu1 }
  0xe9   : > { %v897_v57 = vmax.f32 %v793_v38, %v845_v47  ;;  %v843_v58 = vmul.f32 0.01, %v791_v48  ;;  %v871_v59 = vmul.f32 0.01, %v819_v49  ;;  %v1891_v60 = vadd.f32 %v1823_v30, %v735_v50 }
  0xea   : > { %v925_v62 = vmax.f32 %v821_v43, %v873_v52  ;;  %v848_v63 = vmul.f32 0.01, %v1884_v53  ;;  %v1895_v0 = vmul.f32 0.01, %v1887_v54  ;;  %v1898_v1 = vadd.f32 %v1823_v30, %v763_v55  ;;  %v548_v2 = vpop.f32.mrf.mxu0  ;;  %v660_v7 = vpop.f32.mrf.mxu1 }
  0xeb   : > { %v1445_v3 = vpack.c.bf16 %v897_v57, %v896_v26  ;;  %v895_v4 = vmax.f32 %v791_v48, %v843_v58  ;;  %v923_v5 = vmax.f32 %v819_v49, %v871_v59  ;;  %v846_v6 = vmul.f32 0.01, %v1891_v60 }
  0xec   : > { %v1515_v8 = vpack.c.bf16 %v925_v62, %v924_v33  ;;  %v900_v9 = vmax.f32 %v1884_v53, %v848_v63  ;;  %v928_v10 = vmax.f32 %v1887_v54, %v1895_v0  ;;  %v874_v11 = vmul.f32 0.01, %v1898_v1  ;;  %v1628_v12 = vpop.f32.mrf.mxu0  ;;  %v1656_v17 = vpop.f32.mrf.mxu1 }
  0xed   : > { %1559 = vst [vmem:[%s1852_s6 + $0x18] sm:$0xff] %v1445_v3   ;;  %v1440_v13 = vpack.c.bf16 %v895_v4, %v894_v37  ;;  %v1510_v14 = vpack.c.bf16 %v923_v5, %v922_v42  ;;  %v898_v15 = vmax.f32 %v1891_v60, %v846_v6  ;;  %v738_v16 = vmul.f32 %v1625_v56, %v1818_v28 }
  0xee   : > { %1573 = vst [vmem:[%s1852_s6 + $0x88] sm:$0xff] %v1515_v8   ;;  %v926_v18 = vmax.f32 %v1898_v1, %v874_v11  ;;  %v766_v19 = vmul.f32 %v1653_v61, %v1818_v28  ;;  %v736_v20 = vmul.f32 %v1818_v28, %v548_v2  ;;  %v764_v21 = vmul.f32 %v1818_v28, %v660_v7  ;;  %v561_v22 = vpop.f32.mrf.mxu0  ;;  %v673_v27 = vpop.f32.mrf.mxu1 }
  0xef   : > { %1558 = vst [vmem:[%s1852_s6 + $0x10] sm:$0xff] %v1440_v13   ;;  %1572 = vst [vmem:[%s1852_s6 + $0x80] sm:$0xff] %v1510_v14   ;;  %v797_v23 = vadd.f32 %v1823_v30, %v738_v16  ;;  %v741_v24 = vmul.f32 %v1628_v12, %v1818_v28  ;;  %v769_v25 = vmul.f32 %v1656_v17, %v1818_v28 }
  0xf0   : > { %v739_v26 = vmul.f32 %v1818_v28, %v561_v22  ;;  %v825_v29 = vadd.f32 %v1823_v30, %v766_v19  ;;  %v795_v31 = vadd.f32 %v1823_v30, %v736_v20  ;;  %v823_v32 = vadd.f32 %v1823_v30, %v764_v21  ;;  %v1629_v34 = vpop.f32.mrf.mxu0  ;;  %v1657_v39 = vpop.f32.mrf.mxu1 }
  0xf1   : > { %v767_v33 = vmul.f32 %v1818_v28, %v673_v27  ;;  %v849_v35 = vmul.f32 0.01, %v797_v23  ;;  %v1924_v36 = vadd.f32 %v1823_v30, %v741_v24  ;;  %v1927_v37 = vadd.f32 %v1823_v30, %v769_v25 }
  0xf2   : > { %v1930_v38 = vadd.f32 %v1823_v30, %v739_v26  ;;  %v877_v40 = vmul.f32 0.01, %v825_v29  ;;  %v847_v41 = vmul.f32 0.01, %v795_v31  ;;  %v875_v42 = vmul.f32 0.01, %v823_v32  ;;  %v564_v44 = vpop.f32.mrf.mxu0  ;;  %v676_v49 = vpop.f32.mrf.mxu1 }
  0xf3   : > { %v1933_v43 = vadd.f32 %v1823_v30, %v767_v33  ;;  %v901_v45 = vmax.f32 %v797_v23, %v849_v35  ;;  %v1936_v46 = vmul.f32 0.01, %v1924_v36  ;;  %v1939_v47 = vmul.f32 0.01, %v1927_v37 }
  0xf4   : > { %v1942_v48 = vmul.f32 0.01, %v1930_v38  ;;  %v929_v50 = vmax.f32 %v825_v29, %v877_v40  ;;  %v899_v51 = vmax.f32 %v795_v31, %v847_v41  ;;  %v927_v52 = vmax.f32 %v823_v32, %v875_v42  ;;  %v1632_v54 = vpop.f32.mrf.mxu0  ;;  %v1660_v59 = vpop.f32.mrf.mxu1 }
  0xf5   : > { %v878_v53 = vmul.f32 0.01, %v1933_v43  ;;  %v1455_v55 = vpack.c.bf16 %v901_v45, %v900_v9  ;;  %v904_v56 = vmax.f32 %v1924_v36, %v1936_v46  ;;  %v932_v57 = vmax.f32 %v1927_v37, %v1939_v47 }
  0xf6   : > { %v902_v58 = vmax.f32 %v1930_v38, %v1942_v48  ;;  %v1525_v60 = vpack.c.bf16 %v929_v50, %v928_v10  ;;  %v1450_v61 = vpack.c.bf16 %v899_v51, %v898_v15  ;;  %v1520_v62 = vpack.c.bf16 %v927_v52, %v926_v18  ;;  %v577_v0 = vpop.f32.mrf.mxu0  ;;  %v689_v5 = vpop.f32.mrf.mxu1 }
  0xf7   : > { %v930_v63 = vmax.f32 %v1933_v43, %v878_v53  ;;  %1561 = vst [vmem:[%s1852_s6 + $0x28] sm:$0xff] %v1455_v55   ;;  %v742_v1 = vmul.f32 %v1629_v34, %v1818_v28  ;;  %v770_v2 = vmul.f32 %v1657_v39, %v1818_v28  ;;  %v740_v3 = vmul.f32 %v1818_v28, %v564_v44 }
  0xf8   : > { %v768_v4 = vmul.f32 %v1818_v28, %v676_v49  ;;  %1575 = vst [vmem:[%s1852_s6 + $0x98] sm:$0xff] %v1525_v60   ;;  %1560 = vst [vmem:[%s1852_s6 + $0x20] sm:$0xff] %v1450_v61   ;;  %v745_v6 = vmul.f32 %v1632_v54, %v1818_v28  ;;  %v773_v7 = vmul.f32 %v1660_v59, %v1818_v28  ;;  %v1633_v10 = vpop.f32.mrf.mxu0  ;;  %v1661_v15 = vpop.f32.mrf.mxu1 }
  0xf9   : > { %1574 = vst [vmem:[%s1852_s6 + $0x90] sm:$0xff] %v1520_v62   ;;  %v743_v8 = vmul.f32 %v1818_v28, %v577_v0  ;;  %v771_v9 = vmul.f32 %v1818_v28, %v689_v5  ;;  %v801_v11 = vadd.f32 %v1823_v30, %v742_v1  ;;  %v829_v12 = vadd.f32 %v1823_v30, %v770_v2 }
  0xfa   : > { %v799_v13 = vadd.f32 %v1823_v30, %v740_v3  ;;  %v827_v14 = vadd.f32 %v1823_v30, %v768_v4  ;;  %v1969_v16 = vadd.f32 %v1823_v30, %v745_v6  ;;  %v1972_v17 = vadd.f32 %v1823_v30, %v773_v7  ;;  %v580_v20 = vpop.f32.mrf.mxu0  ;;  %v692_v25 = vpop.f32.mrf.mxu1 }
  0xfb   : > { %v1975_v18 = vadd.f32 %v1823_v30, %v743_v8  ;;  %v1978_v19 = vadd.f32 %v1823_v30, %v771_v9  ;;  %v853_v21 = vmul.f32 0.01, %v801_v11  ;;  %v881_v22 = vmul.f32 0.01, %v829_v12 }
  0xfc   : > { %v851_v23 = vmul.f32 0.01, %v799_v13  ;;  %v746_v24 = vmul.f32 %v1633_v10, %v1818_v28  ;;  %v879_v26 = vmul.f32 0.01, %v827_v14  ;;  %v856_v27 = vmul.f32 0.01, %v1969_v16  ;;  %v1636_v32 = vpop.f32.mrf.mxu0  ;;  %v1664_v37 = vpop.f32.mrf.mxu1 }
  0xfd   : > { %v884_v29 = vmul.f32 0.01, %v1972_v17  ;;  %v774_v31 = vmul.f32 %v1661_v15, %v1818_v28  ;;  %v905_v33 = vmax.f32 %v801_v11, %v853_v21  ;;  %v933_v34 = vmax.f32 %v829_v12, %v881_v22 }
  0xfe   : > { %v903_v35 = vmax.f32 %v799_v13, %v851_v23  ;;  %v854_v36 = vmul.f32 0.01, %v1975_v18  ;;  %v931_v38 = vmax.f32 %v827_v14, %v879_v26  ;;  %v908_v39 = vmax.f32 %v1969_v16, %v856_v27  ;;  %v593_v42 = vpop.f32.mrf.mxu0  ;;  %v705_v47 = vpop.f32.mrf.mxu1 }
  0xff   : > { %v936_v40 = vmax.f32 %v1972_v17, %v884_v29  ;;  %v882_v41 = vmul.f32 0.01, %v1978_v19  ;;  %v1465_v43 = vpack.c.bf16 %v905_v33, %v904_v56  ;;  %v1535_v44 = vpack.c.bf16 %v933_v34, %v932_v57 }
 0x100   : > { %v1460_v45 = vpack.c.bf16 %v903_v35, %v902_v58  ;;  %v906_v46 = vmax.f32 %v1975_v18, %v854_v36  ;;  %v1530_v48 = vpack.c.bf16 %v931_v38, %v930_v63  ;;  %v805_v50 = vadd.f32 %v1823_v30, %v746_v24  ;;  %v1637_v52 = vpop.f32.mrf.mxu0  ;;  %v1665_v2 = vpop.f32.mrf.mxu1 }
 0x101   : > { %v934_v49 = vmax.f32 %v1978_v19, %v882_v41  ;;  %v833_v51 = vadd.f32 %v1823_v30, %v774_v31  ;;  %1563 = vst [vmem:[%s1852_s6 + $0x38] sm:$0xff] %v1465_v43   ;;  %1577 = vst [vmem:[%s1852_s6 + $0xa8] sm:$0xff] %v1535_v44   ;;  %v744_v53 = vmul.f32 %v1818_v28, %v580_v20 }
 0x102   : > { %1562 = vst [vmem:[%s1852_s6 + $0x30] sm:$0xff] %v1460_v45   ;;  %v772_v54 = vmul.f32 %v1818_v28, %v692_v25  ;;  %v749_v55 = vmul.f32 %v1636_v32, %v1818_v28  ;;  %v777_v56 = vmul.f32 %v1664_v37, %v1818_v28  ;;  %1576 = vst [vmem:[%s1852_s6 + $0xa0] sm:$0xff] %v1530_v48   ;;  %v857_v57 = vmul.f32 0.01, %v805_v50  ;;  %v596_v61 = vpop.f32.mrf.mxu0  ;;  %v708_v21 = vpop.f32.mrf.mxu1 }
 0x103   : > { %v885_v58 = vmul.f32 0.01, %v833_v51  ;;  %v747_v59 = vmul.f32 %v1818_v28, %v593_v42  ;;  %v775_v60 = vmul.f32 %v1818_v28, %v705_v47  ;;  %v803_v62 = vadd.f32 %v1823_v30, %v744_v53 }
 0x104   : > { %v831_v63 = vadd.f32 %v1823_v30, %v772_v54  ;;  %v808_v0 = vadd.f32 %v1823_v30, %v749_v55  ;;  %v836_v1 = vadd.f32 %v1823_v30, %v777_v56  ;;  %v909_v3 = vmax.f32 %v805_v50, %v857_v57  ;;  %v1640_v7 = vpop.f32.mrf.mxu0 }
 0x105   : > { %v937_v4 = vmax.f32 %v833_v51, %v885_v58  ;;  %v806_v5 = vadd.f32 %v1823_v30, %v747_v59  ;;  %v2008_v6 = vadd.f32 %v1823_v30, %v775_v60  ;;  %v855_v8 = vmul.f32 0.01, %v803_v62 }
 0x106   : > { %v883_v9 = vmul.f32 0.01, %v831_v63  ;;  %v860_v10 = vmul.f32 0.01, %v808_v0  ;;  %v750_v11 = vmul.f32 %v1637_v52, %v1818_v28  ;;  %v1475_v12 = vpack.c.bf16 %v909_v3, %v908_v39  ;;  %v609_v16 = vpop.f32.mrf.mxu0 }
 0x107   : > { %v1545_v13 = vpack.c.bf16 %v937_v4, %v936_v40  ;;  %v888_v14 = vmul.f32 0.01, %v836_v1  ;;  %v858_v15 = vmul.f32 0.01, %v806_v5  ;;  %v907_v17 = vmax.f32 %v803_v62, %v855_v8 }
 0x108   : > { %v935_v18 = vmax.f32 %v831_v63, %v883_v9  ;;  %v912_v19 = vmax.f32 %v808_v0, %v860_v10  ;;  %v886_v20 = vmul.f32 0.01, %v2008_v6  ;;  %1565 = vst [vmem:[%s1852_s6 + $0x48] sm:$0xff] %v1475_v12   ;;  %v809_v24 = vadd.f32 %v1823_v30, %v750_v11  ;;  %v1641_v26 = vpop.f32.mrf.mxu0 }
 0x109   : > { %1579 = vst [vmem:[%s1852_s6 + $0xb8] sm:$0xff] %v1545_v13   ;;  %v940_v22 = vmax.f32 %v836_v1, %v888_v14  ;;  %v910_v23 = vmax.f32 %v806_v5, %v858_v15  ;;  %v778_v25 = vmul.f32 %v1665_v2, %v1818_v28  ;;  %v1470_v27 = vpack.c.bf16 %v907_v17, %v906_v46 }
 0x10a   : > { %v1540_v29 = vpack.c.bf16 %v935_v18, %v934_v49  ;;  %v938_v31 = vmax.f32 %v2008_v6, %v886_v20  ;;  %v748_v32 = vmul.f32 %v1818_v28, %v596_v61  ;;  %v861_v33 = vmul.f32 0.01, %v809_v24  ;;  %v612_v37 = vpop.f32.mrf.mxu0 }
 0x10b   : > { %v837_v34 = vadd.f32 %v1823_v30, %v778_v25  ;;  %v776_v35 = vmul.f32 %v1818_v28, %v708_v21  ;;  %v753_v36 = vmul.f32 %v1640_v7, %v1818_v28  ;;  %1564 = vst [vmem:[%s1852_s6 + $0x40] sm:$0xff] %v1470_v27   ;;  %v751_v39 = vmul.f32 %v1818_v28, %v609_v16 }
 0x10c   : > { %1578 = vst [vmem:[%s1852_s6 + $0xb0] sm:$0xff] %v1540_v29   ;;  %v807_v38 = vadd.f32 %v1823_v30, %v748_v32  ;;  %v754_v40 = vmul.f32 %v1641_v26, %v1818_v28  ;;  %v752_v41 = vmul.f32 %v1818_v28, %v612_v37  ;;  %v913_v42 = vmax.f32 %v809_v24, %v861_v33 }
 0x10d   : > { %v889_v43 = vmul.f32 0.01, %v837_v34  ;;  %v835_v44 = vadd.f32 %v1823_v30, %v776_v35  ;;  %v812_v45 = vadd.f32 %v1823_v30, %v753_v36  ;;  %v810_v47 = vadd.f32 %v1823_v30, %v751_v39 }
 0x10e   : > { %v859_v46 = vmul.f32 0.01, %v807_v38  ;;  %v813_v48 = vadd.f32 %v1823_v30, %v754_v40  ;;  %v811_v49 = vadd.f32 %v1823_v30, %v752_v41  ;;  %v1485_v50 = vpack.c.bf16 %v913_v42, %v912_v19 }
 0x10f   : > { %v941_v51 = vmax.f32 %v837_v34, %v889_v43  ;;  %v887_v52 = vmul.f32 0.01, %v835_v44  ;;  %v864_v28 = vmul.f32 0.01, %v812_v45  ;;  %v862_v54 = vmul.f32 0.01, %v810_v47 }
 0x110   : > { %v911_v53 = vmax.f32 %v807_v38, %v859_v46  ;;  %v865_v55 = vmul.f32 0.01, %v813_v48  ;;  %v863_v56 = vmul.f32 0.01, %v811_v49  ;;  %1567 = vst [vmem:[%s1852_s6 + $0x58] sm:$0xff] %v1485_v50  }
 0x111   : > { %v1555_v57 = vpack.c.bf16 %v941_v51, %v940_v22  ;;  %v939_v58 = vmax.f32 %v835_v44, %v887_v52  ;;  %v916_v59 = vmax.f32 %v812_v45, %v864_v28  ;;  %v914_v61 = vmax.f32 %v810_v47, %v862_v54 }
 0x112   : > { %v1480_v60 = vpack.c.bf16 %v911_v53, %v910_v23  ;;  %v917_v30 = vmax.f32 %v813_v48, %v865_v55  ;;  %v915_v62 = vmax.f32 %v811_v49, %v863_v56 }
 0x113   : > { %1581 = vst [vmem:[%s1852_s6 + $0xc8] sm:$0xff] %v1555_v57   ;;  %v1550_v63 = vpack.c.bf16 %v939_v58, %v938_v31 }
 0x114   : > { %1566 = vst [vmem:[%s1852_s6 + $0x50] sm:$0xff] %v1480_v60   ;;  %v1495_v0 = vpack.c.bf16 %v917_v30, %v916_v59  ;;  %v1490_v1 = vpack.c.bf16 %v915_v62, %v914_v61 }
 0x115   : > { %1580 = vst [vmem:[%s1852_s6 + $0xc0] sm:$0xff] %v1550_v63  }
 0x116   : > { %1569 = vst [vmem:[%s1852_s6 + $0x68] sm:$0xff] %v1495_v0   ;;  %1568 = vst [vmem:[%s1852_s6 + $0x60] sm:$0xff] %v1490_v1  }
 0x117 PF: > { %s14_s15 = sadd.s32 1, %s1712_s15  }
 0x118   : > { %p11_p4 = scmp.ge.s32.totalorder %s14_s15, 4  }
 0x11a   :  { %13 = sbr.rel (!%p11_p4) target bundleno = 1 (0x1), region = 66 }

// kernel: forward.10
= control target key start
LH: loop header
LB: loop body
LE: loop exit
PB: predicated region body
PF: predicated region fallthrough
CT: control target
= control target key end

     0   :  { %s646_s1 = inlined_call_operand.vmem [shape: bf16[512,128], index: 1, kind: input, shape index: {}]   ;;  %s647_s0 = inlined_call_operand.vmem [shape: bf16[8,512], index: 0, kind: input, shape index: {}]   ;;  %s648_s2 = inlined_call_operand.vmem [shape: f32[1,128], index: 2, kind: input, shape index: {}]   ;;  %s649_s3 = inlined_call_operand.vmem [shape: f32[1,128], index: 3, kind: input, shape index: {}]   ;;  %s650_s4 = inlined_call_operand.vmem [shape: bf16[8,128], index: 4, kind: output, shape index: {}]  }
   0x1   :  { %v474_v0 = vld [vmem:[%s646_s1 + $0x78] sm:$0xff]   ;;  %v478_v4 = vld [vmem:[%s646_s1 + $0x70] sm:$0xff]   ;;  %v482_v8 = vld [vmem:[%s646_s1 + $0x68] sm:$0xff]  }
   0x2   :  { %v475_v1 = vld [vmem:[%s646_s1 + $0xf8] sm:$0xff]   ;;  %430 = vmatprep.subr.bf16.mxu0 %v474_v0  ;;  %v479_v5 = vld [vmem:[%s646_s1 + $0xf0] sm:$0xff]   ;;  %v483_v9 = vld [vmem:[%s646_s1 + $0xe8] sm:$0xff]  }
   0x3   :  { %v476_v2 = vld [vmem:[%s646_s1 + $0x38] sm:$0xff]   ;;  %452 = vmatprep.subr.bf16.mxu1 %v475_v1  ;;  %v480_v6 = vld [vmem:[%s646_s1 + $0x30] sm:$0xff]   ;;  %v484_v10 = vld [vmem:[%s646_s1 + $0x28] sm:$0xff]  }
   0x4   :  { %v477_v3 = vld [vmem:[%s646_s1 + $0xb8] sm:$0xff]   ;;  %431 = vmatpush3.bf16.msra.mxu0 %v476_v2  ;;  %v481_v7 = vld [vmem:[%s646_s1 + $0xb0] sm:$0xff]   ;;  %v485_v11 = vld [vmem:[%s646_s1 + $0xa8] sm:$0xff]  }
   0x5   :  { %453 = vmatpush3.bf16.msra.mxu1 %v477_v3  ;;  %432 = vmatprep.subr.bf16.mxu0 %v478_v4  ;;  %v486_v12 = vld [vmem:[%s646_s1 + $0x60] sm:$0xff]   ;;  %v490_v16 = vld [vmem:[%s646_s1 + $0x58] sm:$0xff]   ;;  %v494_v20 = vld [vmem:[%s646_s1 + $0x50] sm:$0xff]  }
   0x6   :  { %454 = vmatprep.subr.bf16.mxu1 %v479_v5  ;;  %v487_v13 = vld [vmem:[%s646_s1 + $0xe0] sm:$0xff]   ;;  %v491_v17 = vld [vmem:[%s646_s1 + $0xd8] sm:$0xff]   ;;  %v495_v21 = vld [vmem:[%s646_s1 + $0xd0] sm:$0xff]  }
   0x7   :  { %v488_v14 = vld [vmem:[%s646_s1 + $0x20] sm:$0xff]   ;;  %v492_v18 = vld [vmem:[%s646_s1 + $0x18] sm:$0xff]   ;;  %v496_v22 = vld [vmem:[%s646_s1 + $0x10] sm:$0xff]  }
   0x8   :  { %433 = vmatpush3.bf16.msra.mxu0 %v480_v6  ;;  %v489_v15 = vld [vmem:[%s646_s1 + $0xa0] sm:$0xff]   ;;  %v493_v19 = vld [vmem:[%s646_s1 + $0x98] sm:$0xff]   ;;  %v497_v23 = vld [vmem:[%s646_s1 + $0x90] sm:$0xff]  }
   0x9   :  { %455 = vmatpush3.bf16.msra.mxu1 %v481_v7  ;;  %434 = vmatprep.subr.bf16.mxu0 %v482_v8  ;;  %v498_v24 = vld [vmem:[%s646_s1 + $0x48] sm:$0xff]   ;;  %v502_v28 = vld [vmem:[%s646_s1 + $0x40] sm:$0xff]  }
   0xa   :  { %456 = vmatprep.subr.bf16.mxu1 %v483_v9  ;;  %v499_v25 = vld [vmem:[%s646_s1 + $0xc8] sm:$0xff]   ;;  %v503_v29 = vld [vmem:[%s646_s1 + $0xc0] sm:$0xff]  }
   0xb   :  { %v500_v26 = vld [vmem:[%s646_s1 + $0x8] sm:$0xff]   ;;  %v504_v30 = vld [vmem:[%s646_s1] sm:$0xff]  }
   0xc   :  { %435 = vmatpush3.bf16.msra.mxu0 %v484_v10  ;;  %v501_v27 = vld [vmem:[%s646_s1 + $0x88] sm:$0xff]   ;;  %v505_v31 = vld [vmem:[%s646_s1 + $0x80] sm:$0xff]  }
   0xd   :  { %457 = vmatpush3.bf16.msra.mxu1 %v485_v11  ;;  %436 = vmatprep.subr.bf16.mxu0 %v486_v12  ;;  %v18_v32 = vld [vmem:[%s647_s0] sm:$0xff]  ;;  %v19_v33 = vld [vmem:[%s647_s0 + $0x8] sm:$0xff] }
   0xe   :  { %458 = vmatprep.subr.bf16.mxu1 %v487_v13  ;;  %v392_v34 = vcombine.low %v18_v32, %v18_v32  ;;  %v393_v35 = vcombine.high %v18_v32, %v18_v32  ;;  %v394_v36 = vcombine.low %v19_v33, %v19_v33  ;;  %v395_v37 = vcombine.high %v19_v33, %v19_v33  ;;  %v428_v44 = vld [vmem:[%s648_s2] ss:$0 sm:$0xff] }
   0xf   :  { %v429_v48 = vld [vmem:[%s649_s3] ss:$0 sm:$0xff] }
  0x10   :  { %437 = vmatpush3.bf16.msra.mxu0 %v488_v14  ;;  %322 = vmatprep.mubr.bf16.mxu0 %v393_v35 }
  0x11   :  { %459 = vmatpush3.bf16.msra.mxu1 %v489_v15  ;;  %438 = vmatprep.subr.bf16.mxu0 %v490_v16 }
  0x12   :  { %460 = vmatprep.subr.bf16.mxu1 %v491_v17  ;;  %362 = vmatprep.mubr.bf16.mxu1 %v395_v37 }
  0x14   :  { %439 = vmatpush3.bf16.msra.mxu0 %v492_v18 }
  0x15   :  { %461 = vmatpush3.bf16.msra.mxu1 %v493_v19  ;;  %440 = vmatprep.subr.bf16.mxu0 %v494_v20 }
  0x16   :  { %462 = vmatprep.subr.bf16.mxu1 %v495_v21 }
  0x18   :  { %441 = vmatpush3.bf16.msra.mxu0 %v496_v22 }
  0x19   :  { %463 = vmatpush3.bf16.msra.mxu1 %v497_v23  ;;  %442 = vmatprep.subr.bf16.mxu0 %v498_v24 }
  0x1a   :  { %464 = vmatprep.subr.bf16.mxu1 %v499_v25 }
  0x1c   :  { %443 = vmatpush3.bf16.msra.mxu0 %v500_v26 }
  0x1d   :  { %465 = vmatpush3.bf16.msra.mxu1 %v501_v27  ;;  %444 = vmatprep.subr.bf16.mxu0 %v502_v28 }
  0x1e   :  { %466 = vmatprep.subr.bf16.mxu1 %v503_v29 }
  0x20   :  { %445 = vmatpush3.bf16.msra.mxu0 %v504_v30 }
  0x21   :  { %467 = vmatpush3.bf16.msra.mxu1 %v505_v31 }
  0x23   :  { %323 = vmatmul.mubr.bf16.vlgmr.msra.gmra.mxu0 %v392_v34 }
  0x24   :  { %363 = vmatmul.mubr.bf16.vlgmr.msra.gmra.mxu1 %v394_v36 }
  0xe3   :  { %v446_v38 = vpop.f32.mrf.mxu0 }
  0xe4   :  { %v468_v39 = vpop.f32.mrf.mxu1 }
  0xe5   :  { %v447_v40 = vpop.f32.mrf.mxu0 }
  0xe6   :  { %v469_v41 = vpop.f32.mrf.mxu1  ;;  %v448_v42 = vadd.f32 %v447_v40, %v446_v38 }
  0xe7   :  { %v470_v43 = vadd.f32 %v469_v41, %v468_v39  ;;  %v449_v45 = vpop.f32.mrf.mxu0 }
  0xe8   :  { %v471_v46 = vpop.f32.mrf.mxu1 }
  0xe9   :  { %v365_v47 = vadd.f32 %v470_v43, %v448_v42  ;;  %v450_v49 = vpop.f32.mrf.mxu0 }
  0xea   :  { %v472_v50 = vpop.f32.mrf.mxu1 }
  0xeb   :  { %v377_v51 = vmul.f32 %v428_v44, %v365_v47 }
  0xed   :  { %v385_v52 = vadd.f32 %v429_v48, %v377_v51 }
  0xef   :  { %v386_v53 = vpack.c.bf16 %v385_v52, %v385_v52 }
  0xf1   :  { %387 = vst [vmem:[%s650_s4] sm:$0xf] %v386_v53 }

// kernel: forward.11
= control target key start
LH: loop header
LB: loop body
LE: loop exit
PB: predicated region body
PF: predicated region fallthrough
CT: control target
= control target key end

     0   :  { %vm2269_vm0 = vcmask 523264   ;;  %vm3339_vm1 = vmmov 0   ;;  %vm2469_vm2 = vcmask 261120   ;;  %vm2523_vm3 = vcmask 130048   ;;  %s4129_s2 = inlined_call_operand.vmem [shape: bf16[3072,128], index: 2, kind: input, shape index: {}]   ;;  %s4130_s0 = inlined_call_operand.vmem [shape: bf16[8,3072], index: 0, kind: input, shape index: {}]   ;;  %s4131_s4 = inlined_call_operand.vmem [shape: bf16[192,128], index: 4, kind: input, shape index: {}]   ;;  %s4132_s1 = inlined_call_operand.vmem [shape: bf16[8,192], index: 1, kind: input, shape index: {}]   ;;  %s4133_s3 = inlined_call_operand.vmem [shape: f32[1,128], index: 3, kind: input, shape index: {}]   ;;  %s4134_s6 = inlined_call_operand.vmem [shape: bf16[128,32], index: 6, kind: input, shape index: {}]   ;;  %s4135_s5 = inlined_call_operand.vmem [shape: f32[1,128], index: 5, kind: input, shape index: {}]   ;;  %s4136_s9 = inlined_call_operand.vmem [shape: bf16[32,16], index: 9, kind: input, shape index: {}]   ;;  %s4137_s7 = inlined_call_operand.vmem [shape: f32[1,32], index: 7, kind: input, shape index: {}]   ;;  %s4138_s8 = inlined_call_operand.vmem [shape: f32[1,32], index: 8, kind: input, shape index: {}]   ;;  %s4139_s12 = inlined_call_operand.<no memory space> [shape: f32[1,1], index: 12, kind: input, shape index: {}]   ;;  %s4140_s10 = inlined_call_operand.vmem [shape: f32[1,16], index: 10, kind: input, shape index: {}]   ;;  %s4141_s11 = inlined_call_operand.vmem [shape: f32[1,16], index: 11, kind: input, shape index: {}]   ;;  %s4142_s13 = inlined_call_operand.vmem [shape: f32[8,1], index: 13, kind: output, shape index: {}]  }
   0x1   :  { %v3097_v0 = vld [vmem:[%s4129_s2 + $0x78] sm:$0xff]   ;;  %v3101_v4 = vld [vmem:[%s4129_s2 + $0x70] sm:$0xff]   ;;  %v3105_v8 = vld [vmem:[%s4129_s2 + $0x68] sm:$0xff]   ;;  %vm2535_vm4 = vcmask 7168  }
   0x2   :  { %v3098_v1 = vld [vmem:[%s4129_s2 + $0x38] sm:$0xff]   ;;  %2790 = vmatprep.subr.bf16.mxu0 %v3097_v0  ;;  %v3102_v5 = vld [vmem:[%s4129_s2 + $0x30] sm:$0xff]   ;;  %v3106_v9 = vld [vmem:[%s4129_s2 + $0x28] sm:$0xff]  }
   0x3   :  { %v3099_v2 = vld [vmem:[%s4129_s2 + $0xf8] sm:$0xff]   ;;  %2791 = vmatpush3.bf16.msra.mxu0 %v3098_v1  ;;  %v3103_v6 = vld [vmem:[%s4129_s2 + $0xf0] sm:$0xff]   ;;  %v3107_v10 = vld [vmem:[%s4129_s2 + $0xe8] sm:$0xff]  }
   0x4   :  { %v3100_v3 = vld [vmem:[%s4129_s2 + $0xb8] sm:$0xff]   ;;  %2812 = vmatprep.subr.bf16.mxu1 %v3099_v2  ;;  %2792 = vmatprep.subr.bf16.mxu0 %v3101_v4  ;;  %v3104_v7 = vld [vmem:[%s4129_s2 + $0xb0] sm:$0xff]   ;;  %v3108_v11 = vld [vmem:[%s4129_s2 + $0xa8] sm:$0xff]  }
   0x5   :  { %2813 = vmatpush3.bf16.msra.mxu1 %v3100_v3  ;;  %v3109_v12 = vld [vmem:[%s4129_s2 + $0x60] sm:$0xff]   ;;  %v3113_v16 = vld [vmem:[%s4129_s2 + $0x58] sm:$0xff]   ;;  %v3117_v20 = vld [vmem:[%s4129_s2 + $0x50] sm:$0xff]  }
   0x6   :  { %2814 = vmatprep.subr.bf16.mxu1 %v3103_v6  ;;  %v3110_v13 = vld [vmem:[%s4129_s2 + $0x20] sm:$0xff]   ;;  %v3114_v17 = vld [vmem:[%s4129_s2 + $0x18] sm:$0xff]   ;;  %v3118_v21 = vld [vmem:[%s4129_s2 + $0x10] sm:$0xff]  }
   0x7   :  { %2793 = vmatpush3.bf16.msra.mxu0 %v3102_v5  ;;  %v3111_v14 = vld [vmem:[%s4129_s2 + $0xe0] sm:$0xff]   ;;  %v3115_v18 = vld [vmem:[%s4129_s2 + $0xd8] sm:$0xff]   ;;  %v3119_v22 = vld [vmem:[%s4129_s2 + $0xd0] sm:$0xff]  }
   0x8   :  { %2794 = vmatprep.subr.bf16.mxu0 %v3105_v8  ;;  %v3112_v15 = vld [vmem:[%s4129_s2 + $0xa0] sm:$0xff]   ;;  %v3116_v19 = vld [vmem:[%s4129_s2 + $0x98] sm:$0xff]   ;;  %v3120_v23 = vld [vmem:[%s4129_s2 + $0x90] sm:$0xff]  }
   0x9   :  { %2815 = vmatpush3.bf16.msra.mxu1 %v3104_v7  ;;  %v3121_v24 = vld [vmem:[%s4129_s2 + $0x48] sm:$0xff]   ;;  %v3125_v28 = vld [vmem:[%s4129_s2 + $0x40] sm:$0xff]   ;;  %v3131_v35 = vld [vmem:[%s4129_s2 + $0x178] sm:$0xff]  }
   0xa   :  { %2816 = vmatprep.subr.bf16.mxu1 %v3107_v10  ;;  %v3122_v25 = vld [vmem:[%s4129_s2 + $0x8] sm:$0xff]   ;;  %v3126_v29 = vld [vmem:[%s4129_s2] sm:$0xff]   ;;  %v3134_v39 = vld [vmem:[%s4129_s2 + $0x138] sm:$0xff]  }
   0xb   :  { %2795 = vmatpush3.bf16.msra.mxu0 %v3106_v9  ;;  %v3123_v26 = vld [vmem:[%s4129_s2 + $0xc8] sm:$0xff]   ;;  %v3127_v30 = vld [vmem:[%s4129_s2 + $0xc0] sm:$0xff]   ;;  %v3135_v40 = vld [vmem:[%s4129_s2 + $0x1f8] sm:$0xff]  }
   0xc   :  { %2796 = vmatprep.subr.bf16.mxu0 %v3109_v12  ;;  %v3124_v27 = vld [vmem:[%s4129_s2 + $0x88] sm:$0xff]   ;;  %v47_v31 = vld [vmem:[%s4130_s0] sm:$0xff]  ;;  %v3136_v41 = vld [vmem:[%s4129_s2 + $0x1b8] sm:$0xff]  }
   0xd   :  { %2817 = vmatpush3.bf16.msra.mxu1 %v3108_v11  ;;  %v2542_v32 = vcombine.low %v47_v31, %v47_v31  ;;  %v2543_v33 = vcombine.high %v47_v31, %v47_v31  ;;  %v3130_v34 = vld [vmem:[%s4129_s2 + $0x80] sm:$0xff]   ;;  %v48_v36 = vld [vmem:[%s4130_s0 + $0x8] sm:$0xff]  ;;  %v3137_v42 = vld [vmem:[%s4129_s2 + $0x170] sm:$0xff]  }
   0xe   :  { %2818 = vmatprep.subr.bf16.mxu1 %v3111_v14  ;;  %v2544_v37 = vcombine.low %v48_v36, %v48_v36  ;;  %v2545_v38 = vcombine.high %v48_v36, %v48_v36  ;;  %v3138_v43 = vld [vmem:[%s4129_s2 + $0x130] sm:$0xff]   ;;  %v3141_v46 = vld [vmem:[%s4129_s2 + $0x168] sm:$0xff]   ;;  %v3145_v50 = vld [vmem:[%s4129_s2 + $0x160] sm:$0xff]  }
   0xf   :  { %2797 = vmatpush3.bf16.msra.mxu0 %v3110_v13  ;;  %1718 = vmatprep.mubr.bf16.mxu0 %v2543_v33  ;;  %v3139_v44 = vld [vmem:[%s4129_s2 + $0x1f0] sm:$0xff]   ;;  %v3142_v47 = vld [vmem:[%s4129_s2 + $0x128] sm:$0xff]   ;;  %v3146_v51 = vld [vmem:[%s4129_s2 + $0x120] sm:$0xff]  }
  0x10   :  { %2798 = vmatprep.subr.bf16.mxu0 %v3113_v16  ;;  %1758 = vmatprep.mubr.bf16.mxu1 %v2545_v38  ;;  %v3140_v45 = vld [vmem:[%s4129_s2 + $0x1b0] sm:$0xff]   ;;  %v3143_v48 = vld [vmem:[%s4129_s2 + $0x1e8] sm:$0xff]   ;;  %v3147_v52 = vld [vmem:[%s4129_s2 + $0x1e0] sm:$0xff]  }
  0x11   :  { %2819 = vmatpush3.bf16.msra.mxu1 %v3112_v15  ;;  %v3144_v49 = vld [vmem:[%s4129_s2 + $0x1a8] sm:$0xff]   ;;  %v3148_v53 = vld [vmem:[%s4129_s2 + $0x1a0] sm:$0xff]   ;;  %v3149_v54 = vld [vmem:[%s4129_s2 + $0x158] sm:$0xff]  }
  0x12   :  { %2820 = vmatprep.subr.bf16.mxu1 %v3115_v18  ;;  %v3150_v55 = vld [vmem:[%s4129_s2 + $0x118] sm:$0xff]   ;;  %v3153_v58 = vld [vmem:[%s4129_s2 + $0x150] sm:$0xff]   ;;  %v3157_v62 = vld [vmem:[%s4129_s2 + $0x148] sm:$0xff]  }
  0x13   :  { %2799 = vmatpush3.bf16.msra.mxu0 %v3114_v17  ;;  %v3151_v56 = vld [vmem:[%s4129_s2 + $0x1d8] sm:$0xff]   ;;  %v3154_v59 = vld [vmem:[%s4129_s2 + $0x110] sm:$0xff]   ;;  %v3158_v63 = vld [vmem:[%s4129_s2 + $0x108] sm:$0xff]  }
  0x14   :  { %2800 = vmatprep.subr.bf16.mxu0 %v3117_v20  ;;  %v3152_v57 = vld [vmem:[%s4129_s2 + $0x198] sm:$0xff]   ;;  %v3155_v60 = vld [vmem:[%s4129_s2 + $0x1d0] sm:$0xff]   ;;  %v3159_v0 = vld [vmem:[%s4129_s2 + $0x1c8] sm:$0xff]  }
  0x15   :  { %2821 = vmatpush3.bf16.msra.mxu1 %v3116_v19  ;;  %v3156_v61 = vld [vmem:[%s4129_s2 + $0x190] sm:$0xff]   ;;  %v3160_v1 = vld [vmem:[%s4129_s2 + $0x188] sm:$0xff]   ;;  %v3161_v2 = vld [vmem:[%s4129_s2 + $0x140] sm:$0xff]  }
  0x16   :  { %2822 = vmatprep.subr.bf16.mxu1 %v3119_v22  ;;  %v3162_v3 = vld [vmem:[%s4129_s2 + $0x100] sm:$0xff]   ;;  %v49_v5 = vld [vmem:[%s4130_s0 + $0x10] sm:$0xff]  ;;  %v3167_v9 = vld [vmem:[%s4129_s2 + $0x278] sm:$0xff]  }
  0x17   :  { %2801 = vmatpush3.bf16.msra.mxu0 %v3118_v21  ;;  %v3163_v4 = vld [vmem:[%s4129_s2 + $0x1c0] sm:$0xff]   ;;  %v2546_v6 = vcombine.low %v49_v5, %v49_v5  ;;  %v2547_v7 = vcombine.high %v49_v5, %v49_v5  ;;  %v50_v10 = vld [vmem:[%s4130_s0 + $0x18] sm:$0xff]  ;;  %v3173_v16 = vld [vmem:[%s4129_s2 + $0x270] sm:$0xff]  }
  0x18   :  { %2802 = vmatprep.subr.bf16.mxu0 %v3121_v24  ;;  %v3166_v8 = vld [vmem:[%s4129_s2 + $0x180] sm:$0xff]   ;;  %v2548_v11 = vcombine.low %v50_v10, %v50_v10  ;;  %v2549_v12 = vcombine.high %v50_v10, %v50_v10  ;;  %v3170_v13 = vld [vmem:[%s4129_s2 + $0x238] sm:$0xff]   ;;  %v3174_v17 = vld [vmem:[%s4129_s2 + $0x230] sm:$0xff]  }
  0x19   :  { %2823 = vmatpush3.bf16.msra.mxu1 %v3120_v23  ;;  %v3171_v14 = vld [vmem:[%s4129_s2 + $0x2f8] sm:$0xff]   ;;  %v3175_v18 = vld [vmem:[%s4129_s2 + $0x2f0] sm:$0xff]   ;;  %v3177_v20 = vld [vmem:[%s4129_s2 + $0x268] sm:$0xff]  }
  0x1a   :  { %2824 = vmatprep.subr.bf16.mxu1 %v3123_v26  ;;  %v3172_v15 = vld [vmem:[%s4129_s2 + $0x2b8] sm:$0xff]   ;;  %v3176_v19 = vld [vmem:[%s4129_s2 + $0x2b0] sm:$0xff]   ;;  %v3178_v21 = vld [vmem:[%s4129_s2 + $0x228] sm:$0xff]  }
  0x1b   :  { %2803 = vmatpush3.bf16.msra.mxu0 %v3122_v25  ;;  %v3179_v22 = vld [vmem:[%s4129_s2 + $0x2e8] sm:$0xff]   ;;  %v3181_v24 = vld [vmem:[%s4129_s2 + $0x260] sm:$0xff]   ;;  %v3188_v31 = vld [vmem:[%s4129_s2 + $0x298] sm:$0xff]  }
  0x1c   :  { %2804 = vmatprep.subr.bf16.mxu0 %v3125_v28  ;;  %v3180_v23 = vld [vmem:[%s4129_s2 + $0x2a8] sm:$0xff]   ;;  %v3182_v25 = vld [vmem:[%s4129_s2 + $0x220] sm:$0xff]   ;;  %v3185_v28 = vld [vmem:[%s4129_s2 + $0x258] sm:$0xff]  }
  0x1d   :  { %2825 = vmatpush3.bf16.msra.mxu1 %v3124_v27  ;;  %v3183_v26 = vld [vmem:[%s4129_s2 + $0x2e0] sm:$0xff]   ;;  %v3190_v33 = vld [vmem:[%s4129_s2 + $0x210] sm:$0xff]   ;;  %v3193_v36 = vld [vmem:[%s4129_s2 + $0x248] sm:$0xff]  }
  0x1e   :  { %2826 = vmatprep.subr.bf16.mxu1 %v3127_v30  ;;  %v3184_v27 = vld [vmem:[%s4129_s2 + $0x2a0] sm:$0xff]   ;;  %v3187_v30 = vld [vmem:[%s4129_s2 + $0x2d8] sm:$0xff]   ;;  %v3195_v38 = vld [vmem:[%s4129_s2 + $0x2c8] sm:$0xff]  }
  0x1f   :  { %2805 = vmatpush3.bf16.msra.mxu0 %v3126_v29  ;;  %v3186_v29 = vld [vmem:[%s4129_s2 + $0x218] sm:$0xff]   ;;  %v3229_v10 = vld [vmem:[%s4129_s2 + $0x348] sm:$0xff]  }
  0x20   :  { %2834 = vmatprep.subr.bf16.mxu0 %v3131_v35  ;;  %v3192_v35 = vld [vmem:[%s4129_s2 + $0x290] sm:$0xff]   ;;  %v3224_v5 = vld [vmem:[%s4129_s2 + $0x398] sm:$0xff]  }
  0x21   :  { %2827 = vmatpush3.bf16.msra.mxu1 %v3130_v34  ;;  %v3191_v34 = vld [vmem:[%s4129_s2 + $0x2d0] sm:$0xff]  }
  0x22   :  { %1719 = vmatmul.mubr.bf16.vlgmr.msra.gmra.mxu0 %v2542_v32  ;;  %2856 = vmatprep.subr.bf16.mxu1 %v3135_v40  ;;  %v3189_v32 = vld [vmem:[%s4129_s2 + $0x250] sm:$0xff]   ;;  %v3197_v40 = vld [vmem:[%s4129_s2 + $0x240] sm:$0xff]  }
  0x23   :  { %2835 = vmatpush3.bf16.msra.mxu0 %v3134_v39  ;;  %1798 = vmatprep.mubr.bf16.mxu0 %v2547_v7  ;;  %v3196_v39 = vld [vmem:[%s4129_s2 + $0x288] sm:$0xff]   ;;  %v3226_v7 = vld [vmem:[%s4129_s2 + $0x310] sm:$0xff]  }
  0x24   :  { %1759 = vmatmul.mubr.bf16.vlgmr.msra.gmra.mxu1 %v2544_v37  ;;  %2836 = vmatprep.subr.bf16.mxu0 %v3137_v42  ;;  %v3194_v37 = vld [vmem:[%s4129_s2 + $0x208] sm:$0xff]   ;;  %v3199_v42 = vld [vmem:[%s4129_s2 + $0x2c0] sm:$0xff]  }
  0x25   :  { %2857 = vmatpush3.bf16.msra.mxu1 %v3136_v41  ;;  %1838 = vmatprep.mubr.bf16.mxu1 %v2549_v12  ;;  %v3198_v41 = vld [vmem:[%s4129_s2 + $0x200] sm:$0xff]   ;;  %v3231_v12 = vld [vmem:[%s4129_s2 + $0x3c8] sm:$0xff]  }
  0x26   :  { %2858 = vmatprep.subr.bf16.mxu1 %v3139_v44 }
  0x27   :  { %2837 = vmatpush3.bf16.msra.mxu0 %v3138_v43  ;;  %v51_v43 = vld [vmem:[%s4130_s0 + $0x20] sm:$0xff] }
  0x28   :  { %2838 = vmatprep.subr.bf16.mxu0 %v3141_v46  ;;  %v2550_v44 = vcombine.low %v51_v43, %v51_v43  ;;  %v3202_v46 = vld [vmem:[%s4129_s2 + $0x280] sm:$0xff]  }
  0x29   :  { %2859 = vmatpush3.bf16.msra.mxu1 %v3140_v45  ;;  %v2551_v45 = vcombine.high %v51_v43, %v51_v43  ;;  %v3260_v43 = vld [vmem:[%s4129_s2 + $0x498] sm:$0xff]  }
  0x2a   :  { %2860 = vmatprep.subr.bf16.mxu1 %v3143_v48  ;;  %v52_v48 = vld [vmem:[%s4130_s0 + $0x28] sm:$0xff] }
  0x2b   :  { %2839 = vmatpush3.bf16.msra.mxu0 %v3142_v47  ;;  %v3203_v47 = vld [vmem:[%s4129_s2 + $0x378] sm:$0xff]  }
  0x2c   :  { %2840 = vmatprep.subr.bf16.mxu0 %v3145_v50  ;;  %v2553_v50 = vcombine.high %v52_v48, %v52_v48 }
  0x2d   :  { %2861 = vmatpush3.bf16.msra.mxu1 %v3144_v49  ;;  %v2552_v49 = vcombine.low %v52_v48, %v52_v48  ;;  %v3265_v48 = vld [vmem:[%s4129_s2 + $0x448] sm:$0xff]  }
  0x2e   :  { %2862 = vmatprep.subr.bf16.mxu1 %v3147_v52  ;;  %v3207_v52 = vld [vmem:[%s4129_s2 + $0x3f8] sm:$0xff]  }
  0x2f   :  { %2841 = vmatpush3.bf16.msra.mxu0 %v3146_v51  ;;  %v3206_v51 = vld [vmem:[%s4129_s2 + $0x338] sm:$0xff]  }
  0x30   :  { %2842 = vmatprep.subr.bf16.mxu0 %v3149_v54  ;;  %v3209_v54 = vld [vmem:[%s4129_s2 + $0x370] sm:$0xff]  }
  0x31   :  { %2863 = vmatpush3.bf16.msra.mxu1 %v3148_v53  ;;  %v3208_v53 = vld [vmem:[%s4129_s2 + $0x3b8] sm:$0xff]  }
  0x32   :  { %2864 = vmatprep.subr.bf16.mxu1 %v3151_v56  ;;  %v3211_v56 = vld [vmem:[%s4129_s2 + $0x3f0] sm:$0xff]  }
  0x33   :  { %2843 = vmatpush3.bf16.msra.mxu0 %v3150_v55  ;;  %v3210_v55 = vld [vmem:[%s4129_s2 + $0x330] sm:$0xff]  }
  0x34   :  { %2844 = vmatprep.subr.bf16.mxu0 %v3153_v58  ;;  %v3213_v58 = vld [vmem:[%s4129_s2 + $0x368] sm:$0xff]  }
  0x35   :  { %2865 = vmatpush3.bf16.msra.mxu1 %v3152_v57  ;;  %v3212_v57 = vld [vmem:[%s4129_s2 + $0x3b0] sm:$0xff]  }
  0x36   :  { %2866 = vmatprep.subr.bf16.mxu1 %v3155_v60  ;;  %v3215_v60 = vld [vmem:[%s4129_s2 + $0x3e8] sm:$0xff]  }
  0x37   :  { %2845 = vmatpush3.bf16.msra.mxu0 %v3154_v59  ;;  %v3214_v59 = vld [vmem:[%s4129_s2 + $0x328] sm:$0xff]  }
  0x38   :  { %2846 = vmatprep.subr.bf16.mxu0 %v3157_v62  ;;  %v3217_v62 = vld [vmem:[%s4129_s2 + $0x360] sm:$0xff]  }
  0x39   :  { %2867 = vmatpush3.bf16.msra.mxu1 %v3156_v61  ;;  %v3216_v61 = vld [vmem:[%s4129_s2 + $0x3a8] sm:$0xff]  }
  0x3a   :  { %2868 = vmatprep.subr.bf16.mxu1 %v3159_v0  ;;  %v3219_v0 = vld [vmem:[%s4129_s2 + $0x3e0] sm:$0xff]  }
  0x3b   :  { %2847 = vmatpush3.bf16.msra.mxu0 %v3158_v63  ;;  %v3218_v63 = vld [vmem:[%s4129_s2 + $0x320] sm:$0xff]  }
  0x3c   :  { %2848 = vmatprep.subr.bf16.mxu0 %v3161_v2  ;;  %v3221_v2 = vld [vmem:[%s4129_s2 + $0x358] sm:$0xff]  }
  0x3d   :  { %2869 = vmatpush3.bf16.msra.mxu1 %v3160_v1  ;;  %v3220_v1 = vld [vmem:[%s4129_s2 + $0x3a0] sm:$0xff]  }
  0x3e   :  { %2870 = vmatprep.subr.bf16.mxu1 %v3163_v4  ;;  %v3223_v4 = vld [vmem:[%s4129_s2 + $0x3d8] sm:$0xff]  }
  0x3f   :  { %2849 = vmatpush3.bf16.msra.mxu0 %v3162_v3  ;;  %v3222_v3 = vld [vmem:[%s4129_s2 + $0x318] sm:$0xff]  }
  0x40   :  { %2878 = vmatprep.subr.bf16.mxu0 %v3167_v9  ;;  %v3228_v9 = vld [vmem:[%s4129_s2 + $0x390] sm:$0xff]  }
  0x41   :  { %2871 = vmatpush3.bf16.msra.mxu1 %v3166_v8  ;;  %v3227_v8 = vld [vmem:[%s4129_s2 + $0x3d0] sm:$0xff]  }
  0x42   :  { %1799 = vmatmul.mubr.bf16.vlgmr.msra.gmra.mxu0 %v2546_v6  ;;  %2900 = vmatprep.subr.bf16.mxu1 %v3171_v14  ;;  %v3225_v6 = vld [vmem:[%s4129_s2 + $0x350] sm:$0xff]   ;;  %v3233_v14 = vld [vmem:[%s4129_s2 + $0x340] sm:$0xff]  }
  0x43   :  { %2879 = vmatpush3.bf16.msra.mxu0 %v3170_v13  ;;  %1878 = vmatprep.mubr.bf16.mxu0 %v2551_v45  ;;  %v3232_v13 = vld [vmem:[%s4129_s2 + $0x388] sm:$0xff]   ;;  %v3262_v45 = vld [vmem:[%s4129_s2 + $0x410] sm:$0xff]  }
  0x44   :  { %1839 = vmatmul.mubr.bf16.vlgmr.msra.gmra.mxu1 %v2548_v11  ;;  %2880 = vmatprep.subr.bf16.mxu0 %v3173_v16  ;;  %v3230_v11 = vld [vmem:[%s4129_s2 + $0x308] sm:$0xff]   ;;  %v3235_v16 = vld [vmem:[%s4129_s2 + $0x3c0] sm:$0xff]  }
  0x45   :  { %2901 = vmatpush3.bf16.msra.mxu1 %v3172_v15  ;;  %1918 = vmatprep.mubr.bf16.mxu1 %v2553_v50  ;;  %v3234_v15 = vld [vmem:[%s4129_s2 + $0x300] sm:$0xff]   ;;  %v3267_v50 = vld [vmem:[%s4129_s2 + $0x4c8] sm:$0xff]  }
  0x46   :  { %2902 = vmatprep.subr.bf16.mxu1 %v3175_v18 }
  0x47   :  { %2881 = vmatpush3.bf16.msra.mxu0 %v3174_v17  ;;  %v53_v17 = vld [vmem:[%s4130_s0 + $0x30] sm:$0xff] }
  0x48   :  { %2882 = vmatprep.subr.bf16.mxu0 %v3177_v20  ;;  %v2554_v18 = vcombine.low %v53_v17, %v53_v17  ;;  %v3238_v20 = vld [vmem:[%s4129_s2 + $0x380] sm:$0xff]  }
  0x49   :  { %2903 = vmatpush3.bf16.msra.mxu1 %v3176_v19  ;;  %v2555_v19 = vcombine.high %v53_v17, %v53_v17  ;;  %v3296_v17 = vld [vmem:[%s4129_s2 + $0x598] sm:$0xff]  }
  0x4a   :  { %2904 = vmatprep.subr.bf16.mxu1 %v3179_v22  ;;  %v54_v22 = vld [vmem:[%s4130_s0 + $0x38] sm:$0xff] }
  0x4b   :  { %2883 = vmatpush3.bf16.msra.mxu0 %v3178_v21  ;;  %v3239_v21 = vld [vmem:[%s4129_s2 + $0x478] sm:$0xff]  }
  0x4c   :  { %2884 = vmatprep.subr.bf16.mxu0 %v3181_v24  ;;  %v2557_v24 = vcombine.high %v54_v22, %v54_v22 }
  0x4d   :  { %2905 = vmatpush3.bf16.msra.mxu1 %v3180_v23  ;;  %v2556_v23 = vcombine.low %v54_v22, %v54_v22  ;;  %v3301_v22 = vld [vmem:[%s4129_s2 + $0x548] sm:$0xff]  }
  0x4e   :  { %2906 = vmatprep.subr.bf16.mxu1 %v3183_v26  ;;  %v3243_v26 = vld [vmem:[%s4129_s2 + $0x4f8] sm:$0xff]  }
  0x4f   :  { %2885 = vmatpush3.bf16.msra.mxu0 %v3182_v25  ;;  %v3242_v25 = vld [vmem:[%s4129_s2 + $0x438] sm:$0xff]  }
  0x50   :  { %2886 = vmatprep.subr.bf16.mxu0 %v3185_v28  ;;  %v3245_v28 = vld [vmem:[%s4129_s2 + $0x470] sm:$0xff]  }
  0x51   :  { %2907 = vmatpush3.bf16.msra.mxu1 %v3184_v27  ;;  %v3244_v27 = vld [vmem:[%s4129_s2 + $0x4b8] sm:$0xff]  }
  0x52   :  { %2908 = vmatprep.subr.bf16.mxu1 %v3187_v30  ;;  %v3247_v30 = vld [vmem:[%s4129_s2 + $0x4f0] sm:$0xff]  }
  0x53   :  { %2887 = vmatpush3.bf16.msra.mxu0 %v3186_v29  ;;  %v3246_v29 = vld [vmem:[%s4129_s2 + $0x430] sm:$0xff]  }
  0x54   :  { %2888 = vmatprep.subr.bf16.mxu0 %v3189_v32  ;;  %v3249_v32 = vld [vmem:[%s4129_s2 + $0x468] sm:$0xff]  }
  0x55   :  { %2909 = vmatpush3.bf16.msra.mxu1 %v3188_v31  ;;  %v3248_v31 = vld [vmem:[%s4129_s2 + $0x4b0] sm:$0xff]  }
  0x56   :  { %2910 = vmatprep.subr.bf16.mxu1 %v3191_v34  ;;  %v3251_v34 = vld [vmem:[%s4129_s2 + $0x4e8] sm:$0xff]  }
  0x57   :  { %2889 = vmatpush3.bf16.msra.mxu0 %v3190_v33  ;;  %v3250_v33 = vld [vmem:[%s4129_s2 + $0x428] sm:$0xff]  }
  0x58   :  { %2890 = vmatprep.subr.bf16.mxu0 %v3193_v36  ;;  %v3253_v36 = vld [vmem:[%s4129_s2 + $0x460] sm:$0xff]  }
  0x59   :  { %2911 = vmatpush3.bf16.msra.mxu1 %v3192_v35  ;;  %v3252_v35 = vld [vmem:[%s4129_s2 + $0x4a8] sm:$0xff]  }
  0x5a   :  { %2912 = vmatprep.subr.bf16.mxu1 %v3195_v38  ;;  %v3255_v38 = vld [vmem:[%s4129_s2 + $0x4e0] sm:$0xff]  }
  0x5b   :  { %2891 = vmatpush3.bf16.msra.mxu0 %v3194_v37  ;;  %v3254_v37 = vld [vmem:[%s4129_s2 + $0x420] sm:$0xff]  }
  0x5c   :  { %2892 = vmatprep.subr.bf16.mxu0 %v3197_v40  ;;  %v3257_v40 = vld [vmem:[%s4129_s2 + $0x458] sm:$0xff]  }
  0x5d   :  { %2913 = vmatpush3.bf16.msra.mxu1 %v3196_v39  ;;  %v3256_v39 = vld [vmem:[%s4129_s2 + $0x4a0] sm:$0xff]  }
  0x5e   :  { %2914 = vmatprep.subr.bf16.mxu1 %v3199_v42  ;;  %v3259_v42 = vld [vmem:[%s4129_s2 + $0x4d8] sm:$0xff]  }
  0x5f   :  { %2893 = vmatpush3.bf16.msra.mxu0 %v3198_v41  ;;  %v3258_v41 = vld [vmem:[%s4129_s2 + $0x418] sm:$0xff]  }
  0x60   :  { %2922 = vmatprep.subr.bf16.mxu0 %v3203_v47  ;;  %v3264_v47 = vld [vmem:[%s4129_s2 + $0x490] sm:$0xff]  }
  0x61   :  { %2915 = vmatpush3.bf16.msra.mxu1 %v3202_v46  ;;  %v3263_v46 = vld [vmem:[%s4129_s2 + $0x4d0] sm:$0xff]  }
  0x62   :  { %1879 = vmatmul.mubr.bf16.vlgmr.msra.gmra.mxu0 %v2550_v44  ;;  %2944 = vmatprep.subr.bf16.mxu1 %v3207_v52  ;;  %v3261_v44 = vld [vmem:[%s4129_s2 + $0x450] sm:$0xff]   ;;  %v3269_v52 = vld [vmem:[%s4129_s2 + $0x440] sm:$0xff]  }
  0x63   :  { %2923 = vmatpush3.bf16.msra.mxu0 %v3206_v51  ;;  %1958 = vmatprep.mubr.bf16.mxu0 %v2555_v19  ;;  %v3268_v51 = vld [vmem:[%s4129_s2 + $0x488] sm:$0xff]   ;;  %v3298_v19 = vld [vmem:[%s4129_s2 + $0x510] sm:$0xff]  }
  0x64   :  { %1919 = vmatmul.mubr.bf16.vlgmr.msra.gmra.mxu1 %v2552_v49  ;;  %2924 = vmatprep.subr.bf16.mxu0 %v3209_v54  ;;  %v3266_v49 = vld [vmem:[%s4129_s2 + $0x408] sm:$0xff]   ;;  %v3271_v54 = vld [vmem:[%s4129_s2 + $0x4c0] sm:$0xff]  }
  0x65   :  { %2945 = vmatpush3.bf16.msra.mxu1 %v3208_v53  ;;  %1998 = vmatprep.mubr.bf16.mxu1 %v2557_v24  ;;  %v3270_v53 = vld [vmem:[%s4129_s2 + $0x400] sm:$0xff]   ;;  %v3303_v24 = vld [vmem:[%s4129_s2 + $0x5c8] sm:$0xff]  }
  0x66   :  { %2946 = vmatprep.subr.bf16.mxu1 %v3211_v56 }
  0x67   :  { %2925 = vmatpush3.bf16.msra.mxu0 %v3210_v55  ;;  %v55_v55 = vld [vmem:[%s4130_s0 + $0x40] sm:$0xff] }
  0x68   :  { %2926 = vmatprep.subr.bf16.mxu0 %v3213_v58  ;;  %v2558_v56 = vcombine.low %v55_v55, %v55_v55  ;;  %v3274_v58 = vld [vmem:[%s4129_s2 + $0x480] sm:$0xff]  }
  0x69   :  { %2947 = vmatpush3.bf16.msra.mxu1 %v3212_v57  ;;  %v2559_v57 = vcombine.high %v55_v55, %v55_v55  ;;  %v3322_v55 = vld [vmem:[%s4131_s4 + $0x50] sm:$0xff]  }
  0x6a   :  { %2948 = vmatprep.subr.bf16.mxu1 %v3215_v60  ;;  %v56_v60 = vld [vmem:[%s4130_s0 + $0x48] sm:$0xff] }
  0x6b   :  { %2927 = vmatpush3.bf16.msra.mxu0 %v3214_v59  ;;  %v3275_v59 = vld [vmem:[%s4129_s2 + $0x578] sm:$0xff]  }
  0x6c   :  { %2928 = vmatprep.subr.bf16.mxu0 %v3217_v62  ;;  %v2561_v62 = vcombine.high %v56_v60, %v56_v60 }
  0x6d   :  { %2949 = vmatpush3.bf16.msra.mxu1 %v3216_v61  ;;  %v2560_v61 = vcombine.low %v56_v60, %v56_v60 }
  0x6e   :  { %2950 = vmatprep.subr.bf16.mxu1 %v3219_v0  ;;  %v3279_v0 = vld [vmem:[%s4129_s2 + $0x5f8] sm:$0xff]  }
  0x6f   :  { %2929 = vmatpush3.bf16.msra.mxu0 %v3218_v63  ;;  %v3278_v63 = vld [vmem:[%s4129_s2 + $0x538] sm:$0xff]  }
  0x70   :  { %2930 = vmatprep.subr.bf16.mxu0 %v3221_v2  ;;  %v3281_v2 = vld [vmem:[%s4129_s2 + $0x570] sm:$0xff]  }
  0x71   :  { %2951 = vmatpush3.bf16.msra.mxu1 %v3220_v1  ;;  %v3280_v1 = vld [vmem:[%s4129_s2 + $0x5b8] sm:$0xff]  }
  0x72   :  { %2952 = vmatprep.subr.bf16.mxu1 %v3223_v4  ;;  %v3283_v4 = vld [vmem:[%s4129_s2 + $0x5f0] sm:$0xff]  }
  0x73   :  { %2931 = vmatpush3.bf16.msra.mxu0 %v3222_v3  ;;  %v3282_v3 = vld [vmem:[%s4129_s2 + $0x530] sm:$0xff]  }
  0x74   :  { %2932 = vmatprep.subr.bf16.mxu0 %v3225_v6  ;;  %v3285_v6 = vld [vmem:[%s4129_s2 + $0x568] sm:$0xff]  }
  0x75   :  { %2953 = vmatpush3.bf16.msra.mxu1 %v3224_v5  ;;  %v3284_v5 = vld [vmem:[%s4129_s2 + $0x5b0] sm:$0xff]  }
  0x76   :  { %2954 = vmatprep.subr.bf16.mxu1 %v3227_v8  ;;  %v3287_v8 = vld [vmem:[%s4129_s2 + $0x5e8] sm:$0xff]  }
  0x77   :  { %2933 = vmatpush3.bf16.msra.mxu0 %v3226_v7  ;;  %v3286_v7 = vld [vmem:[%s4129_s2 + $0x528] sm:$0xff]  }
  0x78   :  { %2934 = vmatprep.subr.bf16.mxu0 %v3229_v10  ;;  %v3289_v10 = vld [vmem:[%s4129_s2 + $0x560] sm:$0xff]  }
  0x79   :  { %2955 = vmatpush3.bf16.msra.mxu1 %v3228_v9  ;;  %v3288_v9 = vld [vmem:[%s4129_s2 + $0x5a8] sm:$0xff]  }
  0x7a   :  { %2956 = vmatprep.subr.bf16.mxu1 %v3231_v12  ;;  %v3291_v12 = vld [vmem:[%s4129_s2 + $0x5e0] sm:$0xff]  }
  0x7b   :  { %2935 = vmatpush3.bf16.msra.mxu0 %v3230_v11  ;;  %v3290_v11 = vld [vmem:[%s4129_s2 + $0x520] sm:$0xff]  }
  0x7c   :  { %2936 = vmatprep.subr.bf16.mxu0 %v3233_v14  ;;  %v3293_v14 = vld [vmem:[%s4129_s2 + $0x558] sm:$0xff]  }
  0x7d   :  { %2957 = vmatpush3.bf16.msra.mxu1 %v3232_v13  ;;  %v3292_v13 = vld [vmem:[%s4129_s2 + $0x5a0] sm:$0xff]  }
  0x7e   :  { %2958 = vmatprep.subr.bf16.mxu1 %v3235_v16  ;;  %v3295_v16 = vld [vmem:[%s4129_s2 + $0x5d8] sm:$0xff]  }
  0x7f   :  { %2937 = vmatpush3.bf16.msra.mxu0 %v3234_v15  ;;  %v3294_v15 = vld [vmem:[%s4129_s2 + $0x518] sm:$0xff]  }
  0x80   :  { %2966 = vmatprep.subr.bf16.mxu0 %v3239_v21  ;;  %v3300_v21 = vld [vmem:[%s4129_s2 + $0x590] sm:$0xff]  }
  0x81   :  { %2959 = vmatpush3.bf16.msra.mxu1 %v3238_v20  ;;  %v3299_v20 = vld [vmem:[%s4129_s2 + $0x5d0] sm:$0xff]  }
  0x82   :  { %1959 = vmatmul.mubr.bf16.vlgmr.msra.gmra.mxu0 %v2554_v18  ;;  %2988 = vmatprep.subr.bf16.mxu1 %v3243_v26  ;;  %v3297_v18 = vld [vmem:[%s4129_s2 + $0x550] sm:$0xff]   ;;  %v3305_v26 = vld [vmem:[%s4129_s2 + $0x540] sm:$0xff]  }
  0x83   :  { %2967 = vmatpush3.bf16.msra.mxu0 %v3242_v25  ;;  %2038 = vmatprep.mubr.bf16.mxu0 %v2559_v57  ;;  %v3304_v25 = vld [vmem:[%s4129_s2 + $0x588] sm:$0xff]  }
  0x84   :  { %1999 = vmatmul.mubr.bf16.vlgmr.msra.gmra.mxu1 %v2556_v23  ;;  %2968 = vmatprep.subr.bf16.mxu0 %v3245_v28  ;;  %v3302_v23 = vld [vmem:[%s4129_s2 + $0x508] sm:$0xff]   ;;  %v3307_v28 = vld [vmem:[%s4129_s2 + $0x5c0] sm:$0xff]  }
  0x85   :  { %2989 = vmatpush3.bf16.msra.mxu1 %v3244_v27  ;;  %2078 = vmatprep.mubr.bf16.mxu1 %v2561_v62  ;;  %v3306_v27 = vld [vmem:[%s4129_s2 + $0x500] sm:$0xff]  }
  0x86   :  { %2990 = vmatprep.subr.bf16.mxu1 %v3247_v30 }
  0x87   :  { %2969 = vmatpush3.bf16.msra.mxu0 %v3246_v29  ;;  %v57_v29 = vld [vmem:[%s4130_s0 + $0x50] sm:$0xff] }
  0x88   :  { %2970 = vmatprep.subr.bf16.mxu0 %v3249_v32  ;;  %v2562_v30 = vcombine.low %v57_v29, %v57_v29  ;;  %v3310_v32 = vld [vmem:[%s4129_s2 + $0x580] sm:$0xff]  }
  0x89   :  { %2991 = vmatpush3.bf16.msra.mxu1 %v3248_v31  ;;  %v2563_v31 = vcombine.high %v57_v29, %v57_v29 }
  0x8a   :  { %2992 = vmatprep.subr.bf16.mxu1 %v3251_v34  ;;  %v3337_v34 = vmov 0  }
  0x8b   :  { %2971 = vmatpush3.bf16.msra.mxu0 %v3250_v33  ;;  %v58_v33 = vld [vmem:[%s4130_s0 + $0x58] sm:$0xff] }
  0x8c   :  { %2972 = vmatprep.subr.bf16.mxu0 %v3253_v36  ;;  %v2565_v36 = vcombine.high %v58_v33, %v58_v33 }
  0x8d   :  { %2993 = vmatpush3.bf16.msra.mxu1 %v3252_v35  ;;  %v2564_v35 = vcombine.low %v58_v33, %v58_v33  ;;  %v3334_v33 = vld [vmem:[%s4134_s6] sm:$0xff]  }
  0x8e   :  { %2994 = vmatprep.subr.bf16.mxu1 %v3255_v38  ;;  %v3314_v38 = vld [vmem:[%s4131_s4 + $0x30] sm:$0xff]  }
  0x8f   :  { %2973 = vmatpush3.bf16.msra.mxu0 %v3254_v37  ;;  %v3313_v37 = vld [vmem:[%s4131_s4 + $0x38] sm:$0xff]  }
  0x90   :  { %2974 = vmatprep.subr.bf16.mxu0 %v3257_v40  ;;  %v3316_v40 = vld [vmem:[%s4131_s4 + $0x20] sm:$0xff]  }
  0x91   :  { %2995 = vmatpush3.bf16.msra.mxu1 %v3256_v39  ;;  %v3315_v39 = vld [vmem:[%s4131_s4 + $0x28] sm:$0xff]  }
  0x92   :  { %2996 = vmatprep.subr.bf16.mxu1 %v3259_v42 }
  0x93   :  { %2975 = vmatpush3.bf16.msra.mxu0 %v3258_v41  ;;  %v2166_v41 = vld [vmem:[%s4132_s1] sm:$0xff] }
  0x94   :  { %2976 = vmatprep.subr.bf16.mxu0 %v3261_v44  ;;  %v2759_v42 = vcombine.high %v2166_v41, %v2166_v41  ;;  %v3318_v44 = vld [vmem:[%s4131_s4 + $0x10] sm:$0xff]  }
  0x95   :  { %2997 = vmatpush3.bf16.msra.mxu1 %v3260_v43  ;;  %v3317_v43 = vld [vmem:[%s4131_s4 + $0x18] sm:$0xff]  }
  0x96   :  { %2998 = vmatprep.subr.bf16.mxu1 %v3263_v46  ;;  %v3320_v46 = vld [vmem:[%s4131_s4] sm:$0xff]  }
  0x97   :  { %2977 = vmatpush3.bf16.msra.mxu0 %v3262_v45  ;;  %v3319_v45 = vld [vmem:[%s4131_s4 + $0x8] sm:$0xff]  }
  0x98   :  { %2978 = vmatprep.subr.bf16.mxu0 %v3265_v48  ;;  %v3321_v48 = vld [vmem:[%s4131_s4 + $0x58] sm:$0xff]  }
  0x99   :  { %2999 = vmatpush3.bf16.msra.mxu1 %v3264_v47 }
  0x9a   :  { %3000 = vmatprep.subr.bf16.mxu1 %v3267_v50 }
  0x9b   :  { %2979 = vmatpush3.bf16.msra.mxu0 %v3266_v49  ;;  %v2541_v49 = vld [vmem:[%s4133_s3] ss:$0 sm:$0xff] }
  0x9c   :  { %2980 = vmatprep.subr.bf16.mxu0 %v3269_v52 }
  0x9d   :  { %3001 = vmatpush3.bf16.msra.mxu1 %v3268_v51 }
  0x9e   :  { %3002 = vmatprep.subr.bf16.mxu1 %v3271_v54 }
  0x9f   :  { %2981 = vmatpush3.bf16.msra.mxu0 %v3270_v53 }
  0xa0   :  { %3010 = vmatprep.subr.bf16.mxu0 %v3275_v59 }
  0xa1   :  { %3003 = vmatpush3.bf16.msra.mxu1 %v3274_v58 }
  0xa2   :  { %2039 = vmatmul.mubr.bf16.vlgmr.msra.gmra.mxu0 %v2558_v56  ;;  %3032 = vmatprep.subr.bf16.mxu1 %v3279_v0  ;;  %v2758_v0 = vcombine.low %v2166_v41, %v2166_v41 }
  0xa3   :  { %3011 = vmatpush3.bf16.msra.mxu0 %v3278_v63  ;;  %2118 = vmatprep.mubr.bf16.mxu0 %v2563_v31  ;;  %v3324_v63 = vld [vmem:[%s4131_s4 + $0x40] sm:$0xff]  }
  0xa4   :  { %2079 = vmatmul.mubr.bf16.vlgmr.msra.gmra.mxu1 %v2560_v61  ;;  %3012 = vmatprep.subr.bf16.mxu0 %v3281_v2  ;;  %v3323_v61 = vld [vmem:[%s4131_s4 + $0x48] sm:$0xff]  }
  0xa5   :  { %3033 = vmatpush3.bf16.msra.mxu1 %v3280_v1  ;;  %2158 = vmatprep.mubr.bf16.mxu1 %v2565_v36 }
  0xa6   :  { %3034 = vmatprep.subr.bf16.mxu1 %v3283_v4 }
  0xa7   :  { %3013 = vmatpush3.bf16.msra.mxu0 %v3282_v3 }
  0xa8   :  { %3014 = vmatprep.subr.bf16.mxu0 %v3285_v6 }
  0xa9   :  { %3035 = vmatpush3.bf16.msra.mxu1 %v3284_v5 }
  0xaa   :  { %3036 = vmatprep.subr.bf16.mxu1 %v3287_v8 }
  0xab   :  { %3015 = vmatpush3.bf16.msra.mxu0 %v3286_v7 }
  0xac   :  { %3016 = vmatprep.subr.bf16.mxu0 %v3289_v10 }
  0xad   :  { %3037 = vmatpush3.bf16.msra.mxu1 %v3288_v9 }
  0xae   :  { %3038 = vmatprep.subr.bf16.mxu1 %v3291_v12 }
  0xaf   :  { %3017 = vmatpush3.bf16.msra.mxu0 %v3290_v11 }
  0xb0   :  { %3018 = vmatprep.subr.bf16.mxu0 %v3293_v14  ;;  %v3327_v14 = vld [vmem:[%s4134_s6 + $0x38] sm:$0xff]  }
  0xb1   :  { %3039 = vmatpush3.bf16.msra.mxu1 %v3292_v13  ;;  %v3338_v13 = vmov 0.0  }
  0xb2   :  { %3040 = vmatprep.subr.bf16.mxu1 %v3295_v16  ;;  %v3329_v16 = vld [vmem:[%s4134_s6 + $0x28] sm:$0xff]  }
  0xb3   :  { %3019 = vmatpush3.bf16.msra.mxu0 %v3294_v15  ;;  %v3328_v15 = vld [vmem:[%s4134_s6 + $0x30] sm:$0xff]  }
  0xb4   :  { %3020 = vmatprep.subr.bf16.mxu0 %v3297_v18  ;;  %v3331_v18 = vld [vmem:[%s4134_s6 + $0x18] sm:$0xff]  }
  0xb5   :  { %3041 = vmatpush3.bf16.msra.mxu1 %v3296_v17  ;;  %v3330_v17 = vld [vmem:[%s4134_s6 + $0x20] sm:$0xff]  }
  0xb6   :  { %3042 = vmatprep.subr.bf16.mxu1 %v3299_v20 }
  0xb7   :  { %3021 = vmatpush3.bf16.msra.mxu0 %v3298_v19  ;;  %v3332_v19 = vld [vmem:[%s4134_s6 + $0x10] sm:$0xff]  }
  0xb8   :  { %3022 = vmatprep.subr.bf16.mxu0 %v3301_v22 }
  0xb9   :  { %3043 = vmatpush3.bf16.msra.mxu1 %v3300_v21 }
  0xba   :  { %3044 = vmatprep.subr.bf16.mxu1 %v3303_v24 }
  0xbb   :  { %3023 = vmatpush3.bf16.msra.mxu0 %v3302_v23 }
  0xbc   :  { %3024 = vmatprep.subr.bf16.mxu0 %v3305_v26 }
  0xbd   :  { %3045 = vmatpush3.bf16.msra.mxu1 %v3304_v25 }
  0xbe   :  { %3046 = vmatprep.subr.bf16.mxu1 %v3307_v28 }
  0xbf   :  { %3025 = vmatpush3.bf16.msra.mxu0 %v3306_v27 }
  0xc0   :  { %2273 = vmatprep.subr.bf16.mxu0 %v3337_v34 }
  0xc1   :  { %3047 = vmatpush3.bf16.msra.mxu1 %v3310_v32  ;;  %v3333_v32 = vld [vmem:[%s4134_s6 + $0x8] sm:$0xff]  }
  0xc2   :  { %2119 = vmatmul.mubr.bf16.vlgmr.msra.gmra.mxu0 %v2562_v30  ;;  %3066 = vmatprep.subr.bf16.mxu1 %v3338_v13 }
  0xc3   :  { %2274 = vmatpush1.bf16.msra.mxu0 %v3313_v37  ;;  %2772 = vmatprep.mubr.msk.bf16.mxu0 %vm2269_vm0, %v2759_v42 }
  0xc4   :  { %2159 = vmatmul.mubr.bf16.vlgmr.msra.gmra.mxu1 %v2564_v35  ;;  %2275 = vmatprep.subr.bf16.mxu0 %v3337_v34 }
  0xc5   :  { %3067 = vmatpush3.bf16.msra.mxu1 %v3327_v14  ;;  %3082 = vmatprep.mubr.msk.bf16.mxu1 %vm3339_vm1, %v3338_v13 }
  0xc6   :  { %3068 = vmatprep.subr.bf16.mxu1 %v3338_v13 }
  0xc7   :  { %2276 = vmatpush1.bf16.msra.mxu0 %v3314_v38 }
  0xc8   :  { %2277 = vmatprep.subr.bf16.mxu0 %v3337_v34 }
  0xc9   :  { %3069 = vmatpush3.bf16.msra.mxu1 %v3328_v15  ;;  %v3335_v15 = vld [vmem:[%s4136_s9 + $0x8] sm:$0xff]  }
  0xca   :  { %3070 = vmatprep.subr.bf16.mxu1 %v3338_v13 }
  0xcb   :  { %2278 = vmatpush1.bf16.msra.mxu0 %v3315_v39 }
  0xcc   :  { %2279 = vmatprep.subr.bf16.mxu0 %v3337_v34 }
  0xcd   :  { %3071 = vmatpush3.bf16.msra.mxu1 %v3329_v16  ;;  %v3336_v16 = vld [vmem:[%s4136_s9] sm:$0xff]  }
  0xce   :  { %3072 = vmatprep.subr.bf16.mxu1 %v3338_v13 }
  0xcf   :  { %2280 = vmatpush1.bf16.msra.mxu0 %v3316_v40 }
  0xd0   :  { %2281 = vmatprep.subr.bf16.mxu0 %v3337_v34 }
  0xd1   :  { %3073 = vmatpush3.bf16.msra.mxu1 %v3330_v17  ;;  %v2782_v17 = vld [vmem:[%s4137_s7] ss:$0 sm:$0xff] }
  0xd2   :  { %3074 = vmatprep.subr.bf16.mxu1 %v3338_v13 }
  0xd3   :  { %2282 = vmatpush1.bf16.msra.mxu0 %v3317_v43 }
  0xd4   :  { %2283 = vmatprep.subr.bf16.mxu0 %v3337_v34 }
  0xd5   :  { %3075 = vmatpush3.bf16.msra.mxu1 %v3331_v18 }
  0xd6   :  { %3076 = vmatprep.subr.bf16.mxu1 %v3338_v13 }
  0xd7   :  { %2284 = vmatpush1.bf16.msra.mxu0 %v3318_v44 }
  0xd8   :  { %2285 = vmatprep.subr.bf16.mxu0 %v3337_v34 }
  0xd9   :  { %3077 = vmatpush3.bf16.msra.mxu1 %v3332_v19  ;;  %v2783_v19 = vld [vmem:[%s4138_s8] ss:$0 sm:$0xff] }
  0xda   :  { %3078 = vmatprep.subr.bf16.mxu1 %v3338_v13 }
  0xdb   :  { %2286 = vmatpush1.bf16.msra.mxu0 %v3319_v45 }
  0xdc   :  { %2287 = vmatprep.subr.bf16.mxu0 %v3337_v34 }
  0xdd   :  { %3079 = vmatpush3.bf16.msra.mxu1 %v3333_v32 }
  0xde   :  { %3080 = vmatprep.subr.bf16.mxu1 %v3338_v13 }
  0xdf   :  { %2288 = vmatpush1.bf16.msra.mxu0 %v3320_v46 }
  0xe0   :  { %2297 = vmatprep.subr.bf16.mxu0 %v3337_v34 }
  0xe1   :  { %3081 = vmatpush3.bf16.msra.mxu1 %v3334_v33 }
  0xe2   :  { %v2806_v47 = vpop.f32.mrf.mxu0  ;;  %3086 = vmatprep.subr.bf16.mxu1 %v3338_v13 }
  0xe3   :  { %2298 = vmatpush2.bf16.msra.mxu0 %v3321_v48 }
  0xe4   :  { %v2807_v50 = vpop.f32.mrf.mxu0  ;;  %v2828_v51 = vpop.f32.mrf.mxu1  ;;  %2299 = vmatprep.subr.bf16.mxu0 %v3337_v34 }
  0xe5   :  { %v2808_v52 = vadd.f32 %v2807_v50, %v2806_v47 }
  0xe6   :  { %v2809_v53 = vpop.f32.mrf.mxu0  ;;  %v2829_v54 = vpop.f32.mrf.mxu1 }
  0xe7   :  { %v1721_v56 = vadd.f32 %v2808_v52, %v2541_v49  ;;  %v2830_v57 = vadd.f32 %v2829_v54, %v2828_v51  ;;  %2300 = vmatpush2.bf16.msra.mxu0 %v3322_v55 }
  0xe8   :  { %v2810_v58 = vpop.f32.mrf.mxu0  ;;  %v2831_v59 = vpop.f32.mrf.mxu1  ;;  %2301 = vmatprep.subr.bf16.mxu0 %v3337_v34 }
  0xe9   :  { %v1761_v60 = vadd.f32 %v2830_v57, %v1721_v56 }
  0xea   :  { %v2832_v62 = vpop.f32.mrf.mxu1 }
  0xeb   :  { %2302 = vmatpush2.bf16.msra.mxu0 %v3323_v61 }
  0xec   :  { %2303 = vmatprep.subr.bf16.mxu0 %v3337_v34 }
  0xef   :  { %2304 = vmatpush2.bf16.msra.mxu0 %v3324_v63 }
  0xf2   :  { %2306 = vmatmul.mubr.bf16.vlgmr.msra.gmra.mxu0 %v2758_v0 }
 0x102   :  { %v2850_v1 = vpop.f32.mrf.mxu0 }
 0x104   :  { %v2851_v2 = vpop.f32.mrf.mxu0  ;;  %v2872_v4 = vpop.f32.mrf.mxu1 }
 0x105   :  { %v2852_v3 = vadd.f32 %v2851_v2, %v2850_v1 }
 0x106   :  { %v2853_v5 = vpop.f32.mrf.mxu0  ;;  %v2873_v7 = vpop.f32.mrf.mxu1 }
 0x107   :  { %v1801_v6 = vadd.f32 %v2852_v3, %v1761_v60  ;;  %v2874_v8 = vadd.f32 %v2873_v7, %v2872_v4  ;;  %v2773_v7 = vld [vmem:[%s4135_s5] ss:$0 sm:$0xff] }
 0x108   :  { %v2854_v9 = vpop.f32.mrf.mxu0  ;;  %v2875_v10 = vpop.f32.mrf.mxu1 }
 0x109   :  { %v1841_v11 = vadd.f32 %v2874_v8, %v1801_v6 }
 0x10a   :  { %v2876_v12 = vpop.f32.mrf.mxu1 }
 0x122   :  { %v2894_v20 = vpop.f32.mrf.mxu0 }
 0x124   :  { %v2895_v21 = vpop.f32.mrf.mxu0  ;;  %v2916_v22 = vpop.f32.mrf.mxu1 }
 0x125   :  { %v2896_v23 = vadd.f32 %v2895_v21, %v2894_v20 }
 0x126   :  { %v2897_v24 = vpop.f32.mrf.mxu0  ;;  %v2917_v25 = vpop.f32.mrf.mxu1 }
 0x127   :  { %v1881_v26 = vadd.f32 %v2896_v23, %v1841_v11  ;;  %v2918_v27 = vadd.f32 %v2917_v25, %v2916_v22 }
 0x128   :  { %v2898_v28 = vpop.f32.mrf.mxu0  ;;  %v2919_v29 = vpop.f32.mrf.mxu1 }
 0x129   :  { %v1921_v30 = vadd.f32 %v2918_v27, %v1881_v26  ;;  %v18_v27 = vstv %s4139_s12  ;;  %v2784_v28 = vld [vmem:[%s4140_s10] ss:$0 sm:$0xff] }
 0x12a   :  { %v2920_v31 = vpop.f32.mrf.mxu1  ;;  %19 = vst [vmem:[#allocation2] sm:$0x1] %v18_v27 }
 0x142   :  { %v2938_v34 = vpop.f32.mrf.mxu0 }
 0x144   :  { %v2939_v35 = vpop.f32.mrf.mxu0  ;;  %v2960_v36 = vpop.f32.mrf.mxu1 }
 0x145   :  { %v2940_v37 = vadd.f32 %v2939_v35, %v2938_v34  ;;  %v2788_v34 = vld [vmem:[%s4141_s11] ss:$0 sm:$0xff] }
 0x146   :  { %v2941_v38 = vpop.f32.mrf.mxu0  ;;  %v2961_v39 = vpop.f32.mrf.mxu1 }
 0x147   :  { %v1961_v40 = vadd.f32 %v2940_v37, %v1921_v30  ;;  %v2962_v41 = vadd.f32 %v2961_v39, %v2960_v36  ;;  %v2789_v39 = vld [vmem:[#allocation2] ss:$0 sm:$0xff] }
 0x148   :  { %v2942_v42 = vpop.f32.mrf.mxu0  ;;  %v2963_v43 = vpop.f32.mrf.mxu1 }
 0x149   :  { %v2001_v44 = vadd.f32 %v2962_v41, %v1961_v40 }
 0x14a   :  { %v2964_v45 = vpop.f32.mrf.mxu1 }
 0x162   :  { %v2982_v46 = vpop.f32.mrf.mxu0 }
 0x164   :  { %v2983_v47 = vpop.f32.mrf.mxu0  ;;  %v3004_v49 = vpop.f32.mrf.mxu1 }
 0x165   :  { %v2984_v48 = vadd.f32 %v2983_v47, %v2982_v46 }
 0x166   :  { %v2985_v50 = vpop.f32.mrf.mxu0  ;;  %v3005_v52 = vpop.f32.mrf.mxu1 }
 0x167   :  { %v2041_v51 = vadd.f32 %v2984_v48, %v2001_v44  ;;  %v3006_v53 = vadd.f32 %v3005_v52, %v3004_v49 }
 0x168   :  { %v2986_v54 = vpop.f32.mrf.mxu0  ;;  %v3007_v55 = vpop.f32.mrf.mxu1 }
 0x169   :  { %v2081_v56 = vadd.f32 %v3006_v53, %v2041_v51 }
 0x16a   :  { %v3008_v57 = vpop.f32.mrf.mxu1 }
 0x182   :  { %v3026_v58 = vpop.f32.mrf.mxu0 }
 0x184   :  { %v3027_v59 = vpop.f32.mrf.mxu0  ;;  %v3048_v60 = vpop.f32.mrf.mxu1 }
 0x185   :  { %v3028_v2 = vadd.f32 %v3027_v59, %v3026_v58 }
 0x186   :  { %v3029_v61 = vpop.f32.mrf.mxu0  ;;  %v3049_v62 = vpop.f32.mrf.mxu1 }
 0x187   :  { %v2121_v3 = vadd.f32 %v3028_v2, %v2081_v56  ;;  %v3050_v4 = vadd.f32 %v3049_v62, %v3048_v60 }
 0x188   :  { %v3030_v63 = vpop.f32.mrf.mxu0  ;;  %v3051_v0 = vpop.f32.mrf.mxu1 }
 0x189   :  { %v2161_v5 = vadd.f32 %v3050_v4, %v2121_v3 }
 0x18a   :  { %v3052_v1 = vpop.f32.mrf.mxu1 }
 0x1b2   :  { %v2307_v6 = vpop.f32.mrf.mxu0 }
 0x1b3   :  { %v2313_v8 = vadd.f32 %v2307_v6, %v2161_v5 }
 0x1b4   :  { %v2309_v9 = vpop.f32.mrf.mxu0 }
 0x1b5   :  { %v2321_v10 = vadd.f32 %v2773_v7, %v2313_v8 }
 0x1b6   :  { %v2310_v11 = vpop.f32.mrf.mxu0 }
 0x1b7   :  { %v2322_v12 = vpack.c.bf16 %v2321_v10, %v2321_v10 }
 0x1b8   :  { %v2311_v14 = vpop.f32.mrf.mxu0 }
 0x1b9   :  { %3083 = vmatmul.mubr.bf16.vlgmr.msra.gmra.mxu1 %v2322_v12 }
 0x1ba   :  { %3090 = vmatprep.mubr.msk.bf16.mxu1 %vm3339_vm1, %v3338_v13  ;;  %3087 = vmatpush3.bf16.msra.mxu1 %v3335_v15 }
 0x1bb   :  { %3088 = vmatprep.subr.bf16.mxu1 %v3338_v13 }
 0x1be   :  { %3089 = vmatpush3.bf16.msra.mxu1 %v3336_v16 }
 0x279   :  { %v2421_v18 = vpop.f32.mrf.mxu1 }
 0x27a   :  { %v2434_v20 = vmul.f32 %v2782_v17, %v2421_v18 }
 0x27b   :  { %v3084_v21 = vpop.f32.mrf.mxu1 }
 0x27c   :  { %v2442_v22 = vadd.f32 %v2783_v19, %v2434_v20 }
 0x27d   :  { %v2424_v23 = vpop.f32.mrf.mxu1 }
 0x27e   :  { %v2443_v24 = vmul.f32 0.01, %v2442_v22 }
 0x27f   :  { %v3085_v13 = vpop.f32.mrf.mxu1 }
 0x280   :  { %v2444_v25 = vmax.f32 %v2442_v22, %v2443_v24 }
 0x282   :  { %v2445_v26 = vpack.c.bf16 %v2444_v25, %v2444_v25 }
 0x284   :  { %3091 = vmatmul.mubr.msk.bf16.vlgmr.msra.gmra.mxu1 %vm2469_vm2, %v2445_v26 }
 0x344   :  { %v2507_v29 = vpop.f32.mrf.mxu1 }
 0x345   :  { %v2508_v30 = vadd.f32 %v2784_v28, %v2507_v29 }
 0x346   :  { %v3092_v31 = vpop.f32.mrf.mxu1 }
 0x347   :  { %v2513_v32 = vmul.f32 0.01, %v2508_v30 }
 0x348   :  { %v2510_v33 = vpop.f32.mrf.mxu1 }
 0x349   :  { %v2514_v35 = vmax.f32 %v2508_v30, %v2513_v32 }
 0x34a   :  { %v3093_v36 = vpop.f32.mrf.mxu1 }
 0x34b   :  { %v2522_v37 = vmul.f32 %v2788_v34, %v2514_v35 }
 0x34d   :  { %v2524_v38 = vsel %vm2523_vm3, %v2522_v37, 0.0 }
 0x34e   :  { %2525 = vadd.xlane.f32.xlu0 %v2524_v38 }
 0x3d7   :  { %v2526_v40 = vpop.xlane.xlu0 %2525 }
 0x3d8   :  { %v2534_v41 = vadd.f32 %v2789_v39, %v2526_v40 }
 0x3da   :  { %2536 = vst.msk [vmem:[%s4142_s13] sm:$0xff] %vm2535_vm4, %v2534_v41 }

</bundles_post_ra>
